<compile_context>
chip_gen: v5e
topology: v5e:2x2
jax: 0.10.0
libtpu: 0.0.40
codegen_flags: <defaults>
</compile_context>

<pallas_src>
import functools
import math

import jax
import jax.numpy as jnp
from jax import lax
from jax.experimental import pallas as pl
from jax.experimental.pallas import tpu as pltpu


def _pick_tile(target, dim):
    """Largest tile <= target that evenly divides dim (keeps grids exact)."""
    t = min(target, dim)
    if dim % t == 0:
        return t
    return max(math.gcd(target, dim), 1)


# ----------------------- fused QKV projection (tiled matmul) -----------------------
def _matmul_kernel(a_ref, b_ref, o_ref, acc_ref):
    @pl.when(pl.program_id(2) == 0)
    def _():
        acc_ref[...] = jnp.zeros_like(acc_ref)

    # a/b are already bf16 (cast once in the wrapper / stored bf16): no per-step casts.
    acc_ref[...] += jnp.dot(a_ref[...], b_ref[...],
                            preferred_element_type=jnp.float32)

    @pl.when(pl.program_id(2) == pl.num_programs(2) - 1)
    def _():
        o_ref[...] = acc_ref[...].astype(o_ref.dtype)


def pallas_matmul(a, b, *, tm=512, tn=1024, tk=512, out_dtype=jnp.bfloat16):
    """a: [M, K] bf16, b: [K, N] bf16 -> [M, N] out_dtype (f32 accumulation)."""
    M, K = a.shape
    K2, N = b.shape
    assert K == K2
    tm = _pick_tile(tm, M)
    tn = _pick_tile(tn, N)
    tk = _pick_tile(tk, K)
    return pl.pallas_call(
        _matmul_kernel,
        out_shape=jax.ShapeDtypeStruct((M, N), out_dtype),
        grid_spec=pltpu.PrefetchScalarGridSpec(
            num_scalar_prefetch=0,
            grid=(M // tm, N // tn, K // tk),
            in_specs=[
                pl.BlockSpec((tm, tk), lambda i, j, k: (i, k)),
                pl.BlockSpec((tk, tn), lambda i, j, k: (k, j)),
            ],
            out_specs=pl.BlockSpec((tm, tn), lambda i, j, k: (i, j)),
            scratch_shapes=[pltpu.VMEM((tm, tn), jnp.float32)],
        ),
        compiler_params=pltpu.CompilerParams(
            dimension_semantics=("parallel", "parallel", "arbitrary"),
            vmem_limit_bytes=32 * 1024 * 1024),
    )(a, b)


# -------------------- flash-attention (online softmax) SDPA kernel --------------------
def _flash_sdpa_kernel(q_ref, k_ref, v_ref, mask_ref, o_ref,
                       m_sc, l_sc, acc_sc):
    ki = pl.program_id(3)

    @pl.when(ki == 0)
    def _():
        m_sc[...] = jnp.full_like(m_sc, -jnp.inf)
        l_sc[...] = jnp.zeros_like(l_sc)
        acc_sc[...] = jnp.zeros_like(acc_sc)

    # q/k/v arrive as bf16 tiles; softmax scale already folded into the q weights.
    q = q_ref[...]                                    # (tq, D)  bf16
    k = k_ref[...]                                    # (tkv, D) bf16
    v = v_ref[...]                                    # (tkv, D) bf16
    m = mask_ref[...].astype(jnp.float32)             # (tq, tkv) additive mask

    # NT contraction straight on the MXU (no explicit K transpose through the XLU).
    s = lax.dot_general(q, k, dimension_numbers=(((1,), (1,)), ((), ())),
                        preferred_element_type=jnp.float32) + m   # (tq, tkv) f32

    m_prev = m_sc[...]
    m_new = jnp.maximum(m_prev, jnp.max(s, axis=-1, keepdims=True))
    alpha = jnp.exp(m_prev - m_new)
    p = jnp.exp(s - m_new)

    l_sc[...] = alpha * l_sc[...] + jnp.sum(p, axis=-1, keepdims=True)
    acc_sc[...] = alpha * acc_sc[...] + jnp.dot(
        p.astype(jnp.bfloat16), v, preferred_element_type=jnp.float32)
    m_sc[...] = m_new

    @pl.when(ki == pl.num_programs(3) - 1)
    def _():
        # TODO(synk): a fully -inf-masked row would give l==0 -> inf; the module's
        # mask is finite (float16 min) so no guard is needed here.
        inv = pl.reciprocal(l_sc[...], approx=True)
        o_ref[...] = (acc_sc[...] * inv).astype(o_ref.dtype)


def pallas_flash_sdpa(qkv, mask, *, num_heads, head_size, tq=512, tkv=512):
    """qkv: [B, S, 3*H*D] bf16 (fused q|k|v columns, q pre-scaled);
    mask: [1, S, S] additive.  Returns [B, S, H*D] f32 (no head transposes)."""
    B, S, three_hd = qkv.shape
    H, D = num_heads, head_size
    assert three_hd == 3 * H * D
    tq = _pick_tile(tq, S)
    tkv = _pick_tile(tkv, S)

    # Mask is the single largest per-head HBM stream: send it in bf16.
    mask = mask.astype(jnp.bfloat16)

    # q columns:  [0,       H*D)  -> block index h
    # k columns:  [H*D,   2*H*D)  -> block index H + h
    # v columns:  [2*H*D, 3*H*D)  -> block index 2*H + h
    q_spec = pl.BlockSpec((None, tq, D), lambda b, h, qi, ki: (b, qi, h))
    k_spec = pl.BlockSpec((None, tkv, D), lambda b, h, qi, ki: (b, ki, H + h))
    v_spec = pl.BlockSpec((None, tkv, D), lambda b, h, qi, ki: (b, ki, 2 * H + h))
    m_spec = pl.BlockSpec((None, tq, tkv), lambda b, h, qi, ki: (0, qi, ki))
    o_spec = pl.BlockSpec((None, tq, D), lambda b, h, qi, ki: (b, qi, h))

    return pl.pallas_call(
        _flash_sdpa_kernel,
        out_shape=jax.ShapeDtypeStruct((B, S, H * D), jnp.float32),
        grid_spec=pltpu.PrefetchScalarGridSpec(
            num_scalar_prefetch=0,
            grid=(B, H, S // tq, S // tkv),
            in_specs=[q_spec, k_spec, v_spec, m_spec],
            out_specs=o_spec,
            scratch_shapes=[
                pltpu.VMEM((tq, 1), jnp.float32),    # running max m
                pltpu.VMEM((tq, 1), jnp.float32),    # running denom l
                pltpu.VMEM((tq, D), jnp.float32),    # f32 output accumulator
            ],
        ),
        compiler_params=pltpu.CompilerParams(
            dimension_semantics=("parallel", "parallel", "parallel", "arbitrary"),
            vmem_limit_bytes=32 * 1024 * 1024),
    )(qkv, qkv, qkv, mask)


# ------------------------------------ full module ------------------------------------
def sdpa_attention_forward(hidden_states, attention_mask, w_qkv,
                           num_heads, num_kv_heads, head_size):
    """hidden_states: [B, S, hidden] f32; attention_mask: [1, S, S] f32 additive.
    w_qkv: fused, pre-transposed, pre-scaled projection weight [hidden, 3*H*D] bf16."""
    # Original module has num_heads == num_kv_heads (enable_gqa=False).
    # TODO(synk): GQA head-repeat (num_kv_heads < num_heads) not implemented.
    assert num_heads == num_kv_heads
    B, S, hidden = hidden_states.shape
    # Cast activations to bf16 once (A is re-read N/tn times inside the matmul).
    x2d = hidden_states.reshape(B * S, hidden).astype(jnp.bfloat16)
    qkv2d = pallas_matmul(x2d, w_qkv, out_dtype=jnp.bfloat16)   # [B*S, 3*H*D] bf16
    qkv = qkv2d.reshape(B, S, 3 * num_heads * head_size)
    out = pallas_flash_sdpa(qkv, attention_mask,
                            num_heads=num_heads, head_size=head_size)
    return out                                                  # [B, S, hidden] f32


def init_params(key, hidden_size, num_heads, num_kv_heads):
    head_size = hidden_size // num_heads
    kq, kk, kv = jax.random.split(key, 3)
    bound = 1.0 / math.sqrt(hidden_size)   # nn.Linear default uniform init
    q_w = jax.random.uniform(kq, (num_heads * head_size, hidden_size),
                             jnp.float32, -bound, bound)
    k_w = jax.random.uniform(kk, (num_kv_heads * head_size, hidden_size),
                             jnp.float32, -bound, bound)
    v_w = jax.random.uniform(kv, (num_kv_heads * head_size, hidden_size),
                             jnp.float32, -bound, bound)
    # replicate: self.k_proj.weight[1:, :] = 0 ; self.v_proj.weight[1:, :] = 0
    k_w = k_w.at[1:, :].set(0.0)
    v_w = v_w.at[1:, :].set(0.0)
    # Reference weight (unscaled, un-fused semantics preserved via the reference fn).
    w_qkv_f32 = jnp.concatenate([q_w, k_w, v_w], axis=0).T      # [hidden, 3*H*D]
    # Kernel weight: fuse, pre-transpose, fold 1/sqrt(D) into q columns, store bf16.
    scale = 1.0 / math.sqrt(head_size)
    w_qkv_scaled = jnp.concatenate([q_w * scale, k_w, v_w], axis=0).T
    return {"w_qkv": w_qkv_scaled.astype(jnp.bfloat16), "w_qkv_f32": w_qkv_f32}


# -------------------------- pure-JAX reference (same precision) -----------------------
def reference_forward(hidden_states, attention_mask, w_qkv_f32, num_heads, head_size):
    B, S, hidden = hidden_states.shape
    H, D = num_heads, head_size
    x = hidden_states.reshape(B * S, hidden)
    qkv = jnp.dot(x.astype(jnp.bfloat16), w_qkv_f32.astype(jnp.bfloat16),
                  preferred_element_type=jnp.float32)
    qkv = qkv.reshape(B, S, 3, H, D)
    q = qkv[:, :, 0].transpose(0, 2, 1, 3)     # [B,H,S,D]
    k = qkv[:, :, 1].transpose(0, 2, 1, 3)
    v = qkv[:, :, 2].transpose(0, 2, 1, 3)
    scale = 1.0 / math.sqrt(D)
    s = jnp.einsum('bhqd,bhkd->bhqk',
                   (q * scale).astype(jnp.bfloat16), k.astype(jnp.bfloat16),
                   preferred_element_type=jnp.float32)
    s = s + attention_mask[:, None, :, :]
    p = jax.nn.softmax(s, axis=-1)
    o = jnp.einsum('bhqk,bhkd->bhqd',
                   p.astype(jnp.bfloat16), v.astype(jnp.bfloat16),
                   preferred_element_type=jnp.float32)
    return o.transpose(0, 2, 1, 3).reshape(B, S, hidden)


if __name__ == "__main__":
    # Small shapes consistent with the module's forward
    # (original: B=1, S=8192, num_heads=num_kv_heads=28, head_size=128).
    B = 1
    S = 256
    num_heads = 4
    num_kv_heads = 4
    head_size = 128
    hidden_size = num_heads * head_size

    key = jax.random.PRNGKey(0)
    k_hs, k_par = jax.random.split(key)

    hidden_states = jax.random.normal(k_hs, (B, S, hidden_size), jnp.float32)
    # same construction as the script: zeros + float16 min (additive mask)
    attention_mask = jnp.zeros((1, S, S), jnp.float32) + jnp.finfo(jnp.float16).min

    params = init_params(k_par, hidden_size, num_heads, num_kv_heads)

    out = sdpa_attention_forward(hidden_states, attention_mask, params["w_qkv"],
                                 num_heads, num_kv_heads, head_size)
    jax.block_until_ready(out)

    ref = reference_forward(hidden_states, attention_mask, params["w_qkv_f32"],
                            num_heads, head_size)

    assert out.shape == (B, S, hidden_size)
    assert bool(jnp.all(jnp.isfinite(out)))
    assert float(jnp.max(jnp.abs(out - ref))) < 3e-2
    print("KERNEL_OK")
</pallas_src>

<mosaic_0001>
module attributes {stable_mosaic.version = 11 : i64} {
  func.func @_matmul_kernel(%arg0: i32, %arg1: i32, %arg2: i32, %arg3: memref<256x512xbf16, #tpu.memory_space<vmem>>, %arg4: memref<512x512xbf16, #tpu.memory_space<vmem>>, %arg5: memref<256x512xbf16, #tpu.memory_space<vmem>>, %arg6: memref<256x512xf32, #tpu.memory_space<vmem>>) attributes {dimension_semantics = [#tpu.dimension_semantics<parallel>, #tpu.dimension_semantics<parallel>, #tpu.dimension_semantics<arbitrary>], iteration_bounds = array<i64: 1, 3, 1>, scalar_prefetch = 0 : i64, scratch_operands = 1 : i64, tpu.core_type = #tpu.core_type<tc>, window_params = [{transform_indices = @transform_0, window_bounds = array<i64: 256, 512>}, {transform_indices = @transform_1, window_bounds = array<i64: 512, 512>}, {transform_indices = @transform_2, window_bounds = array<i64: 256, 512>}]} {
    %c0_i32 = arith.constant 0 : i32
    %0 = arith.cmpi eq, %arg2, %c0_i32 : i32
    %1 = arith.extui %0 : i1 to i32
    %c0_i32_0 = arith.constant 0 : i32
    %2 = arith.cmpi ne, %1, %c0_i32_0 : i32
    scf.if %2 {
      %cst_10 = arith.constant 0.000000e+00 : f32
      %12 = vector.broadcast %cst_10 : f32 to vector<256x512xf32>
      %c0_11 = arith.constant 0 : index
      %c0_12 = arith.constant 0 : index
      %13 = vector.load %arg6[%c0_11, %c0_12] : memref<256x512xf32, #tpu.memory_space<vmem>>, vector<256x512xf32>
      tpu.vector_store %arg6[%c0_11, %c0_12], %12 {strides = array<i32>} : memref<256x512xf32, #tpu.memory_space<vmem>>, vector<256x512xf32>,
    } else {
    }
    %c0 = arith.constant 0 : index
    %c0_1 = arith.constant 0 : index
    %3 = vector.load %arg6[%c0, %c0_1] : memref<256x512xf32, #tpu.memory_space<vmem>>, vector<256x512xf32>
    %c0_2 = arith.constant 0 : index
    %c0_3 = arith.constant 0 : index
    %4 = vector.load %arg3[%c0_2, %c0_3] : memref<256x512xbf16, #tpu.memory_space<vmem>>, vector<256x512xbf16>
    %c0_4 = arith.constant 0 : index
    %c0_5 = arith.constant 0 : index
    %5 = vector.load %arg4[%c0_4, %c0_5] : memref<512x512xbf16, #tpu.memory_space<vmem>>, vector<512x512xbf16>
    %cst = arith.constant dense<0.000000e+00> : vector<256x512xf32>
    %6 = tpu.matmul %4, %5, %cst {dimension_numbers = #tpu.dot_dimension_numbers<[1], [0], [0], [1], [0, 0, 1, 1], [], []>} : vector<256x512xbf16>, vector<512x512xbf16>, vector<256x512xf32> -> vector<256x512xf32>
    %7 = arith.addf %3, %6 : vector<256x512xf32>
    %c0_6 = arith.constant 0 : index
    %c0_7 = arith.constant 0 : index
    %8 = vector.load %arg6[%c0_6, %c0_7] : memref<256x512xf32, #tpu.memory_space<vmem>>, vector<256x512xf32>
    tpu.vector_store %arg6[%c0_6, %c0_7], %7 {strides = array<i32>} : memref<256x512xf32, #tpu.memory_space<vmem>>, vector<256x512xf32>,
    %c0_i32_8 = arith.constant 0 : i32
    %9 = arith.cmpi eq, %arg2, %c0_i32_8 : i32
    %10 = arith.extui %9 : i1 to i32
    %c0_i32_9 = arith.constant 0 : i32
    %11 = arith.cmpi ne, %10, %c0_i32_9 : i32
    scf.if %11 {
      %c0_10 = arith.constant 0 : index
      %c0_11 = arith.constant 0 : index
      %12 = vector.load %arg6[%c0_10, %c0_11] : memref<256x512xf32, #tpu.memory_space<vmem>>, vector<256x512xf32>
      %13 = arith.truncf %12 : vector<256x512xf32> to vector<256x512xbf16>
      %c0_12 = arith.constant 0 : index
      %c0_13 = arith.constant 0 : index
      %14 = vector.load %arg5[%c0_12, %c0_13] : memref<256x512xbf16, #tpu.memory_space<vmem>>, vector<256x512xbf16>
      tpu.vector_store %arg5[%c0_12, %c0_13], %13 {strides = array<i32>} : memref<256x512xbf16, #tpu.memory_space<vmem>>, vector<256x512xbf16>,
    } else {
    }
    return
  }
  func.func @transform_0(%arg0: i32, %arg1: i32, %arg2: i32) -> (i32, i32) {
    %c0_i32 = arith.constant 0 : i32
    return %arg0, %arg2 : i32, i32
  }
  func.func @transform_1(%arg0: i32, %arg1: i32, %arg2: i32) -> (i32, i32) {
    %c0_i32 = arith.constant 0 : i32
    return %arg2, %arg1 : i32, i32
  }
  func.func @transform_2(%arg0: i32, %arg1: i32, %arg2: i32) -> (i32, i32) {
    %c0_i32 = arith.constant 0 : i32
    return %arg0, %arg1 : i32, i32
  }
}

</mosaic_0001>

<bundles_post_ra>
// kernel: tpu_custom_call.1
= control target key start
LH: loop header
LB: loop body
LE: loop exit
PB: predicated region body
PF: predicated region fallthrough
CT: control target
= control target key end

     0   :  { %7 = vsyncpa [#allocation4], 0  ;;  %s5985_s0 = inlined_call_operand.hbm [shape: bf16[256,512], index: 0, kind: input, shape index: {}]   ;;  %s5986_s1 = inlined_call_operand.hbm [shape: bf16[512,1536], index: 1, kind: input, shape index: {}]   ;;  %s5987_s2 = inlined_call_operand.hbm [shape: bf16[256,1536], index: 2, kind: output, shape index: {}]  }
   0x1   :  { %8 = vsyncpa [#allocation7], 0 }
   0x2   :  { %10 = vsyncpa [#allocation7 + $0x1], 0 }
   0x3   :  { %11 = vsyncpa [#allocation5], 0 }
   0x4   :  { %13 = vsyncpa [#allocation5 + $0x1], 0  ;;  %s4931_s9 = smov 0   ;;  %s4933_s10 = smov 0  }
   0x5   :  { %s4935_s11 = smov 0   ;;  %s4937_s12 = smov 0  }
   0x6   :  { %s4939_s13 = smov 0   ;;  %s4941_s14 = smov 0  }
   0x7 LB: > { %s3703_s15 = sadd.s32 4294967295, %s4907_s14   ;;  %s3704_s16 = sadd.s32 4294967294, %s4907_s14   ;;  %s4907_s14 = sphi %s4941_s14, %s19_s14   ;;  %s4903_s13 = sphi %s4939_s13, %s6240_s13   ;;  %s4899_s12 = sphi %s4937_s12, %s6239_s12   ;;  %s4895_s11 = sphi %s4935_s11, %s6238_s11   ;;  %s4891_s10 = sphi %s4933_s10, %s6237_s10   ;;  %s4887_s9 = sphi %s4931_s9, %s6236_s9  }
   0x8   : > { %p88_p0 = scmp.ne.s32.totalorder %s4891_s10, %s4887_s9  ;;  %p4965_p1 = scmp.eq.s32.totalorder %s3703_s15, 0 }
   0x9   : > { %p4969_p2 = scmp.eq.s32.totalorder %s3703_s15, 2  ;;  %p120_p3 = scmp.eq.s32.totalorder %s3704_s16, 2 }
   0xa   : > { %p4975_p4 = por %p4965_p1, %p88_p0  ;;  %p3705_p5 = scmp.ge.s32.totalorder %s4907_s14, 1 }
   0xb   : > { %p4980_p6 = por %p120_p3, %p88_p0  ;;  %p127_p7 = scmp.lt.s32.totalorder %s4907_s14, 4 }
   0xc   : > { %s144_s23 = sshll.u32 %s5985_s0, 4  ;;  %s4909_s25 = smov [#allocation3]   ;;  %s145_s23 = int_to_ptr.hbm [resolvable:$true] %s144_s23 }
   0xd   : > { %p4988_p8 = pnand %p3705_p5, %p127_p7  ;;  %s146_s26 = sshll.u32 %s4909_s25, 4  ;;  %s147_s26 = int_to_ptr.vmem [resolvable:$true] %s146_s26 }
   0xe   : > { %s5988_s27 = smov 256   ;;  %s4911_s28 = smov 16  }
   0xf   : > { %p4690_p9 = pneg %p4988_p8  ;;  %s34_s29 = sadd.s32 1, %s4903_s13 }
  0x10   : > { %p36_p11 = scmp.ge.s32.totalorder %s34_s29, 3  ;;  %s75_s30 = sadd.s32 1, %s4895_s11 }
  0x11   : > { %p4691_p10 = pnand %p4690_p9, %p4965_p1  ;;  %p82_p12 = scmp.ne.s32.totalorder %s4895_s11, %s4891_s10 }
  0x12   : > { %p83_p13 = scmp.eq.s32.totalorder %s4907_s14, 0  ;;  %s6242_s29 = smov (%p36_p11, %s34_s29), 0 }
  0x13   : > { %4693 = dma.hbm_to_vmem [thread:$0]  (!%p4691_p10), %s145_s23, 8192, %s147_s26, [#allocation4], %s5988_s27, %s5988_s27, %s4911_s28  }
  0x14   : > { %p5006_p0 = por %p83_p13, %p82_p12  ;;  %p5012_p3 = por %p4969_p2, %p82_p12 }
  0x15   : > { %s71_s5 = ssub.s32 %s4903_s13, %s6242_s29  ;;  %p4703_p5 = scmp.lt.s32.totalorder %s4907_s14, 3 }
  0x16   : > { %p73_p7 = scmp.eq.s32.totalorder %s71_s5, 0  ;;  %s160_s6 = sand.u32 1, %s4895_s11  }
  0x17   : > { %s3708_s7 = sshll.u32 %s160_s6, 10  ;;  %s4488_s15 = sshll.u32 %s4903_s13, 4 }
  0x18   : > { %s5021_s8 = scalar_select %p73_p7, %s4895_s11, %s75_s30  }
  0x19   : > { %s172_s22 = scalar_lea.hbm %s5986_s1, %s4488_s15  ;;  %s164_s23 = scalar_lea.vmem [#allocation6], %s3708_s7 }
  0x1a   : > { %s175_s25 = sshll.u32 %s164_s23, 4  ;;  %s173_s18 = sshll.u32 %s172_s22, 4  ;;  %s176_s25 = int_to_ptr.vmem [resolvable:$true] %s175_s25  ;;  %s174_s18 = int_to_ptr.hbm [resolvable:$true] %s173_s18 }
  0x1b   : > { %p4695_p2 = pnand %p4703_p5, %p5006_p0  ;;  %s161_s26 = scalar_lea.sflag [#allocation7], %s160_s6 }
  0x1c   : > { %s4912_s27 = smov 768   ;;  %s6069_s5 = smov 256  }
  0x1d   : > { %4697 = dma.hbm_to_vmem [thread:$0]  (!%p4695_p2), %s174_s18, 16384, %s176_s25, %s161_s26, %s4912_s27, %s6069_s5, %s4911_s28  }
  0x1e   : > { %187 = sbr.rel (%p4988_p8) target bundleno = 1235 (0x4d3), region = 28 }
  0x23   : > { %4874 = dma.done.wait (%p4965_p1), [#allocation4], 8192  }
  0x24   : > { %4876 = vsyncadd (%p4965_p1), [#allocation4], 4294959104  ;;  %s5038_s30 = sand.u32 1, %s4891_s10  }
  0x25   : > { %s3713_s3 = sshll.u32 %s5038_s30, 10  ;;  %s195_s6 = scalar_lea.sflag [#allocation7], %s5038_s30 }
  0x26   : > { %s5042_s7 = scalar_lea.vmem [#allocation6], %s3713_s3 }
  0x27   : > { %4878 = dma.done.wait (%p4975_p4), %s195_s6, 16384  }
  0x28   : > { %4880 = vsyncadd (%p4975_p4), %s195_s6, 4294950912  ;;  %v4085_v0 = vld [vmem:[%s5042_s7 + $0xe0] sm:$0xf]  ;;  %v4583_v1 = vld [vmem:[%s5042_s7 + $0xec] sm:$0xf0]  ;;  %s3714_s17 = sshll.u32 %s5038_s30, 9 }
  0x29   : > { %v4213_v2 = vld [vmem:[%s5042_s7 + $0x1e0] sm:$0xf]  ;;  %v4086_v3 = vor.u32 %v4583_v1, %v4085_v0  ;;  %v4615_v4 = vld [vmem:[%s5042_s7 + $0x1ec] sm:$0xf0]  ;;  %s5514_s19 = scalar_lea.vmem [#allocation8], %s3714_s17  ;;  %s4681_s24 = sshll.u32 %s4899_s12, 4 }
  0x2a   : > { %v4341_v5 = vld [vmem:[%s5042_s7 + $0x2e0] sm:$0xf]  ;;  %v4647_v6 = vld [vmem:[%s5042_s7 + $0x2ec] sm:$0xf0]  ;;  %v4214_v7 = vor.u32 %v4615_v4, %v4213_v2  ;;  %s3592_s15 = scalar_lea.hbm %s5987_s2, %s4681_s24  ;;  %s3593_s16 = sshll.u32 %s5514_s19, 4  ;;  %s3594_s16 = int_to_ptr.vmem [resolvable:$true] %s3593_s16 }
  0x2b   : > { %v4342_v8 = vor.u32 %v4647_v6, %v4341_v5  ;;  %v4469_v9 = vld [vmem:[%s5042_s7 + $0x3e0] sm:$0xf]  ;;  %v4679_v10 = vld [vmem:[%s5042_s7 + $0x3ec] sm:$0xf0]  ;;  %1638 = vmatpush.bf16.msra.mxu0 %v4086_v3  ;;  %s3595_s21 = sshll.u32 %s3592_s15, 4  ;;  %s3578_s12 = scalar_lea.sflag [#allocation5], %s5038_s30  ;;  %s3596_s21 = int_to_ptr.hbm [resolvable:$true] %s3595_s21 }
  0x2c   : > { %v4069_v11 = vld [vmem:[%s5042_s7 + $0xc0] sm:$0xf]  ;;  %v4470_v12 = vor.u32 %v4679_v10, %v4469_v9  ;;  %v4579_v13 = vld [vmem:[%s5042_s7 + $0xcc] sm:$0xf0]  ;;  %1727 = vmatpush.bf16.msra.mxu1 %v4214_v7  ;;  %s4835_s22 = sshra.s32 %s3596_s21, 4  ;;  %s4841_s26 = scalar_lea.hbm %s5987_s2, 1536  ;;  %s4836_s22 = int_to_ptr.hbm [resolvable:$true] %s4835_s22 }
  0x2d   : > { %v4197_v14 = vld [vmem:[%s5042_s7 + $0x1c0] sm:$0xf]  ;;  %v4611_v15 = vld [vmem:[%s5042_s7 + $0x1cc] sm:$0xf0]  ;;  %1816 = vmatpush.bf16.msra.mxu2 %v4342_v8  ;;  %v4070_v16 = vor.u32 %v4579_v13, %v4069_v11  ;;  %s4837_s23 = scalar_lea.hbm %s4836_s22, 512  ;;  %p4842_p9 = scmp.lt.s32.totalorder %s4836_s22, %s5987_s2 }
  0x2e   : > { %v4198_v17 = vor.u32 %v4611_v15, %v4197_v14  ;;  %v4325_v18 = vld [vmem:[%s5042_s7 + $0x2c0] sm:$0xf]  ;;  %v4643_v19 = vld [vmem:[%s5042_s7 + $0x2cc] sm:$0xf0]  ;;  %1905 = vmatpush.bf16.msra.mxu3 %v4470_v12  ;;  %p4838_p1 = scmp.ne.s32.totalorder %s4836_s22, %s4837_s23  ;;  %p4843_p10 = scmp.lt.s32.totalorder %s4841_s26, %s4837_s23 }
  0x2f   : > { %v4453_v20 = vld [vmem:[%s5042_s7 + $0x3c0] sm:$0xf]  ;;  %v4326_v21 = vor.u32 %v4643_v19, %v4325_v18  ;;  %v4675_v22 = vld [vmem:[%s5042_s7 + $0x3cc] sm:$0xf0]  ;;  %1639 = vmatpush.bf16.msra.mxu0 %v4070_v16 }
  0x30   : > { %v4053_v23 = vld [vmem:[%s5042_s7 + $0xa0] sm:$0xf]  ;;  %v4575_v24 = vld [vmem:[%s5042_s7 + $0xac] sm:$0xf0]  ;;  %v4454_v25 = vor.u32 %v4675_v22, %v4453_v20  ;;  %1728 = vmatpush.bf16.msra.mxu1 %v4198_v17  ;;  %p4839_p4 = pnand %p4838_p1, %p5012_p3  ;;  %p4844_p11 = por %p4843_p10, %p4842_p9 }
  0x31   : > { %v4181_v26 = vld [vmem:[%s5042_s7 + $0x1a0] sm:$0xf]  ;;  %v4607_v27 = vld [vmem:[%s5042_s7 + $0x1ac] sm:$0xf0]  ;;  %v4054_v29 = vor.u32 %v4575_v24, %v4053_v23  ;;  %1817 = vmatpush.bf16.msra.mxu2 %v4326_v21 }
  0x32   : > { %v4309_v28 = vld [vmem:[%s5042_s7 + $0x2a0] sm:$0xf]  ;;  %v4639_v30 = vld [vmem:[%s5042_s7 + $0x2ac] sm:$0xf0]  ;;  %v4182_v33 = vor.u32 %v4607_v27, %v4181_v26  ;;  %1906 = vmatpush.bf16.msra.mxu3 %v4454_v25  ;;  %p4840_p8 = pneg %p4839_p4 }
  0x33   : > { %v4437_v31 = vld [vmem:[%s5042_s7 + $0x3a0] sm:$0xf]  ;;  %v4671_v32 = vld [vmem:[%s5042_s7 + $0x3ac] sm:$0xf0]  ;;  %v4310_v34 = vor.u32 %v4639_v30, %v4309_v28  ;;  %1640 = vmatpush.bf16.msra.mxu0 %v4054_v29  ;;  %v4489_v30 = vld [vmem:[#allocation3 + $0x4] sm:$0xf] }
  0x34   : > { %v4037_v35 = vld [vmem:[%s5042_s7 + $0x80] sm:$0xf]  ;;  %v4571_v36 = vld [vmem:[%s5042_s7 + $0x8c] sm:$0xf0]  ;;  %v4438_v38 = vor.u32 %v4671_v32, %v4437_v31  ;;  %1729 = vmatpush.bf16.msra.mxu1 %v4182_v33  ;;  %v4645_v31 = vld [vmem:[%s5042_s7 + $0x2e4] sm:$0xf]  ;;  %p4845_p12 = pnand %p4844_p11, %p4840_p8 }
  0x35   : > { %v4165_v37 = vld [vmem:[%s5042_s7 + $0x180] sm:$0xf]  ;;  %v4603_v39 = vld [vmem:[%s5042_s7 + $0x18c] sm:$0xf0]  ;;  %v4038_v44 = vor.u32 %v4571_v36, %v4037_v35  ;;  %1818 = vmatpush.bf16.msra.mxu2 %v4310_v34  ;;  %v4343_v32 = vld [vmem:[%s5042_s7 + $0x2f0] sm:$0xf0] }
  0x36   : > { %v4293_v40 = vld [vmem:[%s5042_s7 + $0x280] sm:$0xf]  ;;  %v4635_v41 = vld [vmem:[%s5042_s7 + $0x28c] sm:$0xf0]  ;;  %v4166_v45 = vor.u32 %v4603_v39, %v4165_v37  ;;  %1907 = vmatpush.bf16.msra.mxu3 %v4438_v38  ;;  %v3719_v34 = vld [vmem:[#allocation3 + $0x10] sm:$0xf0] }
  0x37   : > { %v4421_v42 = vld [vmem:[%s5042_s7 + $0x380] sm:$0xf]  ;;  %v4667_v43 = vld [vmem:[%s5042_s7 + $0x38c] sm:$0xf0]  ;;  %v4294_v46 = vor.u32 %v4635_v41, %v4293_v40  ;;  %1641 = vmatpush.bf16.msra.mxu0 %v4038_v44  ;;  %v4677_v35 = vld [vmem:[%s5042_s7 + $0x3e4] sm:$0xf]  ;;  %v4346_v44 = vor.u32 %v4645_v31, %v4343_v32 }
  0x38   : > { %v4021_v47 = vld [vmem:[%s5042_s7 + $0x60] sm:$0xf]  ;;  %v4567_v48 = vld [vmem:[%s5042_s7 + $0x6c] sm:$0xf0]  ;;  %v4422_v50 = vor.u32 %v4667_v43, %v4421_v42  ;;  %1730 = vmatpush.bf16.msra.mxu1 %v4166_v45  ;;  %v4471_v36 = vld [vmem:[%s5042_s7 + $0x3f0] sm:$0xf0] }
  0x39   : > { %v4149_v49 = vld [vmem:[%s5042_s7 + $0x160] sm:$0xf]  ;;  %v4599_v51 = vld [vmem:[%s5042_s7 + $0x16c] sm:$0xf0]  ;;  %v4022_v56 = vor.u32 %v4567_v48, %v4021_v47  ;;  %1819 = vmatpush.bf16.msra.mxu2 %v4294_v46  ;;  %v3725_v39 = vld [vmem:[#allocation3 + $0x8] sm:$0xf]  ;;  %v4474_v48 = vor.u32 %v4677_v35, %v4471_v36 }
  0x3a   : > { %v4277_v52 = vld [vmem:[%s5042_s7 + $0x260] sm:$0xf]  ;;  %v4631_v53 = vld [vmem:[%s5042_s7 + $0x26c] sm:$0xf0]  ;;  %v4150_v57 = vor.u32 %v4599_v51, %v4149_v49  ;;  %1908 = vmatpush.bf16.msra.mxu3 %v4422_v50  ;;  %v4492_v40 = vld [vmem:[#allocation3 + $0x14] sm:$0xf0]  ;;  %v5122_v51 = vor.u32 %v4489_v30, %v3719_v34 }
  0x3b   : > { %v4405_v54 = vld [vmem:[%s5042_s7 + $0x360] sm:$0xf]  ;;  %v4663_v55 = vld [vmem:[%s5042_s7 + $0x36c] sm:$0xf0]  ;;  %v4278_v58 = vor.u32 %v4631_v53, %v4277_v52  ;;  %1642 = vmatpush.bf16.msra.mxu0 %v4022_v56  ;;  %v4490_v41 = vld [vmem:[#allocation3 + $0xc] sm:$0xf]  ;;  %v5124_v52 = vor.u32 %v4492_v40, %v3725_v39 }
  0x3c   : > { %v4005_v59 = vld [vmem:[%s5042_s7 + $0x40] sm:$0xf]  ;;  %v4563_v60 = vld [vmem:[%s5042_s7 + $0x4c] sm:$0xf0]  ;;  %v4406_v62 = vor.u32 %v4663_v55, %v4405_v54  ;;  %1731 = vmatpush.bf16.msra.mxu1 %v4150_v57  ;;  %v3727_v43 = vld [vmem:[#allocation3 + $0x18] sm:$0xf0] }
  0x3d   : > { %v4133_v61 = vld [vmem:[%s5042_s7 + $0x140] sm:$0xf]  ;;  %v4595_v63 = vld [vmem:[%s5042_s7 + $0x14c] sm:$0xf0]  ;;  %v4006_v4 = vor.u32 %v4563_v60, %v4005_v59  ;;  %1820 = vmatpush.bf16.msra.mxu2 %v4278_v58  ;;  %v4581_v45 = vld [vmem:[%s5042_s7 + $0xe4] sm:$0xf]  ;;  %v5126_v53 = vor.u32 %v4490_v41, %v3727_v43 }
  0x3e   : > { %v4261_v0 = vld [vmem:[%s5042_s7 + $0x240] sm:$0xf]  ;;  %v4627_v1 = vld [vmem:[%s5042_s7 + $0x24c] sm:$0xf0]  ;;  %v4134_v5 = vor.u32 %v4595_v63, %v4133_v61  ;;  %1909 = vmatpush.bf16.msra.mxu3 %v4406_v62  ;;  %v4087_v46 = vld [vmem:[%s5042_s7 + $0xf0] sm:$0xf0] }
  0x3f   : > { %v4389_v2 = vld [vmem:[%s5042_s7 + $0x340] sm:$0xf]  ;;  %v4659_v3 = vld [vmem:[%s5042_s7 + $0x34c] sm:$0xf0]  ;;  %v4262_v6 = vor.u32 %v4627_v1, %v4261_v0  ;;  %1643 = vmatpush.bf16.msra.mxu0 %v4006_v4  ;;  %v4613_v49 = vld [vmem:[%s5042_s7 + $0x1e4] sm:$0xf]  ;;  %v4090_v54 = vor.u32 %v4581_v45, %v4087_v46 }
  0x40   : > { %v3989_v7 = vld [vmem:[%s5042_s7 + $0x20] sm:$0xf]  ;;  %v4559_v8 = vld [vmem:[%s5042_s7 + $0x2c] sm:$0xf0]  ;;  %v4390_v10 = vor.u32 %v4659_v3, %v4389_v2  ;;  %1732 = vmatpush.bf16.msra.mxu1 %v4134_v5  ;;  %v4215_v50 = vld [vmem:[%s5042_s7 + $0x1f0] sm:$0xf0] }
  0x41   : > { %v4117_v9 = vld [vmem:[%s5042_s7 + $0x120] sm:$0xf]  ;;  %v4591_v11 = vld [vmem:[%s5042_s7 + $0x12c] sm:$0xf0]  ;;  %v3990_v17 = vor.u32 %v4559_v8, %v3989_v7  ;;  %1821 = vmatpush.bf16.msra.mxu2 %v4262_v6  ;;  %6071 = vst [vmem:[#allocation13_spill] sm:$0xff] %v5122_v51  ;;  %v4218_v55 = vor.u32 %v4613_v49, %v4215_v50 }
  0x42   : > { %v4245_v12 = vld [vmem:[%s5042_s7 + $0x220] sm:$0xf]  ;;  %v4623_v13 = vld [vmem:[%s5042_s7 + $0x22c] sm:$0xf0]  ;;  %v4118_v21 = vor.u32 %v4591_v11, %v4117_v9  ;;  %1910 = vmatpush.bf16.msra.mxu3 %v4390_v10  ;;  %6072 = vst [vmem:[#allocation14_spill] sm:$0xff] %v5124_v52 }
  0x43   : > { %v4373_v14 = vld [vmem:[%s5042_s7 + $0x320] sm:$0xf]  ;;  %v4655_v15 = vld [vmem:[%s5042_s7 + $0x32c] sm:$0xf0]  ;;  %v4246_v22 = vor.u32 %v4623_v13, %v4245_v12  ;;  %1644 = vmatpush.bf16.msra.mxu0 %v3990_v17  ;;  %6073 = vst [vmem:[#allocation15_spill] sm:$0xff] %v5126_v53 }
  0x44   : > { %v3973_v16 = vld [vmem:[%s5042_s7] sm:$0xf]  ;;  %v4555_v18 = vld [vmem:[%s5042_s7 + $0xc] sm:$0xf0]  ;;  %v4374_v26 = vor.u32 %v4655_v15, %v4373_v14  ;;  %1733 = vmatpush.bf16.msra.mxu1 %v4118_v21  ;;  %v4641_v56 = vld [vmem:[%s5042_s7 + $0x2c4] sm:$0xf] }
  0x45   : > { %v4101_v19 = vld [vmem:[%s5042_s7 + $0x100] sm:$0xf]  ;;  %v4587_v20 = vld [vmem:[%s5042_s7 + $0x10c] sm:$0xf0]  ;;  %v3974_v33 = vor.u32 %v4555_v18, %v3973_v16  ;;  %1822 = vmatpush.bf16.msra.mxu2 %v4246_v22  ;;  %v4327_v57 = vld [vmem:[%s5042_s7 + $0x2d0] sm:$0xf0] }
  0x46   : > { %v4229_v23 = vld [vmem:[%s5042_s7 + $0x200] sm:$0xf]  ;;  %v4619_v24 = vld [vmem:[%s5042_s7 + $0x20c] sm:$0xf0]  ;;  %v4102_v37 = vor.u32 %v4587_v20, %v4101_v19  ;;  %1911 = vmatpush.bf16.msra.mxu3 %v4374_v26  ;;  %v4673_v58 = vld [vmem:[%s5042_s7 + $0x3c4] sm:$0xf]  ;;  %v4330_v59 = vor.u32 %v4641_v56, %v4327_v57 }
  0x47   : > { %v4357_v25 = vld [vmem:[%s5042_s7 + $0x300] sm:$0xf]  ;;  %v4651_v27 = vld [vmem:[%s5042_s7 + $0x30c] sm:$0xf0]  ;;  %v4230_v38 = vor.u32 %v4619_v24, %v4229_v23  ;;  %1645 = vmatpush.bf16.msra.mxu0 %v3974_v33  ;;  %v4455_v60 = vld [vmem:[%s5042_s7 + $0x3d0] sm:$0xf0] }
  0x48   : > { %v3717_v28 = vld [vmem:[#allocation3] sm:$0xf]  ;;  %v4491_v29 = vld [vmem:[#allocation3 + $0xc] sm:$0xf0]  ;;  %v4358_v42 = vor.u32 %v4651_v27, %v4357_v25  ;;  %1734 = vmatpush.bf16.msra.mxu1 %v4102_v37  ;;  %v4577_v61 = vld [vmem:[%s5042_s7 + $0xc4] sm:$0xf]  ;;  %v4458_v63 = vor.u32 %v4673_v58, %v4455_v60 }
  0x49   : > { %v5118_v47 = vor.u32 %v4491_v29, %v3717_v28  ;;  %1823 = vmatpush.bf16.msra.mxu2 %v4230_v38  ;;  %v4071_v62 = vld [vmem:[%s5042_s7 + $0xd0] sm:$0xf0]  ;;  %v4609_v1 = vld [vmem:[%s5042_s7 + $0x1c4] sm:$0xf]  ;;  %v3733_v4 = vld [vmem:[#allocation3 + $0x20] sm:$0xf] }
  0x4a   : > { %1912 = vmatpush.bf16.msra.mxu3 %v4358_v42  ;;  %v4074_v0 = vor.u32 %v4577_v61, %v4071_v62  ;;  %v4199_v2 = vld [vmem:[%s5042_s7 + $0x1d0] sm:$0xf0]  ;;  %v4495_v5 = vld [vmem:[#allocation3 + $0x2c] sm:$0xf0]  ;;  %v4493_v6 = vld [vmem:[#allocation3 + $0x24] sm:$0xf] }
  0x4b   : > { %6070 = vst [vmem:[#allocation12_spill] sm:$0xff] %v5118_v47  ;;  %1646 = vmatmul.bf16.vlgmr.msra.gmra.mxu0 %v5118_v47  ;;  %1735 = vmatmul.bf16.vlgmr.msra.gmra.mxu1 %v5122_v51  ;;  %v4202_v3 = vor.u32 %v4609_v1, %v4199_v2  ;;  %v3735_v7 = vld [vmem:[#allocation3 + $0x30] sm:$0xf0]  ;;  %v3741_v8 = vld [vmem:[#allocation3 + $0x28] sm:$0xf]  ;;  %v5140_v12 = vor.u32 %v4495_v5, %v3733_v4 }
  0x4c   : > { %1824 = vmatmul.bf16.vlgmr.msra.gmra.mxu2 %v5124_v52  ;;  %1994 = vmatpush.bf16.msrb.mxu0 %v4090_v54  ;;  %v4496_v9 = vld [vmem:[#allocation3 + $0x34] sm:$0xf0]  ;;  %v4494_v10 = vld [vmem:[#allocation3 + $0x2c] sm:$0xf]  ;;  %v3743_v11 = vld [vmem:[#allocation3 + $0x38] sm:$0xf0]  ;;  %v5142_v13 = vor.u32 %v4493_v6, %v3735_v7 }
  0x4d   : > { %2172 = vmatpush.bf16.msrb.mxu2 %v4346_v44  ;;  %1913 = vmatmul.bf16.vlgmr.msra.gmra.mxu3 %v5126_v53  ;;  %v5144_v14 = vor.u32 %v4496_v9, %v3741_v8  ;;  %v5146_v15 = vor.u32 %v4494_v10, %v3743_v11  ;;  %v3749_v16 = vld [vmem:[#allocation3 + $0x40] sm:$0xf]  ;;  %v4499_v17 = vld [vmem:[#allocation3 + $0x4c] sm:$0xf0]  ;;  %v4497_v18 = vld [vmem:[#allocation3 + $0x44] sm:$0xf] }
  0x4e   : > { %2261 = vmatpush.bf16.msrb.mxu3 %v4474_v48  ;;  %2083 = vmatpush.bf16.msrb.mxu1 %v4218_v55  ;;  %v3751_v19 = vld [vmem:[#allocation3 + $0x50] sm:$0xf0]  ;;  %v3757_v20 = vld [vmem:[#allocation3 + $0x48] sm:$0xf]  ;;  %v4500_v21 = vld [vmem:[#allocation3 + $0x54] sm:$0xf0]  ;;  %v5152_v24 = vor.u32 %v4499_v17, %v3749_v16 }
  0x4f   : > { %v4498_v22 = vld [vmem:[#allocation3 + $0x4c] sm:$0xf]  ;;  %v3759_v23 = vld [vmem:[#allocation3 + $0x58] sm:$0xf0]  ;;  %v5154_v25 = vor.u32 %v4497_v18, %v3751_v19  ;;  %v5156_v26 = vor.u32 %v4500_v21, %v3757_v20  ;;  %v4637_v28 = vld [vmem:[%s5042_s7 + $0x2a4] sm:$0xf] }
  0x50   : > { %1995 = vmatpush.bf16.msrb.mxu0 %v4074_v0  ;;  %v5158_v27 = vor.u32 %v4498_v22, %v3759_v23  ;;  %v4311_v29 = vld [vmem:[%s5042_s7 + $0x2b0] sm:$0xf0]  ;;  %v4669_v30 = vld [vmem:[%s5042_s7 + $0x3a4] sm:$0xf]  ;;  %v3765_v40 = vld [vmem:[#allocation3 + $0x60] sm:$0xf] }
  0x51   : > { %2173 = vmatpush.bf16.msrb.mxu2 %v4330_v59  ;;  %6074 = vst [vmem:[#allocation16_spill] sm:$0xff] %v5154_v25  ;;  %v4314_v31 = vor.u32 %v4637_v28, %v4311_v29  ;;  %v4439_v32 = vld [vmem:[%s5042_s7 + $0x3b0] sm:$0xf0]  ;;  %v4573_v33 = vld [vmem:[%s5042_s7 + $0xa4] sm:$0xf] }
  0x52   : > { %2262 = vmatpush.bf16.msrb.mxu3 %v4458_v63  ;;  %2084 = vmatpush.bf16.msrb.mxu1 %v4202_v3  ;;  %6075 = vst [vmem:[#allocation17_spill] sm:$0xff] %v5156_v26  ;;  %v4055_v34 = vld [vmem:[%s5042_s7 + $0xb0] sm:$0xf0]  ;;  %v4442_v35 = vor.u32 %v4669_v30, %v4439_v32  ;;  %v4605_v37 = vld [vmem:[%s5042_s7 + $0x1a4] sm:$0xf] }
  0x53   : > { %6076 = vst [vmem:[#allocation18_spill] sm:$0xff] %v5158_v27  ;;  %v4058_v36 = vor.u32 %v4573_v33, %v4055_v34  ;;  %v4183_v38 = vld [vmem:[%s5042_s7 + $0x1b0] sm:$0xf0]  ;;  %v4503_v41 = vld [vmem:[#allocation3 + $0x6c] sm:$0xf0] }
  0x54   : > { %v4186_v39 = vor.u32 %v4605_v37, %v4183_v38  ;;  %v4501_v42 = vld [vmem:[#allocation3 + $0x64] sm:$0xf]  ;;  %v3767_v43 = vld [vmem:[#allocation3 + $0x70] sm:$0xf0]  ;;  %v3773_v44 = vld [vmem:[#allocation3 + $0x68] sm:$0xf]  ;;  %v5172_v49 = vor.u32 %v4503_v41, %v3765_v40 }
  0x55   : > { %2174 = vmatpush.bf16.msrb.mxu2 %v4314_v31  ;;  %1996 = vmatpush.bf16.msrb.mxu0 %v4058_v36  ;;  %v4504_v45 = vld [vmem:[#allocation3 + $0x74] sm:$0xf0]  ;;  %v4502_v46 = vld [vmem:[#allocation3 + $0x6c] sm:$0xf]  ;;  %v3775_v48 = vld [vmem:[#allocation3 + $0x78] sm:$0xf0]  ;;  %v5174_v50 = vor.u32 %v4501_v42, %v3767_v43 }
  0x56   : > { %2263 = vmatpush.bf16.msrb.mxu3 %v4442_v35  ;;  %2085 = vmatpush.bf16.msrb.mxu1 %v4186_v39  ;;  %v5176_v54 = vor.u32 %v4504_v45, %v3773_v44  ;;  %v5178_v55 = vor.u32 %v4502_v46, %v3775_v48  ;;  %v3781_v56 = vld [vmem:[#allocation3 + $0x80] sm:$0xf]  ;;  %v4507_v57 = vld [vmem:[#allocation3 + $0x8c] sm:$0xf0]  ;;  %v4505_v58 = vld [vmem:[#allocation3 + $0x84] sm:$0xf] }
  0x57   : > { %v3783_v59 = vld [vmem:[#allocation3 + $0x90] sm:$0xf0]  ;;  %v3789_v60 = vld [vmem:[#allocation3 + $0x88] sm:$0xf]  ;;  %v4508_v61 = vld [vmem:[#allocation3 + $0x94] sm:$0xf0]  ;;  %v5184_v0 = vor.u32 %v4507_v57, %v3781_v56 }
  0x58   : > { %v4506_v62 = vld [vmem:[#allocation3 + $0x8c] sm:$0xf]  ;;  %v3791_v63 = vld [vmem:[#allocation3 + $0x98] sm:$0xf0]  ;;  %v5186_v1 = vor.u32 %v4505_v58, %v3783_v59  ;;  %v5188_v2 = vor.u32 %v4508_v61, %v3789_v60  ;;  %v4633_v4 = vld [vmem:[%s5042_s7 + $0x284] sm:$0xf] }
  0x59   : > { %v5190_v3 = vor.u32 %v4506_v62, %v3791_v63  ;;  %v4295_v5 = vld [vmem:[%s5042_s7 + $0x290] sm:$0xf0]  ;;  %v4665_v6 = vld [vmem:[%s5042_s7 + $0x384] sm:$0xf]  ;;  %v3797_v20 = vld [vmem:[#allocation3 + $0xa0] sm:$0xf] }
  0x5a   : > { %6077 = vst [vmem:[#allocation19_spill] sm:$0xff] %v5186_v1  ;;  %v4298_v7 = vor.u32 %v4633_v4, %v4295_v5  ;;  %v4423_v8 = vld [vmem:[%s5042_s7 + $0x390] sm:$0xf0]  ;;  %v4569_v9 = vld [vmem:[%s5042_s7 + $0x84] sm:$0xf] }
  0x5b   : > { %1651 = vmatmul.bf16.gmra.mxu0 %v5140_v12  ;;  %1740 = vmatmul.bf16.gmra.mxu1 %v5142_v13  ;;  %6078 = vst [vmem:[#allocation20_spill] sm:$0xff] %v5188_v2  ;;  %v4039_v10 = vld [vmem:[%s5042_s7 + $0x90] sm:$0xf0]  ;;  %v4426_v11 = vor.u32 %v4665_v6, %v4423_v8  ;;  %v4601_v17 = vld [vmem:[%s5042_s7 + $0x184] sm:$0xf] }
  0x5c   : > { %1829 = vmatmul.bf16.gmra.mxu2 %v5144_v14  ;;  %6079 = vst [vmem:[#allocation21_spill] sm:$0xff] %v5190_v3  ;;  %v4042_v16 = vor.u32 %v4569_v9, %v4039_v10  ;;  %v4167_v18 = vld [vmem:[%s5042_s7 + $0x190] sm:$0xf0]  ;;  %v4511_v21 = vld [vmem:[#allocation3 + $0xac] sm:$0xf0] }
  0x5d   : > { %1918 = vmatmul.bf16.gmra.mxu3 %v5146_v15  ;;  %2175 = vmatpush.bf16.msrb.mxu2 %v4298_v7  ;;  %v4170_v19 = vor.u32 %v4601_v17, %v4167_v18  ;;  %v4509_v22 = vld [vmem:[#allocation3 + $0xa4] sm:$0xf]  ;;  %v3799_v23 = vld [vmem:[#allocation3 + $0xb0] sm:$0xf0]  ;;  %v3805_v28 = vld [vmem:[#allocation3 + $0xa8] sm:$0xf]  ;;  %v5204_v32 = vor.u32 %v4511_v21, %v3797_v20 }
  0x5e   : > { %2264 = vmatpush.bf16.msrb.mxu3 %v4426_v11  ;;  %1997 = vmatpush.bf16.msrb.mxu0 %v4042_v16  ;;  %v4512_v29 = vld [vmem:[#allocation3 + $0xb4] sm:$0xf0]  ;;  %v4510_v30 = vld [vmem:[#allocation3 + $0xac] sm:$0xf]  ;;  %v3807_v31 = vld [vmem:[#allocation3 + $0xb8] sm:$0xf0]  ;;  %v5206_v33 = vor.u32 %v4509_v22, %v3799_v23 }
  0x5f   : > { %2086 = vmatpush.bf16.msrb.mxu1 %v4170_v19  ;;  %v5208_v34 = vor.u32 %v4512_v29, %v3805_v28  ;;  %v5210_v35 = vor.u32 %v4510_v30, %v3807_v31  ;;  %v3813_v36 = vld [vmem:[#allocation3 + $0xc0] sm:$0xf]  ;;  %v4515_v37 = vld [vmem:[#allocation3 + $0xcc] sm:$0xf0]  ;;  %v4513_v38 = vld [vmem:[#allocation3 + $0xc4] sm:$0xf] }
  0x60   : > { %v3815_v39 = vld [vmem:[#allocation3 + $0xd0] sm:$0xf0]  ;;  %v3821_v40 = vld [vmem:[#allocation3 + $0xc8] sm:$0xf]  ;;  %v4516_v41 = vld [vmem:[#allocation3 + $0xd4] sm:$0xf0]  ;;  %v5216_v44 = vor.u32 %v4515_v37, %v3813_v36 }
  0x61   : > { %v4514_v42 = vld [vmem:[#allocation3 + $0xcc] sm:$0xf]  ;;  %v3823_v43 = vld [vmem:[#allocation3 + $0xd8] sm:$0xf0]  ;;  %v5218_v45 = vor.u32 %v4513_v38, %v3815_v39  ;;  %v5220_v46 = vor.u32 %v4516_v41, %v3821_v40  ;;  %v4629_v56 = vld [vmem:[%s5042_s7 + $0x264] sm:$0xf] }
  0x62   : > { %6080 = vst [vmem:[#allocation22_spill] sm:$0xff] %v5216_v44  ;;  %v5222_v48 = vor.u32 %v4514_v42, %v3823_v43  ;;  %v4279_v57 = vld [vmem:[%s5042_s7 + $0x270] sm:$0xf0]  ;;  %v4661_v58 = vld [vmem:[%s5042_s7 + $0x364] sm:$0xf] }
  0x63   : > { %6081 = vst [vmem:[#allocation23_spill] sm:$0xff] %v5218_v45  ;;  %v4282_v59 = vor.u32 %v4629_v56, %v4279_v57  ;;  %v4407_v60 = vld [vmem:[%s5042_s7 + $0x370] sm:$0xf0]  ;;  %v4565_v62 = vld [vmem:[%s5042_s7 + $0x64] sm:$0xf] }
  0x64   : > { %6082 = vst [vmem:[#allocation24_spill] sm:$0xff] %v5220_v46  ;;  %v4410_v61 = vor.u32 %v4661_v58, %v4407_v60  ;;  %v4023_v63 = vld [vmem:[%s5042_s7 + $0x70] sm:$0xf0]  ;;  %v4597_v4 = vld [vmem:[%s5042_s7 + $0x164] sm:$0xf] }
  0x65   : > { %6083 = vst [vmem:[#allocation25_spill] sm:$0xff] %v5222_v48  ;;  %2176 = vmatpush.bf16.msrb.mxu2 %v4282_v59  ;;  %v4026_v5 = vor.u32 %v4565_v62, %v4023_v63  ;;  %v4151_v6 = vld [vmem:[%s5042_s7 + $0x170] sm:$0xf0]  ;;  %v3829_v7 = vld [vmem:[#allocation3 + $0xe0] sm:$0xf] }
  0x66   : > { %2265 = vmatpush.bf16.msrb.mxu3 %v4410_v61  ;;  %v4519_v8 = vld [vmem:[#allocation3 + $0xec] sm:$0xf0]  ;;  %v4517_v9 = vld [vmem:[#allocation3 + $0xe4] sm:$0xf]  ;;  %v4154_v10 = vor.u32 %v4597_v4, %v4151_v6  ;;  %v3831_v11 = vld [vmem:[#allocation3 + $0xf0] sm:$0xf0] }
  0x67   : > { %v3837_v16 = vld [vmem:[#allocation3 + $0xe8] sm:$0xf]  ;;  %v4520_v17 = vld [vmem:[#allocation3 + $0xf4] sm:$0xf0]  ;;  %1998 = vmatpush.bf16.msrb.mxu0 %v4026_v5  ;;  %v4518_v18 = vld [vmem:[#allocation3 + $0xec] sm:$0xf]  ;;  %v5236_v20 = vor.u32 %v4519_v8, %v3829_v7  ;;  %v5238_v21 = vor.u32 %v4517_v9, %v3831_v11 }
  0x68   : > { %v3839_v19 = vld [vmem:[#allocation3 + $0xf8] sm:$0xf0]  ;;  %2087 = vmatpush.bf16.msrb.mxu1 %v4154_v10  ;;  %v5240_v22 = vor.u32 %v4520_v17, %v3837_v16  ;;  %v3845_v28 = vld [vmem:[#allocation3 + $0x100] sm:$0xf]  ;;  %v4523_v29 = vld [vmem:[#allocation3 + $0x10c] sm:$0xf0] }
  0x69   : > { %v5242_v23 = vor.u32 %v4518_v18, %v3839_v19  ;;  %v4521_v30 = vld [vmem:[#allocation3 + $0x104] sm:$0xf]  ;;  %v3847_v31 = vld [vmem:[#allocation3 + $0x110] sm:$0xf0]  ;;  %v3853_v36 = vld [vmem:[#allocation3 + $0x108] sm:$0xf]  ;;  %v5248_v40 = vor.u32 %v4523_v29, %v3845_v28 }
  0x6a   : > { %v4524_v37 = vld [vmem:[#allocation3 + $0x114] sm:$0xf0]  ;;  %v4522_v38 = vld [vmem:[#allocation3 + $0x10c] sm:$0xf]  ;;  %v3855_v39 = vld [vmem:[#allocation3 + $0x118] sm:$0xf0]  ;;  %v5250_v42 = vor.u32 %v4521_v30, %v3847_v31 }
  0x6b   : > { %1656 = vmatmul.bf16.gmra.mxu0 %v5152_v24  ;;  %1745 = vmatmul.bf16.gmra.mxu1 %v5154_v25  ;;  %v5252_v43 = vor.u32 %v4524_v37, %v3853_v36  ;;  %v5254_v57 = vor.u32 %v4522_v38, %v3855_v39  ;;  %v4625_v59 = vld [vmem:[%s5042_s7 + $0x244] sm:$0xf]  ;;  %v4263_v60 = vld [vmem:[%s5042_s7 + $0x250] sm:$0xf0]  ;;  %v3861_v29 = vld [vmem:[#allocation3 + $0x120] sm:$0xf] }
  0x6c   : > { %1834 = vmatmul.bf16.gmra.mxu2 %v5156_v26  ;;  %v4657_v61 = vld [vmem:[%s5042_s7 + $0x344] sm:$0xf]  ;;  %v4266_v62 = vor.u32 %v4625_v59, %v4263_v60  ;;  %v4391_v63 = vld [vmem:[%s5042_s7 + $0x350] sm:$0xf0]  ;;  %v4527_v30 = vld [vmem:[#allocation3 + $0x12c] sm:$0xf0] }
  0x6d   : > { %1923 = vmatmul.bf16.gmra.mxu3 %v5158_v27  ;;  %v4394_v5 = vor.u32 %v4657_v61, %v4391_v63  ;;  %v4561_v16 = vld [vmem:[%s5042_s7 + $0x44] sm:$0xf]  ;;  %v4007_v17 = vld [vmem:[%s5042_s7 + $0x50] sm:$0xf0]  ;;  %v3869_v38 = vld [vmem:[#allocation3 + $0x128] sm:$0xf]  ;;  %v5270_v59 = vor.u32 %v4527_v30, %v3861_v29 }
  0x6e   : > { %2177 = vmatpush.bf16.msrb.mxu2 %v4266_v62  ;;  %v4593_v18 = vld [vmem:[%s5042_s7 + $0x144] sm:$0xf]  ;;  %v4010_v19 = vor.u32 %v4561_v16, %v4007_v17  ;;  %v4135_v28 = vld [vmem:[%s5042_s7 + $0x150] sm:$0xf0]  ;;  %v4528_v39 = vld [vmem:[#allocation3 + $0x134] sm:$0xf0] }
  0x6f   : > { %2266 = vmatpush.bf16.msrb.mxu3 %v4394_v5  ;;  %v4525_v31 = vld [vmem:[#allocation3 + $0x124] sm:$0xf]  ;;  %v4138_v36 = vor.u32 %v4593_v18, %v4135_v28  ;;  %v3863_v37 = vld [vmem:[#allocation3 + $0x130] sm:$0xf0]  ;;  %v3877_v29 = vld [vmem:[#allocation3 + $0x140] sm:$0xf] }
  0x70   : > { %1999 = vmatpush.bf16.msrb.mxu0 %v4010_v19  ;;  %v5272_v63 = vor.u32 %v4525_v31, %v3863_v37  ;;  %v4531_v30 = vld [vmem:[#allocation3 + $0x14c] sm:$0xf0]  ;;  %v4529_v31 = vld [vmem:[#allocation3 + $0x144] sm:$0xf]  ;;  %v3885_v37 = vld [vmem:[#allocation3 + $0x148] sm:$0xf] }
  0x71   : > { %2088 = vmatpush.bf16.msrb.mxu1 %v4138_v36  ;;  %v3879_v36 = vld [vmem:[#allocation3 + $0x150] sm:$0xf0] }
  0x7b   : > { %1661 = vmatmul.bf16.gmra.mxu0 %v5172_v49  ;;  %1750 = vmatmul.bf16.gmra.mxu1 %v5174_v50 }
  0x7c   : > { %1839 = vmatmul.bf16.gmra.mxu2 %v5176_v54 }
  0x7d   : > { %1928 = vmatmul.bf16.gmra.mxu3 %v5178_v55 }
  0x8b   : > { %1666 = vmatmul.bf16.gmra.mxu0 %v5184_v0  ;;  %1755 = vmatmul.bf16.gmra.mxu1 %v5186_v1 }
  0x8c   : > { %1844 = vmatmul.bf16.gmra.mxu2 %v5188_v2 }
  0x8d   : > { %1933 = vmatmul.bf16.gmra.mxu3 %v5190_v3 }
  0x9b   : > { %1671 = vmatmul.bf16.gmra.mxu0 %v5204_v32  ;;  %1760 = vmatmul.bf16.gmra.mxu1 %v5206_v33 }
  0x9c   : > { %1849 = vmatmul.bf16.gmra.mxu2 %v5208_v34 }
  0x9d   : > { %1938 = vmatmul.bf16.gmra.mxu3 %v5210_v35 }
  0xab   : > { %1676 = vmatmul.bf16.gmra.mxu0 %v5216_v44  ;;  %1765 = vmatmul.bf16.gmra.mxu1 %v5218_v45 }
  0xac   : > { %1854 = vmatmul.bf16.gmra.mxu2 %v5220_v46 }
  0xad   : > { %1943 = vmatmul.bf16.gmra.mxu3 %v5222_v48 }
  0xbb   : > { %1681 = vmatmul.bf16.gmra.mxu0 %v5236_v20  ;;  %1770 = vmatmul.bf16.gmra.mxu1 %v5238_v21 }
  0xbc   : > { %1859 = vmatmul.bf16.gmra.mxu2 %v5240_v22 }
  0xbd   : > { %1948 = vmatmul.bf16.gmra.mxu3 %v5242_v23 }
  0xc8   : > { %v1647_v41 = vpop.f32.mrf.mxu0  ;;  %v1736_v56 = vpop.f32.mrf.mxu1 }
  0xc9   : > { %v1737_v58 = vadd.f32 %v1736_v56, %v1647_v41  ;;  %v4526_v41 = vld [vmem:[#allocation3 + $0x12c] sm:$0xf]  ;;  %v3871_v56 = vld [vmem:[#allocation3 + $0x138] sm:$0xf0] }
  0xcb   : > { %1686 = vmatmul.bf16.gmra.mxu0 %v5248_v40  ;;  %1775 = vmatmul.bf16.gmra.mxu1 %v5250_v42 }
  0xcc   : > { %1864 = vmatmul.bf16.gmra.mxu2 %v5252_v43 }
  0xcd   : > { %1953 = vmatmul.bf16.gmra.mxu3 %v5254_v57 }
  0xcf   : > { %v1825_v4 = vpop.f32.mrf.mxu2 }
  0xd0   : > { %v1826_v6 = vadd.f32 %v1825_v4, %v1737_v58  ;;  %v1914_v7 = vpop.f32.mrf.mxu3  ;;  %v1649_v8 = vpop.f32.mrf.mxu0  ;;  %v5274_v4 = vor.u32 %v4528_v39, %v3869_v38  ;;  %v4532_v38 = vld [vmem:[#allocation3 + $0x154] sm:$0xf0]  ;;  %v4530_v39 = vld [vmem:[#allocation3 + $0x14c] sm:$0xf] }
  0xd1   : > { %v1738_v9 = vpop.f32.mrf.mxu1 }
  0xd2   : > { %v5264_v10 = vadd.f32 %v1914_v7, %v1826_v6  ;;  %v1739_v11 = vadd.f32 %v1738_v9, %v1649_v8  ;;  %6084 = vst [vmem:[#allocation26_spill] sm:$0xff] %v5274_v4  ;;  %v5276_v6 = vor.u32 %v4526_v41, %v3871_v56  ;;  %v3887_v41 = vld [vmem:[#allocation3 + $0x158] sm:$0xf0] }
  0xd4   : > { %6085 = vst [vmem:[#allocation27_spill] sm:$0xff] %v5276_v6 }
  0xd7   : > { %v1827_v58 = vpop.f32.mrf.mxu2 }
  0xd8   : > { %v1828_v60 = vadd.f32 %v1827_v58, %v1739_v11  ;;  %v1916_v61 = vpop.f32.mrf.mxu3  ;;  %v1652_v62 = vpop.f32.mrf.mxu0  ;;  %v5286_v58 = vor.u32 %v4531_v30, %v3877_v29  ;;  %v4653_v29 = vld [vmem:[%s5042_s7 + $0x324] sm:$0xf] }
  0xd9   : > { %v1741_v5 = vpop.f32.mrf.mxu1 }
  0xda   : > { %v5278_v7 = vadd.f32 %v1916_v61, %v1828_v60  ;;  %v1742_v8 = vadd.f32 %v1741_v5, %v1652_v62  ;;  %6087 = vst [vmem:[#allocation29_spill] sm:$0xff] %v5286_v58  ;;  %v5288_v5 = vor.u32 %v4529_v31, %v3879_v36  ;;  %v4375_v31 = vld [vmem:[%s5042_s7 + $0x330] sm:$0xf0] }
  0xdb   : > { %1691 = vmatmul.bf16.gmra.mxu0 %v5270_v59  ;;  %1780 = vmatmul.bf16.gmra.mxu1 %v5272_v63 }
  0xdc   : > { %1869 = vmatmul.bf16.gmra.mxu2 %v5274_v4  ;;  %6088 = vst [vmem:[#allocation30_spill] sm:$0xff] %v5288_v5 }
  0xdd   : > { %1958 = vmatmul.bf16.gmra.mxu3 %v5276_v6 }
  0xdf   : > { %v1830_v9 = vpop.f32.mrf.mxu2 }
  0xe0   : > { %v1831_v11 = vadd.f32 %v1830_v9, %v1742_v8  ;;  %v1919_v16 = vpop.f32.mrf.mxu3  ;;  %v1654_v17 = vpop.f32.mrf.mxu0  ;;  %v5290_v8 = vor.u32 %v4532_v38, %v3885_v37  ;;  %v4378_v37 = vor.u32 %v4653_v29, %v4375_v31  ;;  %v3901_v29 = vld [vmem:[#allocation3 + $0x168] sm:$0xf]  ;;  %v4534_v31 = vld [vmem:[#allocation3 + $0x16c] sm:$0xf] }
  0xe1   : > { %v1743_v18 = vpop.f32.mrf.mxu1 }
  0xe2   : > { %v5284_v19 = vadd.f32 %v1919_v16, %v1831_v11  ;;  %v1744_v28 = vadd.f32 %v1743_v18, %v1654_v17  ;;  %6089 = vst [vmem:[#allocation31_spill] sm:$0xff] %v5290_v8  ;;  %v5292_v11 = vor.u32 %v4530_v39, %v3887_v41  ;;  %v4621_v18 = vld [vmem:[%s5042_s7 + $0x224] sm:$0xf]  ;;  %2267 = vmatpush.bf16.msrb.mxu3 %v4378_v37 }
  0xe4   : > { %6086 = vst [vmem:[#allocation28_spill] sm:$0xff] %v5284_v19  ;;  %v3895_v19 = vld [vmem:[#allocation3 + $0x170] sm:$0xf0] }
  0xe5   : > { %6090 = vst [vmem:[#allocation32_spill] sm:$0xff] %v5292_v11 }
  0xe7   : > { %v1832_v56 = vpop.f32.mrf.mxu2 }
  0xe8   : > { %v1833_v60 = vadd.f32 %v1832_v56, %v1744_v28  ;;  %v1921_v61 = vpop.f32.mrf.mxu3  ;;  %v1657_v62 = vpop.f32.mrf.mxu0  ;;  %v4247_v28 = vld [vmem:[%s5042_s7 + $0x230] sm:$0xf0] }
  0xe9   : > { %v1746_v9 = vpop.f32.mrf.mxu1  ;;  %v4250_v30 = vor.u32 %v4621_v18, %v4247_v28  ;;  %v4535_v18 = vld [vmem:[#allocation3 + $0x16c] sm:$0xf0]  ;;  %v4533_v28 = vld [vmem:[#allocation3 + $0x164] sm:$0xf] }
  0xea   : > { %v5294_v16 = vadd.f32 %v1921_v61, %v1833_v60  ;;  %v1747_v17 = vadd.f32 %v1746_v9, %v1657_v62  ;;  %v4557_v62 = vld [vmem:[%s5042_s7 + $0x24] sm:$0xf]  ;;  %v3991_v9 = vld [vmem:[%s5042_s7 + $0x30] sm:$0xf0] }
  0xeb   : > { %1696 = vmatmul.bf16.gmra.mxu0 %v5286_v58  ;;  %1785 = vmatmul.bf16.gmra.mxu1 %v5288_v5  ;;  %v4119_v5 = vld [vmem:[%s5042_s7 + $0x130] sm:$0xf0] }
  0xec   : > { %6091 = vst [vmem:[#allocation33_spill] sm:$0xff] %v5294_v16  ;;  %1874 = vmatmul.bf16.gmra.mxu2 %v5290_v8  ;;  %v3994_v8 = vor.u32 %v4557_v62, %v3991_v9  ;;  %v3893_v16 = vld [vmem:[#allocation3 + $0x160] sm:$0xf] }
  0xed   : > { %1963 = vmatmul.bf16.gmra.mxu3 %v5292_v11  ;;  %2178 = vmatpush.bf16.msrb.mxu2 %v4250_v30  ;;  %v4589_v11 = vld [vmem:[%s5042_s7 + $0x124] sm:$0xf]  ;;  %v3903_v30 = vld [vmem:[#allocation3 + $0x178] sm:$0xf0]  ;;  %v5310_v37 = vor.u32 %v4535_v18, %v3893_v16 }
  0xee   : > { %v4122_v58 = vor.u32 %v4589_v11, %v4119_v5  ;;  %2000 = vmatpush.bf16.msrb.mxu0 %v3994_v8 }
  0xef   : > { %v1835_v36 = vpop.f32.mrf.mxu2  ;;  %6093 = vst [vmem:[#allocation35_spill] sm:$0xff] %v5310_v37 }
  0xf0   : > { %v1836_v38 = vadd.f32 %v1835_v36, %v1747_v17  ;;  %v1924_v39 = vpop.f32.mrf.mxu3  ;;  %v1659_v41 = vpop.f32.mrf.mxu0  ;;  %v4536_v17 = vld [vmem:[#allocation3 + $0x174] sm:$0xf0]  ;;  %2089 = vmatpush.bf16.msrb.mxu1 %v4122_v58 }
  0xf1   : > { %v1748_v56 = vpop.f32.mrf.mxu1  ;;  %v5314_v62 = vor.u32 %v4536_v17, %v3901_v29  ;;  %v3909_v29 = vld [vmem:[#allocation3 + $0x180] sm:$0xf]  ;;  %v4539_v17 = vld [vmem:[#allocation3 + $0x18c] sm:$0xf0] }
  0xf2   : > { %v5304_v60 = vadd.f32 %v1924_v39, %v1836_v38  ;;  %v1749_v61 = vadd.f32 %v1748_v56, %v1659_v41  ;;  %v5312_v56 = vor.u32 %v4533_v28, %v3895_v19 }
  0xf3   : > { %6095 = vst [vmem:[#allocation37_spill] sm:$0xff] %v5314_v62 }
  0xf4   : > { %6092 = vst [vmem:[#allocation34_spill] sm:$0xff] %v5304_v60  ;;  %v5316_v60 = vor.u32 %v4534_v31, %v3903_v30  ;;  %v4537_v31 = vld [vmem:[#allocation3 + $0x184] sm:$0xf]  ;;  %v3911_v30 = vld [vmem:[#allocation3 + $0x190] sm:$0xf0] }
  0xf5   : > { %6094 = vst [vmem:[#allocation36_spill] sm:$0xff] %v5312_v56 }
  0xf6   : > { %6096 = vst [vmem:[#allocation38_spill] sm:$0xff] %v5316_v60 }
  0xf7   : > { %v1837_v36 = vpop.f32.mrf.mxu2 }
  0xf8   : > { %v1838_v38 = vadd.f32 %v1837_v36, %v1749_v61  ;;  %v1926_v39 = vpop.f32.mrf.mxu3  ;;  %v1662_v41 = vpop.f32.mrf.mxu0  ;;  %v3917_v36 = vld [vmem:[#allocation3 + $0x188] sm:$0xf] }
  0xf9   : > { %v1751_v9 = vpop.f32.mrf.mxu1 }
  0xfa   : > { %v5318_v5 = vadd.f32 %v1926_v39, %v1838_v38  ;;  %v1752_v11 = vadd.f32 %v1751_v9, %v1662_v41  ;;  %v4540_v38 = vld [vmem:[#allocation3 + $0x194] sm:$0xf0]  ;;  %v4538_v39 = vld [vmem:[#allocation3 + $0x18c] sm:$0xf]  ;;  %v3919_v41 = vld [vmem:[#allocation3 + $0x198] sm:$0xf0] }
  0xfb   : > { %1701 = vmatmul.bf16.gmra.mxu0 %v5310_v37  ;;  %1790 = vmatmul.bf16.gmra.mxu1 %v5312_v56  ;;  %v3927_v37 = vld [vmem:[#allocation3 + $0x1b0] sm:$0xf0] }
  0xfc   : > { %6097 = vst [vmem:[#allocation39_spill] sm:$0xff] %v5318_v5  ;;  %1879 = vmatmul.bf16.gmra.mxu2 %v5314_v62 }
  0xfd   : > { %1968 = vmatmul.bf16.gmra.mxu3 %v5316_v60  ;;  %v5326_v60 = vor.u32 %v4539_v17, %v3909_v29  ;;  %v4231_v29 = vld [vmem:[%s5042_s7 + $0x210] sm:$0xf0]  ;;  %v4649_v17 = vld [vmem:[%s5042_s7 + $0x304] sm:$0xf] }
  0xff   : > { %v1840_v58 = vpop.f32.mrf.mxu2  ;;  %6099 = vst [vmem:[#allocation41_spill] sm:$0xff] %v5326_v60 }
 0x100   : > { %v1841_v8 = vadd.f32 %v1840_v58, %v1752_v11  ;;  %v1929_v19 = vpop.f32.mrf.mxu3  ;;  %v1664_v16 = vpop.f32.mrf.mxu0 }
 0x101   : > { %v1753_v61 = vpop.f32.mrf.mxu1 }
 0x102   : > { %v5324_v18 = vadd.f32 %v1929_v19, %v1841_v8  ;;  %v1754_v28 = vadd.f32 %v1753_v61, %v1664_v16  ;;  %v5328_v19 = vor.u32 %v4537_v31, %v3911_v30  ;;  %v5330_v16 = vor.u32 %v4540_v38, %v3917_v36  ;;  %v4359_v30 = vld [vmem:[%s5042_s7 + $0x310] sm:$0xf0] }
 0x103   : > { %v4362_v38 = vor.u32 %v4649_v17, %v4359_v30  ;;  %v3933_v17 = vld [vmem:[#allocation3 + $0x1a8] sm:$0xf]  ;;  %v4542_v30 = vld [vmem:[#allocation3 + $0x1ac] sm:$0xf] }
 0x104   : > { %6098 = vst [vmem:[#allocation40_spill] sm:$0xff] %v5324_v18  ;;  %v5332_v18 = vor.u32 %v4538_v39, %v3919_v41 }
 0x105   : > { %6100 = vst [vmem:[#allocation42_spill] sm:$0xff] %v5328_v19  ;;  %2268 = vmatpush.bf16.msrb.mxu3 %v4362_v38 }
 0x106   : > { %6101 = vst [vmem:[#allocation43_spill] sm:$0xff] %v5330_v16 }
 0x107   : > { %v1842_v9 = vpop.f32.mrf.mxu2  ;;  %6102 = vst [vmem:[#allocation44_spill] sm:$0xff] %v5332_v18 }
 0x108   : > { %v1843_v11 = vadd.f32 %v1842_v9, %v1754_v28  ;;  %v1931_v58 = vpop.f32.mrf.mxu3  ;;  %v1667_v8 = vpop.f32.mrf.mxu0  ;;  %v4617_v28 = vld [vmem:[%s5042_s7 + $0x204] sm:$0xf] }
 0x109   : > { %v1756_v61 = vpop.f32.mrf.mxu1  ;;  %v4234_v31 = vor.u32 %v4617_v28, %v4231_v29  ;;  %v4543_v28 = vld [vmem:[#allocation3 + $0x1ac] sm:$0xf0]  ;;  %v4541_v29 = vld [vmem:[#allocation3 + $0x1a4] sm:$0xf] }
 0x10a   : > { %v5334_v62 = vadd.f32 %v1931_v58, %v1843_v11  ;;  %v1757_v56 = vadd.f32 %v1756_v61, %v1667_v8  ;;  %v4553_v61 = vld [vmem:[%s5042_s7 + $0x4] sm:$0xf] }
 0x10b   : > { %1706 = vmatmul.bf16.gmra.mxu0 %v5326_v60  ;;  %1795 = vmatmul.bf16.gmra.mxu1 %v5328_v19  ;;  %v3925_v60 = vld [vmem:[#allocation3 + $0x1a0] sm:$0xf] }
 0x10c   : > { %6103 = vst [vmem:[#allocation45_spill] sm:$0xff] %v5334_v62  ;;  %1884 = vmatmul.bf16.gmra.mxu2 %v5330_v16  ;;  %v4585_v16 = vld [vmem:[%s5042_s7 + $0x104] sm:$0xf]  ;;  %v4103_v62 = vld [vmem:[%s5042_s7 + $0x110] sm:$0xf0]  ;;  %v5350_v38 = vor.u32 %v4543_v28, %v3925_v60 }
 0x10d   : > { %1973 = vmatmul.bf16.gmra.mxu3 %v5332_v18  ;;  %2179 = vmatpush.bf16.msrb.mxu2 %v4234_v31  ;;  %v3975_v18 = vld [vmem:[%s5042_s7 + $0x10] sm:$0xf0]  ;;  %v4106_v5 = vor.u32 %v4585_v16, %v4103_v62  ;;  %v3935_v31 = vld [vmem:[#allocation3 + $0x1b8] sm:$0xf0] }
 0x10e   : > { %v3978_v19 = vor.u32 %v4553_v61, %v3975_v18  ;;  %6105 = vst [vmem:[#allocation47_spill] sm:$0xff] %v5350_v38 }
 0x10f   : > { %v1845_v36 = vpop.f32.mrf.mxu2  ;;  %2090 = vmatpush.bf16.msrb.mxu1 %v4106_v5 }
 0x110   : > { %v1846_v39 = vadd.f32 %v1845_v36, %v1757_v56  ;;  %v1934_v41 = vpop.f32.mrf.mxu3  ;;  %v1669_v9 = vpop.f32.mrf.mxu0  ;;  %v4544_v56 = vld [vmem:[#allocation3 + $0x1b4] sm:$0xf0]  ;;  %2001 = vmatpush.bf16.msrb.mxu0 %v3978_v19 }
 0x111   : > { %v1758_v11 = vpop.f32.mrf.mxu1  ;;  %v5354_v18 = vor.u32 %v4544_v56, %v3933_v17  ;;  %v3941_v17 = vld [vmem:[#allocation3 + $0x1c0] sm:$0xf]  ;;  %v4547_v56 = vld [vmem:[#allocation3 + $0x1cc] sm:$0xf0] }
 0x112   : > { %v5344_v58 = vadd.f32 %v1934_v41, %v1846_v39  ;;  %v1759_v8 = vadd.f32 %v1758_v11, %v1669_v9  ;;  %v5352_v11 = vor.u32 %v4541_v29, %v3927_v37 }
 0x113   : > { %6107 = vst [vmem:[#allocation49_spill] sm:$0xff] %v5354_v18 }
 0x114   : > { %6104 = vst [vmem:[#allocation46_spill] sm:$0xff] %v5344_v58  ;;  %v5356_v58 = vor.u32 %v4542_v30, %v3935_v31  ;;  %v4545_v30 = vld [vmem:[#allocation3 + $0x1c4] sm:$0xf]  ;;  %v3943_v31 = vld [vmem:[#allocation3 + $0x1d0] sm:$0xf0] }
 0x115   : > { %6106 = vst [vmem:[#allocation48_spill] sm:$0xff] %v5352_v11 }
 0x116   : > { %6108 = vst [vmem:[#allocation50_spill] sm:$0xff] %v5356_v58 }
 0x117   : > { %v1847_v36 = vpop.f32.mrf.mxu2 }
 0x118   : > { %v1848_v39 = vadd.f32 %v1847_v36, %v1759_v8  ;;  %v1936_v41 = vpop.f32.mrf.mxu3  ;;  %v1672_v9 = vpop.f32.mrf.mxu0  ;;  %v3949_v36 = vld [vmem:[#allocation3 + $0x1c8] sm:$0xf] }
 0x119   : > { %v1761_v61 = vpop.f32.mrf.mxu1 }
 0x11a   : > { %v5358_v62 = vadd.f32 %v1936_v41, %v1848_v39  ;;  %v1762_v16 = vadd.f32 %v1761_v61, %v1672_v9  ;;  %v4548_v39 = vld [vmem:[#allocation3 + $0x1d4] sm:$0xf0]  ;;  %v4546_v41 = vld [vmem:[#allocation3 + $0x1cc] sm:$0xf]  ;;  %v3951_v9 = vld [vmem:[#allocation3 + $0x1d8] sm:$0xf0] }
 0x11b   : > { %1711 = vmatmul.bf16.gmra.mxu0 %v5350_v38  ;;  %1800 = vmatmul.bf16.gmra.mxu1 %v5352_v11  ;;  %v3959_v38 = vld [vmem:[#allocation3 + $0x1f0] sm:$0xf0] }
 0x11c   : > { %6109 = vst [vmem:[#allocation51_spill] sm:$0xff] %v5358_v62  ;;  %1889 = vmatmul.bf16.gmra.mxu2 %v5354_v18 }
 0x11d   : > { %1978 = vmatmul.bf16.gmra.mxu3 %v5356_v58  ;;  %v5366_v58 = vor.u32 %v4547_v56, %v3941_v17  ;;  %v4648_v17 = vld [vmem:[%s5042_s7 + $0x2f4] sm:$0xf0]  ;;  %v4477_v56 = vld [vmem:[%s5042_s7 + $0x3e8] sm:$0xf] }
 0x11f   : > { %v1850_v60 = vpop.f32.mrf.mxu2  ;;  %6111 = vst [vmem:[#allocation53_spill] sm:$0xff] %v5366_v58 }
 0x120   : > { %v1851_v5 = vadd.f32 %v1850_v60, %v1762_v16  ;;  %v1939_v37 = vpop.f32.mrf.mxu3  ;;  %v1674_v19 = vpop.f32.mrf.mxu0 }
 0x121   : > { %v1763_v8 = vpop.f32.mrf.mxu1 }
 0x122   : > { %v5364_v28 = vadd.f32 %v1939_v37, %v1851_v5  ;;  %v1764_v29 = vadd.f32 %v1763_v8, %v1674_v19  ;;  %v5368_v37 = vor.u32 %v4545_v30, %v3943_v31  ;;  %v5370_v19 = vor.u32 %v4548_v39, %v3949_v36  ;;  %v4680_v31 = vld [vmem:[%s5042_s7 + $0x3f4] sm:$0xf0] }
 0x123   : > { %v4478_v39 = vor.u32 %v4680_v31, %v4477_v56  ;;  %v3965_v56 = vld [vmem:[#allocation3 + $0x1e8] sm:$0xf]  ;;  %v4550_v31 = vld [vmem:[#allocation3 + $0x1ec] sm:$0xf] }
 0x124   : > { %6110 = vst [vmem:[#allocation52_spill] sm:$0xff] %v5364_v28  ;;  %v5372_v28 = vor.u32 %v4546_v41, %v3951_v9 }
 0x125   : > { %6112 = vst [vmem:[#allocation54_spill] sm:$0xff] %v5368_v37  ;;  %2617 = vmatpush.bf16.msra.mxu3 %v4478_v39 }
 0x126   : > { %6113 = vst [vmem:[#allocation55_spill] sm:$0xff] %v5370_v19 }
 0x127   : > { %v1852_v61 = vpop.f32.mrf.mxu2  ;;  %6114 = vst [vmem:[#allocation56_spill] sm:$0xff] %v5372_v28 }
 0x128   : > { %v1853_v16 = vadd.f32 %v1852_v61, %v1764_v29  ;;  %v1941_v60 = vpop.f32.mrf.mxu3  ;;  %v1677_v5 = vpop.f32.mrf.mxu0  ;;  %v4349_v29 = vld [vmem:[%s5042_s7 + $0x2e8] sm:$0xf] }
 0x129   : > { %v1766_v8 = vpop.f32.mrf.mxu1  ;;  %v4350_v30 = vor.u32 %v4648_v17, %v4349_v29  ;;  %v4551_v29 = vld [vmem:[#allocation3 + $0x1ec] sm:$0xf0]  ;;  %v4549_v17 = vld [vmem:[#allocation3 + $0x1e4] sm:$0xf] }
 0x12a   : > { %v5374_v18 = vadd.f32 %v1941_v60, %v1853_v16  ;;  %v1767_v11 = vadd.f32 %v1766_v8, %v1677_v5  ;;  %v4093_v8 = vld [vmem:[%s5042_s7 + $0xe8] sm:$0xf] }
 0x12b   : > { %1716 = vmatmul.bf16.gmra.mxu0 %v5366_v58  ;;  %1805 = vmatmul.bf16.gmra.mxu1 %v5368_v37  ;;  %v3957_v58 = vld [vmem:[#allocation3 + $0x1e0] sm:$0xf] }
 0x12c   : > { %6115 = vst [vmem:[#allocation57_spill] sm:$0xff] %v5374_v18  ;;  %1894 = vmatmul.bf16.gmra.mxu2 %v5370_v19  ;;  %v4221_v19 = vld [vmem:[%s5042_s7 + $0x1e8] sm:$0xf]  ;;  %v4616_v18 = vld [vmem:[%s5042_s7 + $0x1f4] sm:$0xf0]  ;;  %v5390_v39 = vor.u32 %v4551_v29, %v3957_v58 }
 0x12d   : > { %1983 = vmatmul.bf16.gmra.mxu3 %v5372_v28  ;;  %2528 = vmatpush.bf16.msra.mxu2 %v4350_v30  ;;  %v4584_v28 = vld [vmem:[%s5042_s7 + $0xf4] sm:$0xf0]  ;;  %v4222_v62 = vor.u32 %v4616_v18, %v4221_v19  ;;  %v3967_v30 = vld [vmem:[#allocation3 + $0x1f8] sm:$0xf0] }
 0x12e   : > { %v4094_v37 = vor.u32 %v4584_v28, %v4093_v8 }
 0x12f   : > { %v1855_v36 = vpop.f32.mrf.mxu2  ;;  %2439 = vmatpush.bf16.msra.mxu1 %v4222_v62 }
 0x130   : > { %v1856_v41 = vadd.f32 %v1855_v36, %v1767_v11  ;;  %v1944_v9 = vpop.f32.mrf.mxu3  ;;  %v1679_v61 = vpop.f32.mrf.mxu0  ;;  %v4552_v11 = vld [vmem:[#allocation3 + $0x1f4] sm:$0xf0]  ;;  %2350 = vmatpush.bf16.msra.mxu0 %v4094_v37 }
 0x131   : > { %v1768_v16 = vpop.f32.mrf.mxu1  ;;  %v5394_v28 = vor.u32 %v4552_v11, %v3965_v56 }
 0x132   : > { %v5384_v60 = vadd.f32 %v1944_v9, %v1856_v41  ;;  %v1769_v5 = vadd.f32 %v1768_v16, %v1679_v61  ;;  %v5392_v16 = vor.u32 %v4549_v17, %v3959_v38 }
 0x134   : > { %6116 = vst [vmem:[#allocation58_spill] sm:$0xff] %v5384_v60  ;;  %v5396_v60 = vor.u32 %v4550_v31, %v3967_v30 }
 0x135   : > { %6117 = vst [vmem:[#allocation59_spill] sm:$0xff] %v5392_v16 }
 0x137   : > { %v1857_v36 = vpop.f32.mrf.mxu2 }
 0x138   : > { %v1858_v41 = vadd.f32 %v1857_v36, %v1769_v5  ;;  %v1946_v9 = vpop.f32.mrf.mxu3  ;;  %v1682_v61 = vpop.f32.mrf.mxu0 }
 0x139   : > { %v1771_v8 = vpop.f32.mrf.mxu1 }
 0x13a   : > { %v5398_v18 = vadd.f32 %v1946_v9, %v1858_v41  ;;  %v1772_v19 = vadd.f32 %v1771_v8, %v1682_v61  ;;  %v4333_v61 = vld [vmem:[%s5042_s7 + $0x2c8] sm:$0xf]  ;;  %v4644_v8 = vld [vmem:[%s5042_s7 + $0x2d4] sm:$0xf0] }
 0x13b   : > { %1721 = vmatmul.bf16.gmra.mxu0 %v5390_v39  ;;  %1810 = vmatmul.bf16.gmra.mxu1 %v5392_v16 }
 0x13c   : > { %1899 = vmatmul.bf16.gmra.mxu2 %v5394_v28 }
 0x13d   : > { %1988 = vmatmul.bf16.gmra.mxu3 %v5396_v60 }
 0x13f   : > { %v1860_v58 = vpop.f32.mrf.mxu2 }
 0x140   : > { %v1861_v62 = vadd.f32 %v1860_v58, %v1772_v19  ;;  %v1949_v38 = vpop.f32.mrf.mxu3  ;;  %v1684_v37 = vpop.f32.mrf.mxu0  ;;  %v4461_v19 = vld [vmem:[%s5042_s7 + $0x3c8] sm:$0xf]  ;;  %v4334_v58 = vor.u32 %v4644_v8, %v4333_v61 }
 0x141   : > { %v1773_v5 = vpop.f32.mrf.mxu1 }
 0x142   : > { %v5404_v29 = vadd.f32 %v1949_v38, %v1861_v62  ;;  %v1774_v17 = vadd.f32 %v1773_v5, %v1684_v37  ;;  %v4676_v62 = vld [vmem:[%s5042_s7 + $0x3d4] sm:$0xf0]  ;;  %2529 = vmatpush.bf16.msra.mxu2 %v4334_v58 }
 0x143   : > { %v4462_v37 = vor.u32 %v4676_v62, %v4461_v19 }
 0x145   : > { %2618 = vmatpush.bf16.msra.mxu3 %v4462_v37 }
 0x147   : > { %v1862_v56 = vpop.f32.mrf.mxu2 }
 0x148   : > { %v1863_v11 = vadd.f32 %v1862_v56, %v1774_v17  ;;  %v1951_v31 = vpop.f32.mrf.mxu3  ;;  %v1687_v30 = vpop.f32.mrf.mxu0 }
 0x149   : > { %v1776_v36 = vpop.f32.mrf.mxu1 }
 0x14a   : > { %v5406_v41 = vadd.f32 %v1951_v31, %v1863_v11  ;;  %v1777_v9 = vadd.f32 %v1776_v36, %v1687_v30  ;;  %v4077_v36 = vld [vmem:[%s5042_s7 + $0xc8] sm:$0xf] }
 0x14b   : > { %2002 = vmatmul.bf16.vlgmr.msrb.gmra.mxu0 %v5118_v47  ;;  %2091 = vmatmul.bf16.vlgmr.msrb.gmra.mxu1 %v5122_v51 }
 0x14c   : > { %6118 = vst [vmem:[#allocation60_spill] sm:$0xff] %v5406_v41  ;;  %2180 = vmatmul.bf16.vlgmr.msrb.gmra.mxu2 %v5124_v52  ;;  %v4205_v52 = vld [vmem:[%s5042_s7 + $0x1c8] sm:$0xf]  ;;  %v4612_v41 = vld [vmem:[%s5042_s7 + $0x1d4] sm:$0xf0] }
 0x14d   : > { %2269 = vmatmul.bf16.vlgmr.msrb.gmra.mxu3 %v5126_v53  ;;  %v4580_v53 = vld [vmem:[%s5042_s7 + $0xd4] sm:$0xf0]  ;;  %v4206_v47 = vor.u32 %v4612_v41, %v4205_v52 }
 0x14e   : > { %v4078_v51 = vor.u32 %v4580_v53, %v4077_v36 }
 0x14f   : > { %v1865_v38 = vpop.f32.mrf.mxu2  ;;  %2440 = vmatpush.bf16.msra.mxu1 %v4206_v47 }
 0x150   : > { %v1866_v5 = vadd.f32 %v1865_v38, %v1777_v9  ;;  %v1954_v17 = vpop.f32.mrf.mxu3  ;;  %v1689_v56 = vpop.f32.mrf.mxu0  ;;  %2351 = vmatpush.bf16.msra.mxu0 %v4078_v51 }
 0x151   : > { %v1778_v11 = vpop.f32.mrf.mxu1 }
 0x152   : > { %v5416_v31 = vadd.f32 %v1954_v17, %v1866_v5  ;;  %v1779_v30 = vadd.f32 %v1778_v11, %v1689_v56 }
 0x157   : > { %v1867_v61 = vpop.f32.mrf.mxu2 }
 0x158   : > { %v1868_v8 = vadd.f32 %v1867_v61, %v1779_v30  ;;  %v1956_v19 = vpop.f32.mrf.mxu3  ;;  %v1692_v9 = vpop.f32.mrf.mxu0 }
 0x159   : > { %v1781_v62 = vpop.f32.mrf.mxu1 }
 0x15a   : > { %v5422_v38 = vadd.f32 %v1956_v19, %v1868_v8  ;;  %v1782_v58 = vadd.f32 %v1781_v62, %v1692_v9  ;;  %v4317_v19 = vld [vmem:[%s5042_s7 + $0x2a8] sm:$0xf]  ;;  %v4640_v9 = vld [vmem:[%s5042_s7 + $0x2b4] sm:$0xf0] }
 0x15b   : > { %2007 = vmatmul.bf16.gmra.mxu0 %v5140_v12  ;;  %2096 = vmatmul.bf16.gmra.mxu1 %v5142_v13  ;;  %v4445_v62 = vld [vmem:[%s5042_s7 + $0x3a8] sm:$0xf] }
 0x15c   : > { %2185 = vmatmul.bf16.gmra.mxu2 %v5144_v14 }
 0x15d   : > { %2274 = vmatmul.bf16.gmra.mxu3 %v5146_v15 }
 0x15f   : > { %v1870_v53 = vpop.f32.mrf.mxu2 }
 0x160   : > { %v1871_v52 = vadd.f32 %v1870_v53, %v1782_v58  ;;  %v1959_v51 = vpop.f32.mrf.mxu3  ;;  %v1694_v47 = vpop.f32.mrf.mxu0  ;;  %v4318_v58 = vor.u32 %v4640_v9, %v4317_v19  ;;  %v4672_v53 = vld [vmem:[%s5042_s7 + $0x3b4] sm:$0xf0] }
 0x161   : > { %v1783_v41 = vpop.f32.mrf.mxu1 }
 0x162   : > { %v5428_v37 = vadd.f32 %v1959_v51, %v1871_v52  ;;  %v1784_v5 = vadd.f32 %v1783_v41, %v1694_v47  ;;  %v4446_v51 = vor.u32 %v4672_v53, %v4445_v62  ;;  %2530 = vmatpush.bf16.msra.mxu2 %v4318_v58 }
 0x164   : > { %2619 = vmatpush.bf16.msra.mxu3 %v4446_v51 }
 0x167   : > { %v1872_v17 = vpop.f32.mrf.mxu2 }
 0x168   : > { %v1873_v56 = vadd.f32 %v1872_v17, %v1784_v5  ;;  %v1961_v11 = vpop.f32.mrf.mxu3  ;;  %v1697_v30 = vpop.f32.mrf.mxu0 }
 0x169   : > { %v1786_v36 = vpop.f32.mrf.mxu1 }
 0x16a   : > { %v5430_v61 = vadd.f32 %v1961_v11, %v1873_v56  ;;  %v1787_v8 = vadd.f32 %v1786_v36, %v1697_v30  ;;  %v4061_v30 = vld [vmem:[%s5042_s7 + $0xa8] sm:$0xf]  ;;  %v4576_v36 = vld [vmem:[%s5042_s7 + $0xb4] sm:$0xf0] }
 0x16b   : > { %2012 = vmatmul.bf16.gmra.mxu0 %v5152_v24  ;;  %2101 = vmatmul.bf16.gmra.mxu1 %v5154_v25  ;;  %v4608_v25 = vld [vmem:[%s5042_s7 + $0x1b4] sm:$0xf0] }
 0x16c   : > { %6119 = vst [vmem:[#allocation61_spill] sm:$0xff] %v5430_v61  ;;  %2190 = vmatmul.bf16.gmra.mxu2 %v5156_v26  ;;  %v4062_v26 = vor.u32 %v4576_v36, %v4061_v30 }
 0x16d   : > { %2279 = vmatmul.bf16.gmra.mxu3 %v5158_v27  ;;  %v4189_v27 = vld [vmem:[%s5042_s7 + $0x1a8] sm:$0xf] }
 0x16e   : > { %v4190_v61 = vor.u32 %v4608_v25, %v4189_v27  ;;  %2352 = vmatpush.bf16.msra.mxu0 %v4062_v26 }
 0x16f   : > { %v1875_v52 = vpop.f32.mrf.mxu2 }
 0x170   : > { %v1876_v47 = vadd.f32 %v1875_v52, %v1787_v8  ;;  %v1964_v41 = vpop.f32.mrf.mxu3  ;;  %v1699_v5 = vpop.f32.mrf.mxu0  ;;  %2441 = vmatpush.bf16.msra.mxu1 %v4190_v61 }
 0x171   : > { %v1788_v17 = vpop.f32.mrf.mxu1 }
 0x172   : > { %v5440_v56 = vadd.f32 %v1964_v41, %v1876_v47  ;;  %v1789_v11 = vadd.f32 %v1788_v17, %v1699_v5 }
 0x177   : > { %v1877_v19 = vpop.f32.mrf.mxu2 }
 0x178   : > { %v1878_v9 = vadd.f32 %v1877_v19, %v1789_v11  ;;  %v1966_v62 = vpop.f32.mrf.mxu3  ;;  %v1702_v8 = vpop.f32.mrf.mxu0 }
 0x179   : > { %v1791_v53 = vpop.f32.mrf.mxu1 }
 0x17a   : > { %v5446_v52 = vadd.f32 %v1966_v62, %v1878_v9  ;;  %v1792_v58 = vadd.f32 %v1791_v53, %v1702_v8  ;;  %v4301_v62 = vld [vmem:[%s5042_s7 + $0x288] sm:$0xf]  ;;  %v4636_v8 = vld [vmem:[%s5042_s7 + $0x294] sm:$0xf0] }
 0x17b   : > { %2017 = vmatmul.bf16.gmra.mxu0 %v5172_v49  ;;  %2106 = vmatmul.bf16.gmra.mxu1 %v5174_v50  ;;  %v4429_v53 = vld [vmem:[%s5042_s7 + $0x388] sm:$0xf] }
 0x17c   : > { %2195 = vmatmul.bf16.gmra.mxu2 %v5176_v54 }
 0x17d   : > { %2284 = vmatmul.bf16.gmra.mxu3 %v5178_v55 }
 0x17f   : > { %v1880_v51 = vpop.f32.mrf.mxu2 }
 0x180   : > { %v1881_v25 = vadd.f32 %v1880_v51, %v1792_v58  ;;  %v1969_v26 = vpop.f32.mrf.mxu3  ;;  %v1704_v27 = vpop.f32.mrf.mxu0  ;;  %v4302_v58 = vor.u32 %v4636_v8, %v4301_v62  ;;  %v4668_v51 = vld [vmem:[%s5042_s7 + $0x394] sm:$0xf0] }
 0x181   : > { %v1793_v61 = vpop.f32.mrf.mxu1 }
 0x182   : > { %v5452_v47 = vadd.f32 %v1969_v26, %v1881_v25  ;;  %v1794_v41 = vadd.f32 %v1793_v61, %v1704_v27  ;;  %v4430_v26 = vor.u32 %v4668_v51, %v4429_v53  ;;  %2531 = vmatpush.bf16.msra.mxu2 %v4302_v58 }
 0x184   : > { %2620 = vmatpush.bf16.msra.mxu3 %v4430_v26 }
 0x187   : > { %v1882_v5 = vpop.f32.mrf.mxu2 }
 0x188   : > { %v1883_v17 = vadd.f32 %v1882_v5, %v1794_v41  ;;  %v1971_v11 = vpop.f32.mrf.mxu3  ;;  %v1707_v30 = vpop.f32.mrf.mxu0 }
 0x189   : > { %v1796_v36 = vpop.f32.mrf.mxu1 }
 0x18a   : > { %v5454_v19 = vadd.f32 %v1971_v11, %v1883_v17  ;;  %v1797_v9 = vadd.f32 %v1796_v36, %v1707_v30  ;;  %v4045_v30 = vld [vmem:[%s5042_s7 + $0x88] sm:$0xf]  ;;  %v4572_v36 = vld [vmem:[%s5042_s7 + $0x94] sm:$0xf0] }
 0x18b   : > { %2022 = vmatmul.bf16.gmra.mxu0 %v5184_v0  ;;  %2111 = vmatmul.bf16.gmra.mxu1 %v5186_v1  ;;  %v4604_v1 = vld [vmem:[%s5042_s7 + $0x194] sm:$0xf0] }
 0x18c   : > { %6120 = vst [vmem:[#allocation62_spill] sm:$0xff] %v5454_v19  ;;  %2200 = vmatmul.bf16.gmra.mxu2 %v5188_v2  ;;  %v4046_v2 = vor.u32 %v4572_v36, %v4045_v30 }
 0x18d   : > { %2289 = vmatmul.bf16.gmra.mxu3 %v5190_v3  ;;  %v4173_v3 = vld [vmem:[%s5042_s7 + $0x188] sm:$0xf] }
 0x18e   : > { %v4174_v19 = vor.u32 %v4604_v1, %v4173_v3  ;;  %2353 = vmatpush.bf16.msra.mxu0 %v4046_v2 }
 0x18f   : > { %v1885_v25 = vpop.f32.mrf.mxu2 }
 0x190   : > { %v1886_v27 = vadd.f32 %v1885_v25, %v1797_v9  ;;  %v1974_v61 = vpop.f32.mrf.mxu3  ;;  %v1709_v41 = vpop.f32.mrf.mxu0  ;;  %2442 = vmatpush.bf16.msra.mxu1 %v4174_v19 }
 0x191   : > { %v1798_v5 = vpop.f32.mrf.mxu1 }
 0x192   : > { %v5464_v17 = vadd.f32 %v1974_v61, %v1886_v27  ;;  %v1799_v11 = vadd.f32 %v1798_v5, %v1709_v41 }
 0x197   : > { %v1887_v62 = vpop.f32.mrf.mxu2 }
 0x198   : > { %v1888_v8 = vadd.f32 %v1887_v62, %v1799_v11  ;;  %v1976_v53 = vpop.f32.mrf.mxu3  ;;  %v1712_v9 = vpop.f32.mrf.mxu0 }
 0x199   : > { %v1801_v51 = vpop.f32.mrf.mxu1 }
 0x19a   : > { %v5470_v25 = vadd.f32 %v1976_v53, %v1888_v8  ;;  %v1802_v58 = vadd.f32 %v1801_v51, %v1712_v9  ;;  %v4285_v53 = vld [vmem:[%s5042_s7 + $0x268] sm:$0xf]  ;;  %v4632_v9 = vld [vmem:[%s5042_s7 + $0x274] sm:$0xf0] }
 0x19b   : > { %2027 = vmatmul.bf16.gmra.mxu0 %v5204_v32  ;;  %2116 = vmatmul.bf16.gmra.mxu1 %v5206_v33  ;;  %v4413_v51 = vld [vmem:[%s5042_s7 + $0x368] sm:$0xf] }
 0x19c   : > { %2205 = vmatmul.bf16.gmra.mxu2 %v5208_v34 }
 0x19d   : > { %2294 = vmatmul.bf16.gmra.mxu3 %v5210_v35 }
 0x19f   : > { %v1890_v26 = vpop.f32.mrf.mxu2 }
 0x1a0   : > { %v1891_v1 = vadd.f32 %v1890_v26, %v1802_v58  ;;  %v1979_v2 = vpop.f32.mrf.mxu3  ;;  %v1714_v3 = vpop.f32.mrf.mxu0  ;;  %v4286_v58 = vor.u32 %v4632_v9, %v4285_v53  ;;  %v4664_v26 = vld [vmem:[%s5042_s7 + $0x374] sm:$0xf0] }
 0x1a1   : > { %v1803_v19 = vpop.f32.mrf.mxu1 }
 0x1a2   : > { %v5476_v27 = vadd.f32 %v1979_v2, %v1891_v1  ;;  %v1804_v61 = vadd.f32 %v1803_v19, %v1714_v3  ;;  %v4414_v2 = vor.u32 %v4664_v26, %v4413_v51  ;;  %2532 = vmatpush.bf16.msra.mxu2 %v4286_v58 }
 0x1a4   : > { %6121 = vst [vmem:[#allocation63_spill] sm:$0xff] %v5476_v27  ;;  %2621 = vmatpush.bf16.msra.mxu3 %v4414_v2 }
 0x1a7   : > { %v1892_v41 = vpop.f32.mrf.mxu2 }
 0x1a8   : > { %v1893_v5 = vadd.f32 %v1892_v41, %v1804_v61  ;;  %v1981_v11 = vpop.f32.mrf.mxu3  ;;  %v1717_v30 = vpop.f32.mrf.mxu0 }
 0x1a9   : > { %v1806_v36 = vpop.f32.mrf.mxu1 }
 0x1aa   : > { %v5478_v62 = vadd.f32 %v1981_v11, %v1893_v5  ;;  %v1807_v8 = vadd.f32 %v1806_v36, %v1717_v30  ;;  %v4029_v30 = vld [vmem:[%s5042_s7 + $0x68] sm:$0xf]  ;;  %v4568_v36 = vld [vmem:[%s5042_s7 + $0x74] sm:$0xf0] }
 0x1ab   : > { %2032 = vmatmul.bf16.gmra.mxu0 %v5216_v44  ;;  %2121 = vmatmul.bf16.gmra.mxu1 %v5218_v45  ;;  %v4030_v45 = vor.u32 %v4568_v36, %v4029_v30  ;;  %v4269_v30 = vld [vmem:[%s5042_s7 + $0x248] sm:$0xf]  ;;  %v4628_v36 = vld [vmem:[%s5042_s7 + $0x254] sm:$0xf0] }
 0x1ac   : > { %6122 = vst [vmem:[#allocation64_spill] sm:$0xff] %v5478_v62  ;;  %2210 = vmatmul.bf16.gmra.mxu2 %v5220_v46  ;;  %v4600_v62 = vld [vmem:[%s5042_s7 + $0x174] sm:$0xf0] }
 0x1ad   : > { %2299 = vmatmul.bf16.gmra.mxu3 %v5222_v48  ;;  %v4157_v48 = vld [vmem:[%s5042_s7 + $0x168] sm:$0xf]  ;;  %2354 = vmatpush.bf16.msra.mxu0 %v4030_v45 }
 0x1ae   : > { %v4158_v27 = vor.u32 %v4600_v62, %v4157_v48 }
 0x1af   : > { %v1895_v1 = vpop.f32.mrf.mxu2 }
 0x1b0   : > { %v1896_v3 = vadd.f32 %v1895_v1, %v1807_v8  ;;  %v1984_v19 = vpop.f32.mrf.mxu3  ;;  %v1719_v61 = vpop.f32.mrf.mxu0  ;;  %2443 = vmatpush.bf16.msra.mxu1 %v4158_v27 }
 0x1b1   : > { %v1808_v41 = vpop.f32.mrf.mxu1 }
 0x1b2   : > { %v5488_v5 = vadd.f32 %v1984_v19, %v1896_v3  ;;  %v1809_v11 = vadd.f32 %v1808_v41, %v1719_v61 }
 0x1b7   : > { %v1897_v46 = vpop.f32.mrf.mxu2 }
 0x1b8   : > { %v1898_v53 = vadd.f32 %v1897_v46, %v1809_v11  ;;  %v1986_v9 = vpop.f32.mrf.mxu3  ;;  %v1722_v44 = vpop.f32.mrf.mxu0 }
 0x1b9   : > { %v1811_v51 = vpop.f32.mrf.mxu1 }
 0x1ba   : > { %v5494_v8 = vadd.f32 %v1986_v9, %v1898_v53  ;;  %v1812_v58 = vadd.f32 %v1811_v51, %v1722_v44  ;;  %v4397_v53 = vld [vmem:[%s5042_s7 + $0x348] sm:$0xf]  ;;  %v4270_v51 = vor.u32 %v4628_v36, %v4269_v30  ;;  %v4596_v36 = vld [vmem:[%s5042_s7 + $0x154] sm:$0xf0] }
 0x1bb   : > { %2037 = vmatmul.bf16.gmra.mxu0 %v5236_v20  ;;  %2126 = vmatmul.bf16.gmra.mxu1 %v5238_v21 }
 0x1bc   : > { %2215 = vmatmul.bf16.gmra.mxu2 %v5240_v22 }
 0x1bd   : > { %2304 = vmatmul.bf16.gmra.mxu3 %v5242_v23  ;;  %2533 = vmatpush.bf16.msra.mxu2 %v4270_v51 }
 0x1bf   : > { %v1900_v26 = vpop.f32.mrf.mxu2 }
 0x1c0   : > { %v1901_v1 = vadd.f32 %v1900_v26, %v1812_v58  ;;  %v1989_v46 = vpop.f32.mrf.mxu3  ;;  %v1724_v2 = vpop.f32.mrf.mxu0  ;;  %v4660_v58 = vld [vmem:[%s5042_s7 + $0x354] sm:$0xf0] }
 0x1c1   : > { %v1813_v48 = vpop.f32.mrf.mxu1 }
 0x1c2   : > { %v5500_v45 = vadd.f32 %v1989_v46, %v1901_v1  ;;  %v1814_v44 = vadd.f32 %v1813_v48, %v1724_v2  ;;  %v4398_v2 = vor.u32 %v4660_v58, %v4397_v53 }
 0x1c4   : > { %2622 = vmatpush.bf16.msra.mxu3 %v4398_v2 }
 0x1c7   : > { %v1902_v27 = vpop.f32.mrf.mxu2 }
 0x1c8   : > { %v1903_v62 = vadd.f32 %v1902_v27, %v1814_v44  ;;  %v1991_v3 = vpop.f32.mrf.mxu3  ;;  %v2003_v19 = vpop.f32.mrf.mxu0 }
 0x1c9   : > { %v2092_v61 = vpop.f32.mrf.mxu1 }
 0x1ca   : > { %v5502_v41 = vadd.f32 %v1991_v3, %v1903_v62  ;;  %v2093_v11 = vadd.f32 %v2092_v61, %v2003_v19  ;;  %v4013_v3 = vld [vmem:[%s5042_s7 + $0x48] sm:$0xf]  ;;  %v4564_v19 = vld [vmem:[%s5042_s7 + $0x54] sm:$0xf0] }
 0x1cb   : > { %2042 = vmatmul.bf16.gmra.mxu0 %v5248_v40  ;;  %2131 = vmatmul.bf16.gmra.mxu1 %v5250_v42  ;;  %v4141_v61 = vld [vmem:[%s5042_s7 + $0x148] sm:$0xf]  ;;  %v4014_v30 = vor.u32 %v4564_v19, %v4013_v3  ;;  %v6123_v19 = vld [vmem:[#allocation28_spill] sm:$0xff] }
 0x1cc   : > { %2220 = vmatmul.bf16.gmra.mxu2 %v5252_v43  ;;  %v4142_v51 = vor.u32 %v4596_v36, %v4141_v61 }
 0x1cd   : > { %2309 = vmatmul.bf16.gmra.mxu3 %v5254_v57  ;;  %2355 = vmatpush.bf16.msra.mxu0 %v4014_v30 }
 0x1ce   : > { %2444 = vmatpush.bf16.msra.mxu1 %v4142_v51  ;;  %v6124_v51 = vld [vmem:[#allocation29_spill] sm:$0xff] }
 0x1cf   : > { %v2181_v9 = vpop.f32.mrf.mxu2 }
 0x1d0   : > { %v2182_v26 = vadd.f32 %v2181_v9, %v2093_v11  ;;  %v2270_v1 = vpop.f32.mrf.mxu3  ;;  %v2005_v46 = vpop.f32.mrf.mxu0 }
 0x1d1   : > { %v2094_v48 = vpop.f32.mrf.mxu1 }
 0x1d2   : > { %v2271_v44 = vadd.f32 %v2270_v1, %v2182_v26  ;;  %v2095_v62 = vadd.f32 %v2094_v48, %v2005_v46 }
 0x1d4   : > { %v3449_v27 = vpack.c.bf16 %v2271_v44, %v5264_v10 }
 0x1d6   : > { %3513 = vst [vmem:[%s5514_s19] sm:$0xff] %v3449_v27 }
 0x1d7   : > { %v2183_v11 = vpop.f32.mrf.mxu2 }
 0x1d8   : > { %v2184_v9 = vadd.f32 %v2183_v11, %v2095_v62  ;;  %v2272_v53 = vpop.f32.mrf.mxu3  ;;  %v2008_v58 = vpop.f32.mrf.mxu0 }
 0x1d9   : > { %v2097_v26 = vpop.f32.mrf.mxu1 }
 0x1da   : > { %v2273_v1 = vadd.f32 %v2272_v53, %v2184_v9  ;;  %v2098_v46 = vadd.f32 %v2097_v26, %v2008_v58  ;;  %v6125_v26 = vld [vmem:[#allocation33_spill] sm:$0xff] }
 0x1db   : > { %2047 = vmatmul.bf16.gmra.mxu0 %v5270_v59  ;;  %2136 = vmatmul.bf16.gmra.mxu1 %v5272_v63 }
 0x1dc   : > { %v3451_v10 = vpack.c.bf16 %v2273_v1, %v5278_v7  ;;  %2225 = vmatmul.bf16.gmra.mxu2 %v5274_v4 }
 0x1dd   : > { %2314 = vmatmul.bf16.gmra.mxu3 %v5276_v6 }
 0x1de   : > { %3515 = vst [vmem:[%s5514_s19 + $0x10] sm:$0xff] %v3451_v10 }
 0x1df   : > { %v2186_v2 = vpop.f32.mrf.mxu2 }
 0x1e0   : > { %v2187_v48 = vadd.f32 %v2186_v2, %v2098_v46  ;;  %v2275_v44 = vpop.f32.mrf.mxu3  ;;  %v2010_v27 = vpop.f32.mrf.mxu0  ;;  %v6126_v46 = vld [vmem:[#allocation30_spill] sm:$0xff]  ;;  %v6127_v2 = vld [vmem:[#allocation31_spill] sm:$0xff] }
 0x1e1   : > { %v2099_v62 = vpop.f32.mrf.mxu1 }
 0x1e2   : > { %v2276_v3 = vadd.f32 %v2275_v44, %v2187_v48  ;;  %v2100_v7 = vadd.f32 %v2099_v62, %v2010_v27  ;;  %v6128_v48 = vld [vmem:[#allocation32_spill] sm:$0xff]  ;;  %v4253_v44 = vld [vmem:[%s5042_s7 + $0x228] sm:$0xf]  ;;  %v4624_v27 = vld [vmem:[%s5042_s7 + $0x234] sm:$0xf0] }
 0x1e4   : > { %v3453_v61 = vpack.c.bf16 %v2276_v3, %v6123_v19  ;;  %v4254_v3 = vor.u32 %v4624_v27, %v4253_v44  ;;  %v4381_v19 = vld [vmem:[%s5042_s7 + $0x328] sm:$0xf] }
 0x1e5   : > { %v4125_v27 = vld [vmem:[%s5042_s7 + $0x128] sm:$0xf] }
 0x1e6   : > { %3517 = vst [vmem:[%s5514_s19 + $0x20] sm:$0xff] %v3453_v61  ;;  %v4656_v61 = vld [vmem:[%s5042_s7 + $0x334] sm:$0xf0]  ;;  %2534 = vmatpush.bf16.msra.mxu2 %v4254_v3 }
 0x1e7   : > { %v2188_v11 = vpop.f32.mrf.mxu2 }
 0x1e8   : > { %v2189_v30 = vadd.f32 %v2188_v11, %v2100_v7  ;;  %v2277_v36 = vpop.f32.mrf.mxu3  ;;  %v2013_v9 = vpop.f32.mrf.mxu0 }
 0x1e9   : > { %v2102_v53 = vpop.f32.mrf.mxu1 }
 0x1ea   : > { %v2278_v58 = vadd.f32 %v2277_v36, %v2189_v30  ;;  %v2103_v10 = vadd.f32 %v2102_v53, %v2013_v9  ;;  %v4382_v36 = vor.u32 %v4656_v61, %v4381_v19  ;;  %v6130_v61 = vld [vmem:[#allocation35_spill] sm:$0xff] }
 0x1eb   : > { %2052 = vmatmul.bf16.gmra.mxu0 %v6124_v51  ;;  %2141 = vmatmul.bf16.gmra.mxu1 %v6126_v46  ;;  %v4592_v51 = vld [vmem:[%s5042_s7 + $0x134] sm:$0xf0] }
 0x1ec   : > { %v3455_v1 = vpack.c.bf16 %v2278_v58, %v6125_v26  ;;  %2230 = vmatmul.bf16.gmra.mxu2 %v6127_v2  ;;  %2623 = vmatpush.bf16.msra.mxu3 %v4382_v36  ;;  %v6129_v58 = vld [vmem:[#allocation34_spill] sm:$0xff]  ;;  %v4560_v2 = vld [vmem:[%s5042_s7 + $0x34] sm:$0xf0]  ;;  %v4126_v4 = vor.u32 %v4592_v51, %v4125_v27  ;;  %v6132_v36 = vld [vmem:[#allocation36_spill] sm:$0xff] }
 0x1ed   : > { %2319 = vmatmul.bf16.gmra.mxu3 %v6128_v48  ;;  %v3997_v48 = vld [vmem:[%s5042_s7 + $0x28] sm:$0xf] }
 0x1ee   : > { %3519 = vst [vmem:[%s5514_s19 + $0x30] sm:$0xff] %v3455_v1  ;;  %v3998_v44 = vor.u32 %v4560_v2, %v3997_v48  ;;  %2445 = vmatpush.bf16.msra.mxu1 %v4126_v4  ;;  %v6133_v2 = vld [vmem:[#allocation37_spill] sm:$0xff]  ;;  %v6134_v48 = vld [vmem:[#allocation38_spill] sm:$0xff] }
 0x1ef   : > { %v2191_v62 = vpop.f32.mrf.mxu2 }
 0x1f0   : > { %v2192_v7 = vadd.f32 %v2191_v62, %v2103_v10  ;;  %v2280_v11 = vpop.f32.mrf.mxu3  ;;  %v2015_v30 = vpop.f32.mrf.mxu0  ;;  %2356 = vmatpush.bf16.msra.mxu0 %v3998_v44 }
 0x1f1   : > { %v2104_v9 = vpop.f32.mrf.mxu1 }
 0x1f2   : > { %v2281_v53 = vadd.f32 %v2280_v11, %v2192_v7  ;;  %v2105_v1 = vadd.f32 %v2104_v9, %v2015_v30  ;;  %v6131_v7 = vld [vmem:[#allocation39_spill] sm:$0xff] }
 0x1f4   : > { %v3457_v26 = vpack.c.bf16 %v2281_v53, %v6129_v58 }
 0x1f6   : > { %3521 = vst [vmem:[%s5514_s19 + $0x40] sm:$0xff] %v3457_v26 }
 0x1f7   : > { %v2193_v46 = vpop.f32.mrf.mxu2 }
 0x1f8   : > { %v2194_v10 = vadd.f32 %v2193_v46, %v2105_v1  ;;  %v2282_v62 = vpop.f32.mrf.mxu3  ;;  %v2018_v6 = vpop.f32.mrf.mxu0  ;;  %v6135_v1 = vld [vmem:[#allocation40_spill] sm:$0xff] }
 0x1f9   : > { %v2107_v19 = vpop.f32.mrf.mxu1 }
 0x1fa   : > { %v2283_v3 = vadd.f32 %v2282_v62, %v2194_v10  ;;  %v2108_v30 = vadd.f32 %v2107_v19, %v2018_v6 }
 0x1fb   : > { %2057 = vmatmul.bf16.gmra.mxu0 %v6130_v61  ;;  %2146 = vmatmul.bf16.gmra.mxu1 %v6132_v36 }
 0x1fc   : > { %v3459_v11 = vpack.c.bf16 %v2283_v3, %v6131_v7  ;;  %2235 = vmatmul.bf16.gmra.mxu2 %v6133_v2  ;;  %v6136_v7 = vld [vmem:[#allocation41_spill] sm:$0xff]  ;;  %v4588_v2 = vld [vmem:[%s5042_s7 + $0x114] sm:$0xf0] }
 0x1fd   : > { %2324 = vmatmul.bf16.gmra.mxu3 %v6134_v48 }
 0x1fe   : > { %3523 = vst [vmem:[%s5514_s19 + $0x50] sm:$0xff] %v3459_v11  ;;  %v6137_v11 = vld [vmem:[#allocation45_spill] sm:$0xff] }
 0x1ff   : > { %v2196_v46 = vpop.f32.mrf.mxu2 }
 0x200   : > { %v2197_v9 = vadd.f32 %v2196_v46, %v2108_v30  ;;  %v2285_v51 = vpop.f32.mrf.mxu3  ;;  %v2020_v53 = vpop.f32.mrf.mxu0 }
 0x201   : > { %v2109_v58 = vpop.f32.mrf.mxu1 }
 0x202   : > { %v2286_v26 = vadd.f32 %v2285_v51, %v2197_v9  ;;  %v2110_v6 = vadd.f32 %v2109_v58, %v2020_v53  ;;  %v6138_v9 = vld [vmem:[#allocation42_spill] sm:$0xff]  ;;  %v6139_v51 = vld [vmem:[#allocation43_spill] sm:$0xff]  ;;  %v4237_v53 = vld [vmem:[%s5042_s7 + $0x208] sm:$0xf] }
 0x203   : > { %v4620_v58 = vld [vmem:[%s5042_s7 + $0x214] sm:$0xf0] }
 0x204   : > { %v3461_v4 = vpack.c.bf16 %v2286_v26, %v6135_v1  ;;  %v6140_v26 = vld [vmem:[#allocation44_spill] sm:$0xff] }
 0x206   : > { %3525 = vst [vmem:[%s5514_s19 + $0x60] sm:$0xff] %v3461_v4  ;;  %v4238_v4 = vor.u32 %v4620_v58, %v4237_v53  ;;  %v4109_v58 = vld [vmem:[%s5042_s7 + $0x108] sm:$0xf] }
 0x207   : > { %v2198_v44 = vpop.f32.mrf.mxu2  ;;  %v4110_v61 = vor.u32 %v4588_v2, %v4109_v58 }
 0x208   : > { %v2199_v27 = vadd.f32 %v2198_v44, %v2110_v6  ;;  %v2287_v10 = vpop.f32.mrf.mxu3  ;;  %v2023_v62 = vpop.f32.mrf.mxu0  ;;  %v4365_v6 = vld [vmem:[%s5042_s7 + $0x308] sm:$0xf]  ;;  %v4652_v44 = vld [vmem:[%s5042_s7 + $0x314] sm:$0xf0]  ;;  %2535 = vmatpush.bf16.msra.mxu2 %v4238_v4 }
 0x209   : > { %v2112_v19 = vpop.f32.mrf.mxu1  ;;  %2446 = vmatpush.bf16.msra.mxu1 %v4110_v61 }
 0x20a   : > { %v2288_v3 = vadd.f32 %v2287_v10, %v2199_v27  ;;  %v2113_v46 = vadd.f32 %v2112_v19, %v2023_v62  ;;  %v4366_v19 = vor.u32 %v4652_v44, %v4365_v6  ;;  %v6142_v44 = vld [vmem:[#allocation47_spill] sm:$0xff] }
 0x20b   : > { %2062 = vmatmul.bf16.gmra.mxu0 %v6136_v7  ;;  %2151 = vmatmul.bf16.gmra.mxu1 %v6138_v9  ;;  %v3981_v9 = vld [vmem:[%s5042_s7 + $0x8] sm:$0xf]  ;;  %v4556_v7 = vld [vmem:[%s5042_s7 + $0x14] sm:$0xf0] }
 0x20c   : > { %v3463_v30 = vpack.c.bf16 %v2288_v3, %v6137_v11  ;;  %2240 = vmatmul.bf16.gmra.mxu2 %v6139_v51  ;;  %2624 = vmatpush.bf16.msra.mxu3 %v4366_v19  ;;  %v3982_v53 = vor.u32 %v4556_v7, %v3981_v9  ;;  %v6145_v7 = vld [vmem:[#allocation49_spill] sm:$0xff]  ;;  %v6146_v9 = vld [vmem:[#allocation50_spill] sm:$0xff] }
 0x20d   : > { %2329 = vmatmul.bf16.gmra.mxu3 %v6140_v26 }
 0x20e   : > { %3527 = vst [vmem:[%s5514_s19 + $0x70] sm:$0xff] %v3463_v30  ;;  %v6141_v30 = vld [vmem:[#allocation46_spill] sm:$0xff]  ;;  %2357 = vmatpush.bf16.msra.mxu0 %v3982_v53 }
 0x20f   : > { %v2201_v1 = vpop.f32.mrf.mxu2 }
 0x210   : > { %v2202_v27 = vadd.f32 %v2201_v1, %v2113_v46  ;;  %v2290_v10 = vpop.f32.mrf.mxu3  ;;  %v2025_v62 = vpop.f32.mrf.mxu0 }
 0x211   : > { %v2114_v3 = vpop.f32.mrf.mxu1 }
 0x212   : > { %v2291_v11 = vadd.f32 %v2290_v10, %v2202_v27  ;;  %v2115_v51 = vadd.f32 %v2114_v3, %v2025_v62  ;;  %v6144_v62 = vld [vmem:[#allocation48_spill] sm:$0xff] }
 0x214   : > { %v3465_v26 = vpack.c.bf16 %v2291_v11, %v6141_v30  ;;  %v6147_v30 = vld [vmem:[#allocation52_spill] sm:$0xff] }
 0x216   : > { %3529 = vst [vmem:[%s5514_s19 + $0x80] sm:$0xff] %v3465_v26  ;;  %v6143_v26 = vld [vmem:[#allocation51_spill] sm:$0xff] }
 0x217   : > { %v2203_v48 = vpop.f32.mrf.mxu2 }
 0x218   : > { %v2204_v46 = vadd.f32 %v2203_v48, %v2115_v51  ;;  %v2292_v1 = vpop.f32.mrf.mxu3  ;;  %v2028_v36 = vpop.f32.mrf.mxu0 }
 0x219   : > { %v2117_v6 = vpop.f32.mrf.mxu1 }
 0x21a   : > { %v2293_v4 = vadd.f32 %v2292_v1, %v2204_v46  ;;  %v2118_v10 = vadd.f32 %v2117_v6, %v2028_v36 }
 0x21b   : > { %2067 = vmatmul.bf16.gmra.mxu0 %v6142_v44  ;;  %2156 = vmatmul.bf16.gmra.mxu1 %v6144_v62 }
 0x21c   : > { %v3467_v27 = vpack.c.bf16 %v2293_v4, %v6143_v26  ;;  %2245 = vmatmul.bf16.gmra.mxu2 %v6145_v7  ;;  %v6148_v26 = vld [vmem:[#allocation53_spill] sm:$0xff]  ;;  %v4223_v7 = vld [vmem:[%s5042_s7 + $0x1f8] sm:$0xf0] }
 0x21d   : > { %2334 = vmatmul.bf16.gmra.mxu3 %v6146_v9 }
 0x21e   : > { %3531 = vst [vmem:[%s5514_s19 + $0x90] sm:$0xff] %v3467_v27  ;;  %v6149_v27 = vld [vmem:[#allocation57_spill] sm:$0xff] }
 0x21f   : > { %v2206_v48 = vpop.f32.mrf.mxu2 }
 0x220   : > { %v2207_v51 = vadd.f32 %v2206_v48, %v2118_v10  ;;  %v2295_v2 = vpop.f32.mrf.mxu3  ;;  %v2030_v19 = vpop.f32.mrf.mxu0 }
 0x221   : > { %v2119_v3 = vpop.f32.mrf.mxu1 }
 0x222   : > { %v2296_v11 = vadd.f32 %v2295_v2, %v2207_v51  ;;  %v2120_v36 = vadd.f32 %v2119_v3, %v2030_v19  ;;  %v6150_v51 = vld [vmem:[#allocation54_spill] sm:$0xff]  ;;  %v6151_v2 = vld [vmem:[#allocation55_spill] sm:$0xff]  ;;  %v4646_v19 = vld [vmem:[%s5042_s7 + $0x2ec] sm:$0xf] }
 0x223   : > { %v4351_v3 = vld [vmem:[%s5042_s7 + $0x2f8] sm:$0xf0] }
 0x224   : > { %v3469_v61 = vpack.c.bf16 %v2296_v11, %v6147_v30  ;;  %v6152_v11 = vld [vmem:[#allocation56_spill] sm:$0xff] }
 0x226   : > { %3533 = vst [vmem:[%s5514_s19 + $0xa0] sm:$0xff] %v3469_v61  ;;  %v4354_v61 = vor.u32 %v4646_v19, %v4351_v3  ;;  %v4614_v3 = vld [vmem:[%s5042_s7 + $0x1ec] sm:$0xf] }
 0x227   : > { %v2208_v53 = vpop.f32.mrf.mxu2  ;;  %v4226_v44 = vor.u32 %v4614_v3, %v4223_v7 }
 0x228   : > { %v2209_v58 = vadd.f32 %v2208_v53, %v2120_v36  ;;  %v2297_v46 = vpop.f32.mrf.mxu3  ;;  %v2033_v1 = vpop.f32.mrf.mxu0  ;;  %v4678_v36 = vld [vmem:[%s5042_s7 + $0x3ec] sm:$0xf]  ;;  %v4479_v53 = vld [vmem:[%s5042_s7 + $0x3f8] sm:$0xf0]  ;;  %2884 = vmatpush.bf16.msrb.mxu2 %v4354_v61 }
 0x229   : > { %v2122_v6 = vpop.f32.mrf.mxu1  ;;  %2795 = vmatpush.bf16.msrb.mxu1 %v4226_v44 }
 0x22a   : > { %v2298_v4 = vadd.f32 %v2297_v46, %v2209_v58  ;;  %v2123_v48 = vadd.f32 %v2122_v6, %v2033_v1  ;;  %v4482_v6 = vor.u32 %v4678_v36, %v4479_v53 }
 0x22b   : > { %2072 = vmatmul.bf16.gmra.mxu0 %v6148_v26  ;;  %2161 = vmatmul.bf16.gmra.mxu1 %v6150_v51  ;;  %v4582_v51 = vld [vmem:[%s5042_s7 + $0xec] sm:$0xf]  ;;  %v4095_v26 = vld [vmem:[%s5042_s7 + $0xf8] sm:$0xf0] }
 0x22c   : > { %v3471_v10 = vpack.c.bf16 %v2298_v4, %v6149_v27  ;;  %2250 = vmatmul.bf16.gmra.mxu2 %v6151_v2  ;;  %2973 = vmatpush.bf16.msrb.mxu3 %v4482_v6  ;;  %v4098_v19 = vor.u32 %v4582_v51, %v4095_v26 }
 0x22d   : > { %2339 = vmatmul.bf16.gmra.mxu3 %v6152_v11 }
 0x22e   : > { %3535 = vst [vmem:[%s5514_s19 + $0xb0] sm:$0xff] %v3471_v10  ;;  %v6153_v10 = vld [vmem:[#allocation58_spill] sm:$0xff]  ;;  %2706 = vmatpush.bf16.msrb.mxu0 %v4098_v19  ;;  %v6155_v19 = vld [vmem:[#allocation60_spill] sm:$0xff] }
 0x22f   : > { %v2211_v30 = vpop.f32.mrf.mxu2 }
 0x230   : > { %v2212_v58 = vadd.f32 %v2211_v30, %v2123_v48  ;;  %v2300_v46 = vpop.f32.mrf.mxu3  ;;  %v2035_v1 = vpop.f32.mrf.mxu0 }
 0x231   : > { %v2124_v4 = vpop.f32.mrf.mxu1 }
 0x232   : > { %v2301_v27 = vadd.f32 %v2300_v46, %v2212_v58  ;;  %v2125_v2 = vadd.f32 %v2124_v4, %v2035_v1 }
 0x234   : > { %v3473_v11 = vpack.c.bf16 %v2301_v27, %v6153_v10  ;;  %v6154_v10 = vld [vmem:[#allocation12_spill] sm:$0xff] }
 0x236   : > { %3537 = vst [vmem:[%s5514_s19 + $0xc0] sm:$0xff] %v3473_v11 }
 0x237   : > { %v2213_v9 = vpop.f32.mrf.mxu2 }
 0x238   : > { %v2214_v48 = vadd.f32 %v2213_v9, %v2125_v2  ;;  %v2302_v30 = vpop.f32.mrf.mxu3  ;;  %v2038_v62 = vpop.f32.mrf.mxu0 }
 0x239   : > { %v2127_v36 = vpop.f32.mrf.mxu1 }
 0x23a   : > { %v2303_v61 = vadd.f32 %v2302_v30, %v2214_v48  ;;  %v2128_v53 = vadd.f32 %v2127_v36, %v2038_v62  ;;  %v6156_v30 = vld [vmem:[#allocation13_spill] sm:$0xff]  ;;  %v6158_v36 = vld [vmem:[#allocation15_spill] sm:$0xff] }
 0x23b   : > { %2077 = vmatmul.bf16.gmra.mxu0 %v5390_v39  ;;  %2166 = vmatmul.bf16.gmra.mxu1 %v5392_v16 }
 0x23c   : > { %v3475_v11 = vpack.c.bf16 %v2303_v61, %v5398_v18  ;;  %2255 = vmatmul.bf16.gmra.mxu2 %v5394_v28  ;;  %v4642_v61 = vld [vmem:[%s5042_s7 + $0x2cc] sm:$0xf] }
 0x23d   : > { %2344 = vmatmul.bf16.gmra.mxu3 %v5396_v60 }
 0x23e   : > { %3539 = vst [vmem:[%s5514_s19 + $0xd0] sm:$0xff] %v3475_v11  ;;  %v4335_v11 = vld [vmem:[%s5042_s7 + $0x2d8] sm:$0xf0] }
 0x23f   : > { %v2216_v9 = vpop.f32.mrf.mxu2 }
 0x240   : > { %v2217_v26 = vadd.f32 %v2216_v9, %v2128_v53  ;;  %v2305_v7 = vpop.f32.mrf.mxu3  ;;  %v2040_v51 = vpop.f32.mrf.mxu0  ;;  %v4338_v9 = vor.u32 %v4642_v61, %v4335_v11  ;;  %v4207_v61 = vld [vmem:[%s5042_s7 + $0x1d8] sm:$0xf0] }
 0x241   : > { %v2129_v2 = vpop.f32.mrf.mxu1 }
 0x242   : > { %v2306_v58 = vadd.f32 %v2305_v7, %v2217_v26  ;;  %v2130_v18 = vadd.f32 %v2129_v2, %v2040_v51  ;;  %v4674_v26 = vld [vmem:[%s5042_s7 + $0x3cc] sm:$0xf]  ;;  %v4463_v7 = vld [vmem:[%s5042_s7 + $0x3d8] sm:$0xf0]  ;;  %2885 = vmatpush.bf16.msrb.mxu2 %v4338_v9 }
 0x244   : > { %v3477_v44 = vpack.c.bf16 %v2306_v58, %v5404_v29  ;;  %v6157_v29 = vld [vmem:[#allocation14_spill] sm:$0xff] }
 0x246   : > { %3541 = vst [vmem:[%s5514_s19 + $0xe0] sm:$0xff] %v3477_v44  ;;  %v4466_v44 = vor.u32 %v4674_v26, %v4463_v7 }
 0x247   : > { %v2218_v62 = vpop.f32.mrf.mxu2 }
 0x248   : > { %v2219_v46 = vadd.f32 %v2218_v62, %v2130_v18  ;;  %v2307_v1 = vpop.f32.mrf.mxu3  ;;  %v2043_v6 = vpop.f32.mrf.mxu0  ;;  %2974 = vmatpush.bf16.msrb.mxu3 %v4466_v44 }
 0x249   : > { %v2132_v4 = vpop.f32.mrf.mxu1 }
 0x24a   : > { %v2308_v27 = vadd.f32 %v2307_v1, %v2219_v46  ;;  %v2133_v48 = vadd.f32 %v2132_v4, %v2043_v6  ;;  %v4578_v6 = vld [vmem:[%s5042_s7 + $0xcc] sm:$0xf]  ;;  %v4079_v4 = vld [vmem:[%s5042_s7 + $0xd8] sm:$0xf0] }
 0x24b   : > { %2358 = vmatmul.bf16.vlgmr.msra.gmra.mxu0 %v6154_v10  ;;  %2447 = vmatmul.bf16.vlgmr.msra.gmra.mxu1 %v6156_v30 }
 0x24c   : > { %v3479_v3 = vpack.c.bf16 %v2308_v27, %v6155_v19  ;;  %2536 = vmatmul.bf16.vlgmr.msra.gmra.mxu2 %v6157_v29  ;;  %v4082_v19 = vor.u32 %v4578_v6, %v4079_v4 }
 0x24d   : > { %2625 = vmatmul.bf16.vlgmr.msra.gmra.mxu3 %v6158_v36 }
 0x24e   : > { %3543 = vst [vmem:[%s5514_s19 + $0xf0] sm:$0xff] %v3479_v3  ;;  %v4610_v3 = vld [vmem:[%s5042_s7 + $0x1cc] sm:$0xf]  ;;  %2707 = vmatpush.bf16.msrb.mxu0 %v4082_v19 }
 0x24f   : > { %v2221_v53 = vpop.f32.mrf.mxu2  ;;  %v4210_v36 = vor.u32 %v4610_v3, %v4207_v61  ;;  %v6159_v3 = vld [vmem:[#allocation61_spill] sm:$0xff] }
 0x250   : > { %v2222_v51 = vadd.f32 %v2221_v53, %v2133_v48  ;;  %v2310_v2 = vpop.f32.mrf.mxu3  ;;  %v2045_v58 = vpop.f32.mrf.mxu0 }
 0x251   : > { %v2134_v18 = vpop.f32.mrf.mxu1  ;;  %2796 = vmatpush.bf16.msrb.mxu1 %v4210_v36 }
 0x252   : > { %v2311_v62 = vadd.f32 %v2310_v2, %v2222_v51  ;;  %v2135_v1 = vadd.f32 %v2134_v18, %v2045_v58 }
 0x254   : > { %v3481_v46 = vpack.c.bf16 %v2311_v62, %v5416_v31 }
 0x256   : > { %3545 = vst [vmem:[%s5514_s19 + $0x100] sm:$0xff] %v3481_v46 }
 0x257   : > { %v2223_v27 = vpop.f32.mrf.mxu2 }
 0x258   : > { %v2224_v48 = vadd.f32 %v2223_v27, %v2135_v1  ;;  %v2312_v11 = vpop.f32.mrf.mxu3  ;;  %v2048_v53 = vpop.f32.mrf.mxu0 }
 0x259   : > { %v2137_v26 = vpop.f32.mrf.mxu1 }
 0x25a   : > { %v2313_v9 = vadd.f32 %v2312_v11, %v2224_v48  ;;  %v2138_v7 = vadd.f32 %v2137_v26, %v2048_v53  ;;  %v6160_v11 = vld [vmem:[#allocation16_spill] sm:$0xff]  ;;  %v6162_v53 = vld [vmem:[#allocation18_spill] sm:$0xff]  ;;  %v4638_v26 = vld [vmem:[%s5042_s7 + $0x2ac] sm:$0xf] }
 0x25b   : > { %2363 = vmatmul.bf16.gmra.mxu0 %v5140_v12  ;;  %2452 = vmatmul.bf16.gmra.mxu1 %v5142_v13 }
 0x25c   : > { %v3483_v31 = vpack.c.bf16 %v2313_v9, %v5422_v38  ;;  %2541 = vmatmul.bf16.gmra.mxu2 %v5144_v14  ;;  %v4319_v9 = vld [vmem:[%s5042_s7 + $0x2b8] sm:$0xf0] }
 0x25d   : > { %2630 = vmatmul.bf16.gmra.mxu3 %v5146_v15 }
 0x25e   : > { %3547 = vst [vmem:[%s5514_s19 + $0x110] sm:$0xff] %v3483_v31 }
 0x25f   : > { %v2226_v51 = vpop.f32.mrf.mxu2 }
 0x260   : > { %v2227_v2 = vadd.f32 %v2226_v51, %v2138_v7  ;;  %v2315_v58 = vpop.f32.mrf.mxu3  ;;  %v2050_v44 = vpop.f32.mrf.mxu0  ;;  %v4322_v7 = vor.u32 %v4638_v26, %v4319_v9  ;;  %v4670_v51 = vld [vmem:[%s5042_s7 + $0x3ac] sm:$0xf] }
 0x261   : > { %v2139_v18 = vpop.f32.mrf.mxu1 }
 0x262   : > { %v2316_v62 = vadd.f32 %v2315_v58, %v2227_v2  ;;  %v2140_v38 = vadd.f32 %v2139_v18, %v2050_v44  ;;  %v4447_v2 = vld [vmem:[%s5042_s7 + $0x3b8] sm:$0xf0]  ;;  %2886 = vmatpush.bf16.msrb.mxu2 %v4322_v7 }
 0x264   : > { %v3485_v36 = vpack.c.bf16 %v2316_v62, %v5428_v37  ;;  %v6161_v37 = vld [vmem:[#allocation17_spill] sm:$0xff]  ;;  %v4450_v62 = vor.u32 %v4670_v51, %v4447_v2 }
 0x266   : > { %3549 = vst [vmem:[%s5514_s19 + $0x120] sm:$0xff] %v3485_v36  ;;  %2975 = vmatpush.bf16.msrb.mxu3 %v4450_v62 }
 0x267   : > { %v2228_v46 = vpop.f32.mrf.mxu2 }
 0x268   : > { %v2229_v1 = vadd.f32 %v2228_v46, %v2140_v38  ;;  %v2317_v6 = vpop.f32.mrf.mxu3  ;;  %v2053_v4 = vpop.f32.mrf.mxu0 }
 0x269   : > { %v2142_v27 = vpop.f32.mrf.mxu1 }
 0x26a   : > { %v2318_v19 = vadd.f32 %v2317_v6, %v2229_v1  ;;  %v2143_v48 = vadd.f32 %v2142_v27, %v2053_v4  ;;  %v4574_v6 = vld [vmem:[%s5042_s7 + $0xac] sm:$0xf]  ;;  %v4063_v4 = vld [vmem:[%s5042_s7 + $0xb8] sm:$0xf0] }
 0x26b   : > { %2368 = vmatmul.bf16.gmra.mxu0 %v5152_v24  ;;  %2457 = vmatmul.bf16.gmra.mxu1 %v6160_v11 }
 0x26c   : > { %v3487_v61 = vpack.c.bf16 %v2318_v19, %v6159_v3  ;;  %2546 = vmatmul.bf16.gmra.mxu2 %v6161_v37  ;;  %v4066_v19 = vor.u32 %v4574_v6, %v4063_v4  ;;  %v4606_v3 = vld [vmem:[%s5042_s7 + $0x1ac] sm:$0xf] }
 0x26d   : > { %2635 = vmatmul.bf16.gmra.mxu3 %v6162_v53 }
 0x26e   : > { %3551 = vst [vmem:[%s5514_s19 + $0x130] sm:$0xff] %v3487_v61  ;;  %v4191_v61 = vld [vmem:[%s5042_s7 + $0x1b8] sm:$0xf0]  ;;  %2708 = vmatpush.bf16.msrb.mxu0 %v4066_v19 }
 0x26f   : > { %v2231_v31 = vpop.f32.mrf.mxu2 }
 0x270   : > { %v2232_v58 = vadd.f32 %v2231_v31, %v2143_v48  ;;  %v2320_v44 = vpop.f32.mrf.mxu3  ;;  %v2055_v18 = vpop.f32.mrf.mxu0  ;;  %v4194_v31 = vor.u32 %v4606_v3, %v4191_v61  ;;  %v6163_v61 = vld [vmem:[#allocation62_spill] sm:$0xff] }
 0x271   : > { %v2144_v36 = vpop.f32.mrf.mxu1 }
 0x272   : > { %v2321_v38 = vadd.f32 %v2320_v44, %v2232_v58  ;;  %v2145_v1 = vadd.f32 %v2144_v36, %v2055_v18  ;;  %2797 = vmatpush.bf16.msrb.mxu1 %v4194_v31  ;;  %v6166_v31 = vld [vmem:[#allocation21_spill] sm:$0xff] }
 0x274   : > { %v3489_v46 = vpack.c.bf16 %v2321_v38, %v5440_v56 }
 0x276   : > { %3553 = vst [vmem:[%s5514_s19 + $0x140] sm:$0xff] %v3489_v46 }
 0x277   : > { %v2233_v27 = vpop.f32.mrf.mxu2 }
 0x278   : > { %v2234_v48 = vadd.f32 %v2233_v27, %v2145_v1  ;;  %v2322_v26 = vpop.f32.mrf.mxu3  ;;  %v2058_v9 = vpop.f32.mrf.mxu0 }
 0x279   : > { %v2147_v51 = vpop.f32.mrf.mxu1 }
 0x27a   : > { %v2323_v7 = vadd.f32 %v2322_v26, %v2234_v48  ;;  %v2148_v2 = vadd.f32 %v2147_v51, %v2058_v9  ;;  %v6164_v9 = vld [vmem:[#allocation19_spill] sm:$0xff]  ;;  %v4634_v51 = vld [vmem:[%s5042_s7 + $0x28c] sm:$0xf] }
 0x27b   : > { %2373 = vmatmul.bf16.gmra.mxu0 %v5172_v49  ;;  %2462 = vmatmul.bf16.gmra.mxu1 %v5174_v50 }
 0x27c   : > { %v3491_v56 = vpack.c.bf16 %v2323_v7, %v5446_v52  ;;  %2551 = vmatmul.bf16.gmra.mxu2 %v5176_v54  ;;  %v4303_v7 = vld [vmem:[%s5042_s7 + $0x298] sm:$0xf0] }
 0x27d   : > { %2640 = vmatmul.bf16.gmra.mxu3 %v5178_v55 }
 0x27e   : > { %3555 = vst [vmem:[%s5514_s19 + $0x150] sm:$0xff] %v3491_v56 }
 0x27f   : > { %v2236_v58 = vpop.f32.mrf.mxu2 }
 0x280   : > { %v2237_v44 = vadd.f32 %v2236_v58, %v2148_v2  ;;  %v2325_v18 = vpop.f32.mrf.mxu3  ;;  %v2060_v62 = vpop.f32.mrf.mxu0  ;;  %v4306_v2 = vor.u32 %v4634_v51, %v4303_v7  ;;  %v4666_v58 = vld [vmem:[%s5042_s7 + $0x38c] sm:$0xf] }
 0x281   : > { %v2149_v36 = vpop.f32.mrf.mxu1 }
 0x282   : > { %v2326_v38 = vadd.f32 %v2325_v18, %v2237_v44  ;;  %v2150_v52 = vadd.f32 %v2149_v36, %v2060_v62  ;;  %v4431_v44 = vld [vmem:[%s5042_s7 + $0x398] sm:$0xf0]  ;;  %2887 = vmatpush.bf16.msrb.mxu2 %v4306_v2 }
 0x284   : > { %v3493_v46 = vpack.c.bf16 %v2326_v38, %v5452_v47  ;;  %v6165_v47 = vld [vmem:[#allocation20_spill] sm:$0xff]  ;;  %v4434_v38 = vor.u32 %v4666_v58, %v4431_v44 }
 0x286   : > { %3557 = vst [vmem:[%s5514_s19 + $0x160] sm:$0xff] %v3493_v46  ;;  %2976 = vmatpush.bf16.msrb.mxu3 %v4434_v38 }
 0x287   : > { %v2238_v1 = vpop.f32.mrf.mxu2 }
 0x288   : > { %v2239_v6 = vadd.f32 %v2238_v1, %v2150_v52  ;;  %v2327_v4 = vpop.f32.mrf.mxu3  ;;  %v2063_v27 = vpop.f32.mrf.mxu0 }
 0x289   : > { %v2152_v19 = vpop.f32.mrf.mxu1 }
 0x28a   : > { %v2328_v3 = vadd.f32 %v2327_v4, %v2239_v6  ;;  %v2153_v26 = vadd.f32 %v2152_v19, %v2063_v27  ;;  %v4570_v4 = vld [vmem:[%s5042_s7 + $0x8c] sm:$0xf]  ;;  %v4047_v27 = vld [vmem:[%s5042_s7 + $0x98] sm:$0xf0] }
 0x28b   : > { %2378 = vmatmul.bf16.gmra.mxu0 %v5184_v0  ;;  %2467 = vmatmul.bf16.gmra.mxu1 %v6164_v9 }
 0x28c   : > { %v3495_v48 = vpack.c.bf16 %v2328_v3, %v6163_v61  ;;  %2556 = vmatmul.bf16.gmra.mxu2 %v6165_v47  ;;  %v4050_v3 = vor.u32 %v4570_v4, %v4047_v27  ;;  %v4602_v61 = vld [vmem:[%s5042_s7 + $0x18c] sm:$0xf] }
 0x28d   : > { %2645 = vmatmul.bf16.gmra.mxu3 %v6166_v31 }
 0x28e   : > { %3559 = vst [vmem:[%s5514_s19 + $0x170] sm:$0xff] %v3495_v48  ;;  %v4175_v48 = vld [vmem:[%s5042_s7 + $0x198] sm:$0xf0]  ;;  %2709 = vmatpush.bf16.msrb.mxu0 %v4050_v3 }
 0x28f   : > { %v2241_v56 = vpop.f32.mrf.mxu2 }
 0x290   : > { %v2242_v18 = vadd.f32 %v2241_v56, %v2153_v26  ;;  %v2330_v62 = vpop.f32.mrf.mxu3  ;;  %v2065_v36 = vpop.f32.mrf.mxu0  ;;  %v4178_v56 = vor.u32 %v4602_v61, %v4175_v48 }
 0x291   : > { %v2154_v46 = vpop.f32.mrf.mxu1 }
 0x292   : > { %v2331_v52 = vadd.f32 %v2330_v62, %v2242_v18  ;;  %v2155_v6 = vadd.f32 %v2154_v46, %v2065_v36  ;;  %2798 = vmatpush.bf16.msrb.mxu1 %v4178_v56 }
 0x294   : > { %v3497_v1 = vpack.c.bf16 %v2331_v52, %v5464_v17 }
 0x296   : > { %3561 = vst [vmem:[%s5514_s19 + $0x180] sm:$0xff] %v3497_v1  ;;  %v6167_v1 = vld [vmem:[#allocation63_spill] sm:$0xff] }
 0x297   : > { %v2243_v19 = vpop.f32.mrf.mxu2 }
 0x298   : > { %v2244_v26 = vadd.f32 %v2243_v19, %v2155_v6  ;;  %v2332_v51 = vpop.f32.mrf.mxu3  ;;  %v2068_v7 = vpop.f32.mrf.mxu0 }
 0x299   : > { %v2157_v58 = vpop.f32.mrf.mxu1 }
 0x29a   : > { %v2333_v2 = vadd.f32 %v2332_v51, %v2244_v26  ;;  %v2158_v44 = vadd.f32 %v2157_v58, %v2068_v7  ;;  %v6168_v26 = vld [vmem:[#allocation22_spill] sm:$0xff]  ;;  %v6169_v51 = vld [vmem:[#allocation64_spill] sm:$0xff]  ;;  %v6170_v58 = vld [vmem:[#allocation23_spill] sm:$0xff] }
 0x29b   : > { %2383 = vmatmul.bf16.gmra.mxu0 %v5204_v32  ;;  %2472 = vmatmul.bf16.gmra.mxu1 %v5206_v33 }
 0x29c   : > { %v3499_v17 = vpack.c.bf16 %v2333_v2, %v5470_v25  ;;  %2561 = vmatmul.bf16.gmra.mxu2 %v5208_v34  ;;  %v6171_v2 = vld [vmem:[#allocation24_spill] sm:$0xff] }
 0x29d   : > { %2650 = vmatmul.bf16.gmra.mxu3 %v5210_v35 }
 0x29e   : > { %3563 = vst [vmem:[%s5514_s19 + $0x190] sm:$0xff] %v3499_v17  ;;  %v6172_v17 = vld [vmem:[#allocation25_spill] sm:$0xff] }
 0x29f   : > { %v2246_v18 = vpop.f32.mrf.mxu2 }
 0x2a0   : > { %v2247_v62 = vadd.f32 %v2246_v18, %v2158_v44  ;;  %v2335_v36 = vpop.f32.mrf.mxu3  ;;  %v2070_v38 = vpop.f32.mrf.mxu0  ;;  %v4630_v44 = vld [vmem:[%s5042_s7 + $0x26c] sm:$0xf]  ;;  %v4287_v18 = vld [vmem:[%s5042_s7 + $0x278] sm:$0xf0] }
 0x2a1   : > { %v2159_v46 = vpop.f32.mrf.mxu1 }
 0x2a2   : > { %v2336_v52 = vadd.f32 %v2335_v36, %v2247_v62  ;;  %v2160_v25 = vadd.f32 %v2159_v46, %v2070_v38  ;;  %v4290_v36 = vor.u32 %v4630_v44, %v4287_v18  ;;  %v4662_v38 = vld [vmem:[%s5042_s7 + $0x36c] sm:$0xf]  ;;  %v4415_v46 = vld [vmem:[%s5042_s7 + $0x378] sm:$0xf0] }
 0x2a4   : > { %v3501_v6 = vpack.c.bf16 %v2336_v52, %v6167_v1  ;;  %2888 = vmatpush.bf16.msrb.mxu2 %v4290_v36 }
 0x2a6   : > { %3565 = vst [vmem:[%s5514_s19 + $0x1a0] sm:$0xff] %v3501_v6 }
 0x2a7   : > { %v2248_v4 = vpop.f32.mrf.mxu2 }
 0x2a8   : > { %v2249_v27 = vadd.f32 %v2248_v4, %v2160_v25  ;;  %v2337_v19 = vpop.f32.mrf.mxu3  ;;  %v2073_v3 = vpop.f32.mrf.mxu0  ;;  %v4418_v25 = vor.u32 %v4662_v38, %v4415_v46 }
 0x2a9   : > { %v2162_v61 = vpop.f32.mrf.mxu1 }
 0x2aa   : > { %v2338_v48 = vadd.f32 %v2337_v19, %v2249_v27  ;;  %v2163_v56 = vadd.f32 %v2162_v61, %v2073_v3  ;;  %2977 = vmatpush.bf16.msrb.mxu3 %v4418_v25  ;;  %v4566_v19 = vld [vmem:[%s5042_s7 + $0x6c] sm:$0xf]  ;;  %v4031_v3 = vld [vmem:[%s5042_s7 + $0x78] sm:$0xf0] }
 0x2ab   : > { %2388 = vmatmul.bf16.gmra.mxu0 %v6168_v26  ;;  %2477 = vmatmul.bf16.gmra.mxu1 %v6170_v58  ;;  %v4598_v61 = vld [vmem:[%s5042_s7 + $0x16c] sm:$0xf] }
 0x2ac   : > { %v3503_v7 = vpack.c.bf16 %v2338_v48, %v6169_v51  ;;  %2566 = vmatmul.bf16.gmra.mxu2 %v6171_v2  ;;  %v4034_v48 = vor.u32 %v4566_v19, %v4031_v3  ;;  %v4159_v51 = vld [vmem:[%s5042_s7 + $0x178] sm:$0xf0] }
 0x2ad   : > { %2655 = vmatmul.bf16.gmra.mxu3 %v6172_v17  ;;  %v4162_v17 = vor.u32 %v4598_v61, %v4159_v51 }
 0x2ae   : > { %3567 = vst [vmem:[%s5514_s19 + $0x1b0] sm:$0xff] %v3503_v7  ;;  %2710 = vmatpush.bf16.msrb.mxu0 %v4034_v48 }
 0x2af   : > { %v2251_v62 = vpop.f32.mrf.mxu2  ;;  %2799 = vmatpush.bf16.msrb.mxu1 %v4162_v17 }
 0x2b0   : > { %v2252_v52 = vadd.f32 %v2251_v62, %v2163_v56  ;;  %v2340_v1 = vpop.f32.mrf.mxu3  ;;  %v2075_v6 = vpop.f32.mrf.mxu0 }
 0x2b1   : > { %v2164_v4 = vpop.f32.mrf.mxu1 }
 0x2b2   : > { %v2341_v27 = vadd.f32 %v2340_v1, %v2252_v52  ;;  %v2165_v56 = vadd.f32 %v2164_v4, %v2075_v6 }
 0x2b4   : > { %v3505_v7 = vpack.c.bf16 %v2341_v27, %v5488_v5 }
 0x2b6   : > { %3569 = vst [vmem:[%s5514_s19 + $0x1c0] sm:$0xff] %v3505_v7 }
 0x2b7   : > { %v2253_v44 = vpop.f32.mrf.mxu2 }
 0x2b8   : > { %v2254_v18 = vadd.f32 %v2253_v44, %v2165_v56  ;;  %v2342_v62 = vpop.f32.mrf.mxu3  ;;  %v2078_v38 = vpop.f32.mrf.mxu0 }
 0x2b9   : > { %v2167_v36 = vpop.f32.mrf.mxu1 }
 0x2ba   : > { %v2343_v46 = vadd.f32 %v2342_v62, %v2254_v18  ;;  %v2168_v1 = vadd.f32 %v2167_v36, %v2078_v38  ;;  %v4271_v62 = vld [vmem:[%s5042_s7 + $0x258] sm:$0xf0]  ;;  %v4658_v38 = vld [vmem:[%s5042_s7 + $0x34c] sm:$0xf] }
 0x2bb   : > { %2393 = vmatmul.bf16.gmra.mxu0 %v5236_v20  ;;  %2482 = vmatmul.bf16.gmra.mxu1 %v5238_v21 }
 0x2bc   : > { %v3507_v52 = vpack.c.bf16 %v2343_v46, %v5494_v8  ;;  %2571 = vmatmul.bf16.gmra.mxu2 %v5240_v22  ;;  %v4399_v46 = vld [vmem:[%s5042_s7 + $0x358] sm:$0xf0] }
 0x2bd   : > { %2660 = vmatmul.bf16.gmra.mxu3 %v5242_v23 }
 0x2be   : > { %3571 = vst [vmem:[%s5514_s19 + $0x1d0] sm:$0xff] %v3507_v52 }
 0x2bf   : > { %v2256_v5 = vpop.f32.mrf.mxu2 }
 0x2c0   : > { %v2257_v17 = vadd.f32 %v2256_v5, %v2168_v1  ;;  %v2345_v6 = vpop.f32.mrf.mxu3  ;;  %v2080_v25 = vpop.f32.mrf.mxu0  ;;  %v4402_v1 = vor.u32 %v4658_v38, %v4399_v46  ;;  %v6173_v38 = vld [vmem:[#allocation26_spill] sm:$0xff] }
 0x2c1   : > { %v2169_v4 = vpop.f32.mrf.mxu1 }
 0x2c2   : > { %v2346_v27 = vadd.f32 %v2345_v6, %v2257_v17  ;;  %v2170_v8 = vadd.f32 %v2169_v4, %v2080_v25  ;;  %2978 = vmatpush.bf16.msrb.mxu3 %v4402_v1 }
 0x2c4   : > { %v3509_v19 = vpack.c.bf16 %v2346_v27, %v5500_v45  ;;  %v4626_v45 = vld [vmem:[%s5042_s7 + $0x24c] sm:$0xf] }
 0x2c5   : > { %v4274_v36 = vor.u32 %v4626_v45, %v4271_v62  ;;  %v4562_v27 = vld [vmem:[%s5042_s7 + $0x4c] sm:$0xf] }
 0x2c6   : > { %3573 = vst [vmem:[%s5514_s19 + $0x1e0] sm:$0xff] %v3509_v19  ;;  %v4015_v19 = vld [vmem:[%s5042_s7 + $0x58] sm:$0xf0] }
 0x2c7   : > { %v2258_v3 = vpop.f32.mrf.mxu2  ;;  %2889 = vmatpush.bf16.msrb.mxu2 %v4274_v36  ;;  %v6174_v36 = vld [vmem:[#allocation27_spill] sm:$0xff] }
 0x2c8   : > { %v2259_v61 = vadd.f32 %v2258_v3, %v2170_v8  ;;  %v2347_v48 = vpop.f32.mrf.mxu3  ;;  %v2359_v51 = vpop.f32.mrf.mxu0  ;;  %v4594_v8 = vld [vmem:[%s5042_s7 + $0x14c] sm:$0xf]  ;;  %v4018_v3 = vor.u32 %v4562_v27, %v4015_v19 }
 0x2c9   : > { %v2448_v7 = vpop.f32.mrf.mxu1 }
 0x2ca   : > { %v2348_v56 = vadd.f32 %v2347_v48, %v2259_v61  ;;  %v2449_v44 = vadd.f32 %v2448_v7, %v2359_v51  ;;  %v4143_v61 = vld [vmem:[%s5042_s7 + $0x158] sm:$0xf0]  ;;  %2711 = vmatpush.bf16.msrb.mxu0 %v4018_v3 }
 0x2cb   : > { %2398 = vmatmul.bf16.gmra.mxu0 %v5248_v40  ;;  %2487 = vmatmul.bf16.gmra.mxu1 %v5250_v42  ;;  %v4146_v48 = vor.u32 %v4594_v8, %v4143_v61 }
 0x2cc   : > { %v3511_v18 = vpack.c.bf16 %v2348_v56, %v5502_v41  ;;  %2576 = vmatmul.bf16.gmra.mxu2 %v5252_v43 }
 0x2cd   : > { %2665 = vmatmul.bf16.gmra.mxu3 %v5254_v57  ;;  %2800 = vmatpush.bf16.msrb.mxu1 %v4146_v48 }
 0x2ce   : > { %3575 = vst [vmem:[%s5514_s19 + $0x1f0] sm:$0xff] %v3511_v18 }
 0x2cf   : > { %v2537_v52 = vpop.f32.mrf.mxu2 }
 0x2d0   : > { %v2538_v5 = vadd.f32 %v2537_v52, %v2449_v44  ;;  %v2626_v41 = vpop.f32.mrf.mxu3  ;;  %v2361_v17 = vpop.f32.mrf.mxu0 }
 0x2d1   : > { %v2450_v6 = vpop.f32.mrf.mxu1 }
 0x2d2   : > { %v5707_v25 = vadd.f32 %v2626_v41, %v2538_v5  ;;  %v2451_v4 = vadd.f32 %v2450_v6, %v2361_v17 }
 0x2d7   : > { %v2539_v51 = vpop.f32.mrf.mxu2 }
 0x2d8   : > { %v2540_v7 = vadd.f32 %v2539_v51, %v2451_v4  ;;  %v2628_v56 = vpop.f32.mrf.mxu3  ;;  %v2364_v44 = vpop.f32.mrf.mxu0  ;;  %v6177_v51 = vld [vmem:[#allocation29_spill] sm:$0xff] }
 0x2d9   : > { %v2453_v18 = vpop.f32.mrf.mxu1 }
 0x2da   : > { %v5713_v45 = vadd.f32 %v2628_v56, %v2540_v7  ;;  %v2454_v62 = vadd.f32 %v2453_v18, %v2364_v44  ;;  %v6178_v7 = vld [vmem:[#allocation30_spill] sm:$0xff]  ;;  %v6179_v56 = vld [vmem:[#allocation31_spill] sm:$0xff]  ;;  %v6180_v44 = vld [vmem:[#allocation32_spill] sm:$0xff] }
 0x2db   : > { %2403 = vmatmul.bf16.gmra.mxu0 %v5270_v59  ;;  %2492 = vmatmul.bf16.gmra.mxu1 %v5272_v63  ;;  %v4622_v18 = vld [vmem:[%s5042_s7 + $0x22c] sm:$0xf] }
 0x2dc   : > { %2581 = vmatmul.bf16.gmra.mxu2 %v6173_v38 }
 0x2dd   : > { %2670 = vmatmul.bf16.gmra.mxu3 %v6174_v36 }
 0x2df   : > { %v2542_v46 = vpop.f32.mrf.mxu2 }
 0x2e0   : > { %v2543_v52 = vadd.f32 %v2542_v46, %v2454_v62  ;;  %v2631_v1 = vpop.f32.mrf.mxu3  ;;  %v2366_v5 = vpop.f32.mrf.mxu0  ;;  %v4255_v62 = vld [vmem:[%s5042_s7 + $0x238] sm:$0xf0]  ;;  %v4654_v46 = vld [vmem:[%s5042_s7 + $0x32c] sm:$0xf] }
 0x2e1   : > { %v2455_v41 = vpop.f32.mrf.mxu1 }
 0x2e2   : > { %v5719_v17 = vadd.f32 %v2631_v1, %v2543_v52  ;;  %v2456_v6 = vadd.f32 %v2455_v41, %v2366_v5  ;;  %v4258_v52 = vor.u32 %v4622_v18, %v4255_v62  ;;  %v4383_v1 = vld [vmem:[%s5042_s7 + $0x338] sm:$0xf0] }
 0x2e3   : > { %v4386_v41 = vor.u32 %v4654_v46, %v4383_v1 }
 0x2e4   : > { %6175 = vst [vmem:[#allocation28_spill] sm:$0xff] %v5719_v17  ;;  %2890 = vmatpush.bf16.msrb.mxu2 %v4258_v52 }
 0x2e5   : > { %2979 = vmatpush.bf16.msrb.mxu3 %v4386_v41  ;;  %v6183_v41 = vld [vmem:[#allocation35_spill] sm:$0xff] }
 0x2e7   : > { %v2544_v4 = vpop.f32.mrf.mxu2 }
 0x2e8   : > { %v2545_v27 = vadd.f32 %v2544_v4, %v2456_v6  ;;  %v2633_v19 = vpop.f32.mrf.mxu3  ;;  %v2369_v8 = vpop.f32.mrf.mxu0 }
 0x2e9   : > { %v2458_v3 = vpop.f32.mrf.mxu1 }
 0x2ea   : > { %v5721_v61 = vadd.f32 %v2633_v19, %v2545_v27  ;;  %v2459_v48 = vadd.f32 %v2458_v3, %v2369_v8 }
 0x2eb   : > { %2408 = vmatmul.bf16.gmra.mxu0 %v6177_v51  ;;  %2497 = vmatmul.bf16.gmra.mxu1 %v6178_v7  ;;  %v4590_v7 = vld [vmem:[%s5042_s7 + $0x12c] sm:$0xf]  ;;  %v4127_v51 = vld [vmem:[%s5042_s7 + $0x138] sm:$0xf0] }
 0x2ec   : > { %6176 = vst [vmem:[#allocation33_spill] sm:$0xff] %v5721_v61  ;;  %2586 = vmatmul.bf16.gmra.mxu2 %v6179_v56  ;;  %v3999_v56 = vld [vmem:[%s5042_s7 + $0x38] sm:$0xf0]  ;;  %v4130_v17 = vor.u32 %v4590_v7, %v4127_v51 }
 0x2ed   : > { %2675 = vmatmul.bf16.gmra.mxu3 %v6180_v44  ;;  %v4558_v44 = vld [vmem:[%s5042_s7 + $0x2c] sm:$0xf] }
 0x2ee   : > { %v4002_v61 = vor.u32 %v4558_v44, %v3999_v56  ;;  %2801 = vmatpush.bf16.msrb.mxu1 %v4130_v17 }
 0x2ef   : > { %v2547_v5 = vpop.f32.mrf.mxu2 }
 0x2f0   : > { %v2548_v6 = vadd.f32 %v2547_v5, %v2459_v48  ;;  %v2636_v4 = vpop.f32.mrf.mxu3  ;;  %v2371_v27 = vpop.f32.mrf.mxu0  ;;  %2712 = vmatpush.bf16.msrb.mxu0 %v4002_v61 }
 0x2f1   : > { %v2460_v19 = vpop.f32.mrf.mxu1 }
 0x2f2   : > { %v5731_v8 = vadd.f32 %v2636_v4, %v2548_v6  ;;  %v2461_v3 = vadd.f32 %v2460_v19, %v2371_v27  ;;  %v6184_v6 = vld [vmem:[#allocation36_spill] sm:$0xff]  ;;  %v6185_v4 = vld [vmem:[#allocation37_spill] sm:$0xff]  ;;  %v6186_v27 = vld [vmem:[#allocation38_spill] sm:$0xff] }
 0x2f4   : > { %6181 = vst [vmem:[#allocation34_spill] sm:$0xff] %v5731_v8 }
 0x2f7   : > { %v2549_v18 = vpop.f32.mrf.mxu2 }
 0x2f8   : > { %v2550_v62 = vadd.f32 %v2549_v18, %v2461_v3  ;;  %v2638_v46 = vpop.f32.mrf.mxu3  ;;  %v2374_v48 = vpop.f32.mrf.mxu0 }
 0x2f9   : > { %v2463_v1 = vpop.f32.mrf.mxu1 }
 0x2fa   : > { %v5737_v5 = vadd.f32 %v2638_v46, %v2550_v62  ;;  %v2464_v52 = vadd.f32 %v2463_v1, %v2374_v48 }
 0x2fb   : > { %2413 = vmatmul.bf16.gmra.mxu0 %v6183_v41  ;;  %2502 = vmatmul.bf16.gmra.mxu1 %v6184_v6  ;;  %v6192_v6 = vld [vmem:[#allocation44_spill] sm:$0xff]  ;;  %v4111_v41 = vld [vmem:[%s5042_s7 + $0x118] sm:$0xf0] }
 0x2fc   : > { %6182 = vst [vmem:[#allocation39_spill] sm:$0xff] %v5737_v5  ;;  %2591 = vmatmul.bf16.gmra.mxu2 %v6185_v4  ;;  %v6189_v4 = vld [vmem:[#allocation41_spill] sm:$0xff] }
 0x2fd   : > { %2680 = vmatmul.bf16.gmra.mxu3 %v6186_v27 }
 0x2ff   : > { %v2552_v56 = vpop.f32.mrf.mxu2 }
 0x300   : > { %v2553_v51 = vadd.f32 %v2552_v56, %v2464_v52  ;;  %v2641_v61 = vpop.f32.mrf.mxu3  ;;  %v2376_v17 = vpop.f32.mrf.mxu0  ;;  %v6190_v52 = vld [vmem:[#allocation42_spill] sm:$0xff]  ;;  %v6191_v56 = vld [vmem:[#allocation43_spill] sm:$0xff] }
 0x301   : > { %v2465_v7 = vpop.f32.mrf.mxu1 }
 0x302   : > { %v5743_v44 = vadd.f32 %v2641_v61, %v2553_v51  ;;  %v2466_v19 = vadd.f32 %v2465_v7, %v2376_v17  ;;  %v4618_v51 = vld [vmem:[%s5042_s7 + $0x20c] sm:$0xf]  ;;  %v4239_v61 = vld [vmem:[%s5042_s7 + $0x218] sm:$0xf0] }
 0x303   : > { %v4650_v17 = vld [vmem:[%s5042_s7 + $0x30c] sm:$0xf]  ;;  %v4242_v7 = vor.u32 %v4618_v51, %v4239_v61 }
 0x304   : > { %6187 = vst [vmem:[#allocation40_spill] sm:$0xff] %v5743_v44  ;;  %v4586_v44 = vld [vmem:[%s5042_s7 + $0x10c] sm:$0xf] }
 0x305   : > { %2891 = vmatpush.bf16.msrb.mxu2 %v4242_v7  ;;  %v4114_v8 = vor.u32 %v4586_v44, %v4111_v41 }
 0x307   : > { %v2554_v3 = vpop.f32.mrf.mxu2  ;;  %2802 = vmatpush.bf16.msrb.mxu1 %v4114_v8 }
 0x308   : > { %v2555_v18 = vadd.f32 %v2554_v3, %v2466_v19  ;;  %v2643_v62 = vpop.f32.mrf.mxu3  ;;  %v2379_v46 = vpop.f32.mrf.mxu0  ;;  %v4367_v19 = vld [vmem:[%s5042_s7 + $0x318] sm:$0xf0] }
 0x309   : > { %v2468_v48 = vpop.f32.mrf.mxu1 }
 0x30a   : > { %v5745_v1 = vadd.f32 %v2643_v62, %v2555_v18  ;;  %v2469_v27 = vadd.f32 %v2468_v48, %v2379_v46  ;;  %v4370_v18 = vor.u32 %v4650_v17, %v4367_v19 }
 0x30b   : > { %2418 = vmatmul.bf16.gmra.mxu0 %v6189_v4  ;;  %2507 = vmatmul.bf16.gmra.mxu1 %v6190_v52  ;;  %v3983_v4 = vld [vmem:[%s5042_s7 + $0x18] sm:$0xf0] }
 0x30c   : > { %6188 = vst [vmem:[#allocation45_spill] sm:$0xff] %v5745_v1  ;;  %2596 = vmatmul.bf16.gmra.mxu2 %v6191_v56  ;;  %2980 = vmatpush.bf16.msrb.mxu3 %v4370_v18  ;;  %v4554_v1 = vld [vmem:[%s5042_s7 + $0xc] sm:$0xf]  ;;  %v6194_v18 = vld [vmem:[#allocation47_spill] sm:$0xff] }
 0x30d   : > { %2685 = vmatmul.bf16.gmra.mxu3 %v6192_v6  ;;  %v3986_v5 = vor.u32 %v4554_v1, %v3983_v4 }
 0x30f   : > { %v2557_v3 = vpop.f32.mrf.mxu2  ;;  %2713 = vmatpush.bf16.msrb.mxu0 %v3986_v5 }
 0x310   : > { %v2558_v62 = vadd.f32 %v2557_v3, %v2469_v27  ;;  %v2646_v46 = vpop.f32.mrf.mxu3  ;;  %v2381_v48 = vpop.f32.mrf.mxu0 }
 0x311   : > { %v2470_v52 = vpop.f32.mrf.mxu1 }
 0x312   : > { %v5755_v56 = vadd.f32 %v2646_v46, %v2558_v62  ;;  %v2471_v6 = vadd.f32 %v2470_v52, %v2381_v48  ;;  %v6195_v62 = vld [vmem:[#allocation48_spill] sm:$0xff]  ;;  %v6196_v52 = vld [vmem:[#allocation49_spill] sm:$0xff]  ;;  %v6197_v46 = vld [vmem:[#allocation50_spill] sm:$0xff] }
 0x317   : > { %v2559_v51 = vpop.f32.mrf.mxu2 }
 0x318   : > { %v2560_v61 = vadd.f32 %v2559_v51, %v2471_v6  ;;  %v2648_v17 = vpop.f32.mrf.mxu3  ;;  %v2384_v27 = vpop.f32.mrf.mxu0 }
 0x319   : > { %v2473_v19 = vpop.f32.mrf.mxu1 }
 0x31a   : > { %v5761_v3 = vadd.f32 %v2648_v17, %v2560_v61  ;;  %v2474_v7 = vadd.f32 %v2473_v19, %v2384_v27 }
 0x31b   : > { %2423 = vmatmul.bf16.gmra.mxu0 %v6194_v18  ;;  %2512 = vmatmul.bf16.gmra.mxu1 %v6195_v62 }
 0x31c   : > { %6193 = vst [vmem:[#allocation46_spill] sm:$0xff] %v5761_v3  ;;  %2601 = vmatmul.bf16.gmra.mxu2 %v6196_v52  ;;  %v6200_v3 = vld [vmem:[#allocation53_spill] sm:$0xff]  ;;  %v6201_v52 = vld [vmem:[#allocation54_spill] sm:$0xff] }
 0x31d   : > { %2690 = vmatmul.bf16.gmra.mxu3 %v6197_v46  ;;  %v6202_v46 = vld [vmem:[#allocation55_spill] sm:$0xff] }
 0x31f   : > { %v2562_v4 = vpop.f32.mrf.mxu2 }
 0x320   : > { %v2563_v41 = vadd.f32 %v2562_v4, %v2474_v7  ;;  %v2651_v5 = vpop.f32.mrf.mxu3  ;;  %v2386_v8 = vpop.f32.mrf.mxu0  ;;  %v6203_v7 = vld [vmem:[#allocation56_spill] sm:$0xff] }
 0x321   : > { %v2475_v44 = vpop.f32.mrf.mxu1 }
 0x322   : > { %v5767_v6 = vadd.f32 %v2651_v5, %v2563_v41  ;;  %v2476_v1 = vadd.f32 %v2475_v44, %v2386_v8 }
 0x324   : > { %6198 = vst [vmem:[#allocation51_spill] sm:$0xff] %v5767_v6 }
 0x327   : > { %v2564_v48 = vpop.f32.mrf.mxu2 }
 0x328   : > { %v2565_v51 = vadd.f32 %v2564_v48, %v2476_v1  ;;  %v2653_v61 = vpop.f32.mrf.mxu3  ;;  %v2389_v17 = vpop.f32.mrf.mxu0 }
 0x329   : > { %v2478_v27 = vpop.f32.mrf.mxu1 }
 0x32a   : > { %v5769_v19 = vadd.f32 %v2653_v61, %v2565_v51  ;;  %v2479_v62 = vadd.f32 %v2478_v27, %v2389_v17 }
 0x32b   : > { %2428 = vmatmul.bf16.gmra.mxu0 %v6200_v3  ;;  %2517 = vmatmul.bf16.gmra.mxu1 %v6201_v52 }
 0x32c   : > { %6199 = vst [vmem:[#allocation52_spill] sm:$0xff] %v5769_v19  ;;  %2606 = vmatmul.bf16.gmra.mxu2 %v6202_v46 }
 0x32d   : > { %2695 = vmatmul.bf16.gmra.mxu3 %v6203_v7 }
 0x32f   : > { %v2567_v4 = vpop.f32.mrf.mxu2 }
 0x330   : > { %v2568_v41 = vadd.f32 %v2567_v4, %v2479_v62  ;;  %v2656_v5 = vpop.f32.mrf.mxu3  ;;  %v2391_v8 = vpop.f32.mrf.mxu0 }
 0x331   : > { %v2480_v44 = vpop.f32.mrf.mxu1 }
 0x332   : > { %v5775_v1 = vadd.f32 %v2656_v5, %v2568_v41  ;;  %v2481_v48 = vadd.f32 %v2480_v44, %v2391_v8 }
 0x337   : > { %v2569_v6 = vpop.f32.mrf.mxu2 }
 0x338   : > { %v2570_v51 = vadd.f32 %v2569_v6, %v2481_v48  ;;  %v2658_v61 = vpop.f32.mrf.mxu3  ;;  %v2394_v17 = vpop.f32.mrf.mxu0 }
 0x339   : > { %v2483_v27 = vpop.f32.mrf.mxu1 }
 0x33a   : > { %v5777_v19 = vadd.f32 %v2658_v61, %v2570_v51  ;;  %v2484_v52 = vadd.f32 %v2483_v27, %v2394_v17 }
 0x33b   : > { %2433 = vmatmul.bf16.gmra.mxu0 %v5390_v39  ;;  %2522 = vmatmul.bf16.gmra.mxu1 %v5392_v16 }
 0x33c   : > { %6204 = vst [vmem:[#allocation57_spill] sm:$0xff] %v5777_v19  ;;  %2611 = vmatmul.bf16.gmra.mxu2 %v5394_v28 }
 0x33d   : > { %2700 = vmatmul.bf16.gmra.mxu3 %v5396_v60 }
 0x33f   : > { %v2572_v62 = vpop.f32.mrf.mxu2 }
 0x340   : > { %v2573_v4 = vadd.f32 %v2572_v62, %v2484_v52  ;;  %v2661_v41 = vpop.f32.mrf.mxu3  ;;  %v2396_v5 = vpop.f32.mrf.mxu0  ;;  %v6206_v52 = vld [vmem:[#allocation15_spill] sm:$0xff] }
 0x341   : > { %v2485_v8 = vpop.f32.mrf.mxu1 }
 0x342   : > { %v5783_v6 = vadd.f32 %v2661_v41, %v2573_v4  ;;  %v2486_v44 = vadd.f32 %v2485_v8, %v2396_v5 }
 0x344   : > { %6205 = vst [vmem:[#allocation58_spill] sm:$0xff] %v5783_v6 }
 0x347   : > { %v2574_v48 = vpop.f32.mrf.mxu2 }
 0x348   : > { %v2575_v51 = vadd.f32 %v2574_v48, %v2486_v44  ;;  %v2663_v61 = vpop.f32.mrf.mxu3  ;;  %v2399_v17 = vpop.f32.mrf.mxu0 }
 0x349   : > { %v2488_v27 = vpop.f32.mrf.mxu1 }
 0x34a   : > { %v5785_v19 = vadd.f32 %v2663_v61, %v2575_v51  ;;  %v2489_v16 = vadd.f32 %v2488_v27, %v2399_v17 }
 0x34b   : > { %2714 = vmatmul.bf16.vlgmr.msrb.gmra.mxu0 %v6154_v10  ;;  %2803 = vmatmul.bf16.vlgmr.msrb.gmra.mxu1 %v6156_v30 }
 0x34c   : > { %2892 = vmatmul.bf16.vlgmr.msrb.gmra.mxu2 %v6157_v29 }
 0x34d   : > { %2981 = vmatmul.bf16.vlgmr.msrb.gmra.mxu3 %v6206_v52 }
 0x34f   : > { %v2577_v62 = vpop.f32.mrf.mxu2 }
 0x350   : > { %v2578_v4 = vadd.f32 %v2577_v62, %v2489_v16  ;;  %v2666_v41 = vpop.f32.mrf.mxu3  ;;  %v2401_v5 = vpop.f32.mrf.mxu0 }
 0x351   : > { %v2490_v8 = vpop.f32.mrf.mxu1 }
 0x352   : > { %v5791_v44 = vadd.f32 %v2666_v41, %v2578_v4  ;;  %v2491_v48 = vadd.f32 %v2490_v8, %v2401_v5 }
 0x357   : > { %v2579_v6 = vpop.f32.mrf.mxu2 }
 0x358   : > { %v2580_v51 = vadd.f32 %v2579_v6, %v2491_v48  ;;  %v2668_v61 = vpop.f32.mrf.mxu3  ;;  %v2404_v17 = vpop.f32.mrf.mxu0 }
 0x359   : > { %v2493_v27 = vpop.f32.mrf.mxu1 }
 0x35a   : > { %v5793_v10 = vadd.f32 %v2668_v61, %v2580_v51  ;;  %v2494_v30 = vadd.f32 %v2493_v27, %v2404_v17 }
 0x35b   : > { %2719 = vmatmul.bf16.gmra.mxu0 %v5140_v12  ;;  %2808 = vmatmul.bf16.gmra.mxu1 %v5142_v13 }
 0x35c   : > { %2897 = vmatmul.bf16.gmra.mxu2 %v5144_v14 }
 0x35d   : > { %2986 = vmatmul.bf16.gmra.mxu3 %v5146_v15 }
 0x35f   : > { %v2582_v16 = vpop.f32.mrf.mxu2 }
 0x360   : > { %v2583_v29 = vadd.f32 %v2582_v16, %v2494_v30  ;;  %v2671_v52 = vpop.f32.mrf.mxu3  ;;  %v2406_v62 = vpop.f32.mrf.mxu0 }
 0x361   : > { %v2495_v4 = vpop.f32.mrf.mxu1 }
 0x362   : > { %v5799_v6 = vadd.f32 %v2671_v52, %v2583_v29  ;;  %v2496_v41 = vadd.f32 %v2495_v4, %v2406_v62 }
 0x367   : > { %v2584_v5 = vpop.f32.mrf.mxu2 }
 0x368   : > { %v2585_v8 = vadd.f32 %v2584_v5, %v2496_v41  ;;  %v2673_v48 = vpop.f32.mrf.mxu3  ;;  %v2409_v51 = vpop.f32.mrf.mxu0 }
 0x369   : > { %v2498_v61 = vpop.f32.mrf.mxu1 }
 0x36a   : > { %v5801_v12 = vadd.f32 %v2673_v48, %v2585_v8  ;;  %v2499_v13 = vadd.f32 %v2498_v61, %v2409_v51 }
 0x36b   : > { %2724 = vmatmul.bf16.gmra.mxu0 %v5152_v24  ;;  %2813 = vmatmul.bf16.gmra.mxu1 %v6160_v11 }
 0x36c   : > { %2902 = vmatmul.bf16.gmra.mxu2 %v6161_v37 }
 0x36d   : > { %2991 = vmatmul.bf16.gmra.mxu3 %v6162_v53 }
 0x36f   : > { %v2587_v14 = vpop.f32.mrf.mxu2 }
 0x370   : > { %v2588_v15 = vadd.f32 %v2587_v14, %v2499_v13  ;;  %v2676_v17 = vpop.f32.mrf.mxu3  ;;  %v2411_v27 = vpop.f32.mrf.mxu0 }
 0x371   : > { %v2500_v30 = vpop.f32.mrf.mxu1 }
 0x372   : > { %v5807_v16 = vadd.f32 %v2676_v17, %v2588_v15  ;;  %v2501_v29 = vadd.f32 %v2500_v30, %v2411_v27 }
 0x377   : > { %v2589_v52 = vpop.f32.mrf.mxu2 }
 0x378   : > { %v2590_v62 = vadd.f32 %v2589_v52, %v2501_v29  ;;  %v2678_v4 = vpop.f32.mrf.mxu3  ;;  %v2414_v41 = vpop.f32.mrf.mxu0 }
 0x379   : > { %v2503_v5 = vpop.f32.mrf.mxu1 }
 0x37a   : > { %v5809_v24 = vadd.f32 %v2678_v4, %v2590_v62  ;;  %v2504_v11 = vadd.f32 %v2503_v5, %v2414_v41 }
 0x37b   : > { %2729 = vmatmul.bf16.gmra.mxu0 %v5172_v49  ;;  %2818 = vmatmul.bf16.gmra.mxu1 %v5174_v50 }
 0x37c   : > { %2907 = vmatmul.bf16.gmra.mxu2 %v5176_v54 }
 0x37d   : > { %2996 = vmatmul.bf16.gmra.mxu3 %v5178_v55 }
 0x37f   : > { %v2592_v37 = vpop.f32.mrf.mxu2 }
 0x380   : > { %v2593_v53 = vadd.f32 %v2592_v37, %v2504_v11  ;;  %v2681_v8 = vpop.f32.mrf.mxu3  ;;  %v2416_v48 = vpop.f32.mrf.mxu0 }
 0x381   : > { %v2505_v51 = vpop.f32.mrf.mxu1 }
 0x382   : > { %v5815_v61 = vadd.f32 %v2681_v8, %v2593_v53  ;;  %v2506_v13 = vadd.f32 %v2505_v51, %v2416_v48 }
 0x387   : > { %v2594_v14 = vpop.f32.mrf.mxu2 }
 0x388   : > { %v2595_v15 = vadd.f32 %v2594_v14, %v2506_v13  ;;  %v2683_v17 = vpop.f32.mrf.mxu3  ;;  %v2419_v27 = vpop.f32.mrf.mxu0 }
 0x389   : > { %v2508_v30 = vpop.f32.mrf.mxu1 }
 0x38a   : > { %v5817_v49 = vadd.f32 %v2683_v17, %v2595_v15  ;;  %v2509_v50 = vadd.f32 %v2508_v30, %v2419_v27 }
 0x38b   : > { %2734 = vmatmul.bf16.gmra.mxu0 %v5184_v0  ;;  %2823 = vmatmul.bf16.gmra.mxu1 %v6164_v9 }
 0x38c   : > { %2912 = vmatmul.bf16.gmra.mxu2 %v6165_v47 }
 0x38d   : > { %3001 = vmatmul.bf16.gmra.mxu3 %v6166_v31 }
 0x38f   : > { %v2597_v54 = vpop.f32.mrf.mxu2 }
 0x390   : > { %v2598_v55 = vadd.f32 %v2597_v54, %v2509_v50  ;;  %v2686_v29 = vpop.f32.mrf.mxu3  ;;  %v2421_v52 = vpop.f32.mrf.mxu0 }
 0x391   : > { %v2510_v62 = vpop.f32.mrf.mxu1 }
 0x392   : > { %v5823_v4 = vadd.f32 %v2686_v29, %v2598_v55  ;;  %v2511_v41 = vadd.f32 %v2510_v62, %v2421_v52 }
 0x397   : > { %v2599_v5 = vpop.f32.mrf.mxu2 }
 0x398   : > { %v2600_v11 = vadd.f32 %v2599_v5, %v2511_v41  ;;  %v2688_v37 = vpop.f32.mrf.mxu3  ;;  %v2424_v53 = vpop.f32.mrf.mxu0 }
 0x399   : > { %v2513_v8 = vpop.f32.mrf.mxu1 }
 0x39a   : > { %v5825_v0 = vadd.f32 %v2688_v37, %v2600_v11  ;;  %v2514_v9 = vadd.f32 %v2513_v8, %v2424_v53 }
 0x39b   : > { %2739 = vmatmul.bf16.gmra.mxu0 %v5204_v32  ;;  %2828 = vmatmul.bf16.gmra.mxu1 %v5206_v33 }
 0x39c   : > { %2917 = vmatmul.bf16.gmra.mxu2 %v5208_v34  ;;  %v6207_v34 = vld [vmem:[#allocation25_spill] sm:$0xff] }
 0x39d   : > { %3006 = vmatmul.bf16.gmra.mxu3 %v5210_v35 }
 0x39f   : > { %v2602_v47 = vpop.f32.mrf.mxu2 }
 0x3a0   : > { %v2603_v31 = vadd.f32 %v2602_v47, %v2514_v9  ;;  %v2691_v48 = vpop.f32.mrf.mxu3  ;;  %v2426_v51 = vpop.f32.mrf.mxu0 }
 0x3a1   : > { %v2515_v13 = vpop.f32.mrf.mxu1 }
 0x3a2   : > { %v5831_v14 = vadd.f32 %v2691_v48, %v2603_v31  ;;  %v2516_v15 = vadd.f32 %v2515_v13, %v2426_v51 }
 0x3a7   : > { %v2604_v17 = vpop.f32.mrf.mxu2 }
 0x3a8   : > { %v2605_v27 = vadd.f32 %v2604_v17, %v2516_v15  ;;  %v2693_v30 = vpop.f32.mrf.mxu3  ;;  %v2429_v50 = vpop.f32.mrf.mxu0 }
 0x3a9   : > { %v2518_v54 = vpop.f32.mrf.mxu1 }
 0x3aa   : > { %v5833_v32 = vadd.f32 %v2693_v30, %v2605_v27  ;;  %v2519_v33 = vadd.f32 %v2518_v54, %v2429_v50 }
 0x3ab   : > { %2744 = vmatmul.bf16.gmra.mxu0 %v6168_v26  ;;  %2833 = vmatmul.bf16.gmra.mxu1 %v6170_v58 }
 0x3ac   : > { %2922 = vmatmul.bf16.gmra.mxu2 %v6171_v2 }
 0x3ad   : > { %3011 = vmatmul.bf16.gmra.mxu3 %v6207_v34 }
 0x3af   : > { %v2607_v35 = vpop.f32.mrf.mxu2 }
 0x3b0   : > { %v2608_v55 = vadd.f32 %v2607_v35, %v2519_v33  ;;  %v2696_v29 = vpop.f32.mrf.mxu3  ;;  %v2431_v52 = vpop.f32.mrf.mxu0 }
 0x3b1   : > { %v2520_v62 = vpop.f32.mrf.mxu1 }
 0x3b2   : > { %v5839_v41 = vadd.f32 %v2696_v29, %v2608_v55  ;;  %v2521_v5 = vadd.f32 %v2520_v62, %v2431_v52 }
 0x3b7   : > { %v2609_v11 = vpop.f32.mrf.mxu2 }
 0x3b8   : > { %v2610_v37 = vadd.f32 %v2609_v11, %v2521_v5  ;;  %v2698_v53 = vpop.f32.mrf.mxu3  ;;  %v2434_v8 = vpop.f32.mrf.mxu0 }
 0x3b9   : > { %v2523_v9 = vpop.f32.mrf.mxu1 }
 0x3ba   : > { %v5841_v26 = vadd.f32 %v2698_v53, %v2610_v37  ;;  %v2524_v58 = vadd.f32 %v2523_v9, %v2434_v8 }
 0x3bb   : > { %2749 = vmatmul.bf16.gmra.mxu0 %v5236_v20  ;;  %2838 = vmatmul.bf16.gmra.mxu1 %v5238_v21 }
 0x3bc   : > { %2927 = vmatmul.bf16.gmra.mxu2 %v5240_v22 }
 0x3bd   : > { %3016 = vmatmul.bf16.gmra.mxu3 %v5242_v23 }
 0x3bf   : > { %v2612_v2 = vpop.f32.mrf.mxu2 }
 0x3c0   : > { %v2613_v47 = vadd.f32 %v2612_v2, %v2524_v58  ;;  %v2701_v31 = vpop.f32.mrf.mxu3  ;;  %v2436_v48 = vpop.f32.mrf.mxu0 }
 0x3c1   : > { %v2525_v51 = vpop.f32.mrf.mxu1 }
 0x3c2   : > { %v5847_v13 = vadd.f32 %v2701_v31, %v2613_v47  ;;  %v2526_v15 = vadd.f32 %v2525_v51, %v2436_v48  ;;  %v6208_v47 = vld [vmem:[#allocation28_spill] sm:$0xff] }
 0x3c7   : > { %v2614_v17 = vpop.f32.mrf.mxu2 }
 0x3c8   : > { %v2615_v27 = vadd.f32 %v2614_v17, %v2526_v15  ;;  %v2703_v30 = vpop.f32.mrf.mxu3  ;;  %v2715_v50 = vpop.f32.mrf.mxu0  ;;  %v6210_v17 = vld [vmem:[#allocation33_spill] sm:$0xff] }
 0x3c9   : > { %v2804_v20 = vpop.f32.mrf.mxu1 }
 0x3ca   : > { %v5849_v54 = vadd.f32 %v2703_v30, %v2615_v27  ;;  %v2805_v21 = vadd.f32 %v2804_v20, %v2715_v50  ;;  %v6211_v50 = vld [vmem:[#allocation30_spill] sm:$0xff]  ;;  %v6212_v20 = vld [vmem:[#allocation31_spill] sm:$0xff] }
 0x3cb   : > { %2754 = vmatmul.bf16.gmra.mxu0 %v5248_v40  ;;  %2843 = vmatmul.bf16.gmra.mxu1 %v5250_v42 }
 0x3cc   : > { %2932 = vmatmul.bf16.gmra.mxu2 %v5252_v43 }
 0x3cd   : > { %3021 = vmatmul.bf16.gmra.mxu3 %v5254_v57 }
 0x3cf   : > { %v2893_v22 = vpop.f32.mrf.mxu2 }
 0x3d0   : > { %v2894_v23 = vadd.f32 %v2893_v22, %v2805_v21  ;;  %v2982_v33 = vpop.f32.mrf.mxu3  ;;  %v2717_v34 = vpop.f32.mrf.mxu0  ;;  %v6213_v21 = vld [vmem:[#allocation32_spill] sm:$0xff] }
 0x3d1   : > { %v2806_v35 = vpop.f32.mrf.mxu1 }
 0x3d2   : > { %v2983_v55 = vadd.f32 %v2982_v33, %v2894_v23  ;;  %v2807_v52 = vadd.f32 %v2806_v35, %v2717_v34 }
 0x3d4   : > { %v3450_v29 = vpack.c.bf16 %v2983_v55, %v5707_v25 }
 0x3d6   : > { %3514 = vst [vmem:[%s5514_s19 + $0x8] sm:$0xff] %v3450_v29  ;;  %v6214_v29 = vld [vmem:[#allocation34_spill] sm:$0xff] }
 0x3d7   : > { %v2895_v62 = vpop.f32.mrf.mxu2 }
 0x3d8   : > { %v2896_v40 = vadd.f32 %v2895_v62, %v2807_v52  ;;  %v2984_v5 = vpop.f32.mrf.mxu3  ;;  %v2720_v11 = vpop.f32.mrf.mxu0 }
 0x3d9   : > { %v2809_v42 = vpop.f32.mrf.mxu1 }
 0x3da   : > { %v2985_v43 = vadd.f32 %v2984_v5, %v2896_v40  ;;  %v2810_v37 = vadd.f32 %v2809_v42, %v2720_v11 }
 0x3db   : > { %2759 = vmatmul.bf16.gmra.mxu0 %v5270_v59  ;;  %2848 = vmatmul.bf16.gmra.mxu1 %v5272_v63 }
 0x3dc   : > { %v3452_v57 = vpack.c.bf16 %v2985_v43, %v5713_v45  ;;  %2937 = vmatmul.bf16.gmra.mxu2 %v6173_v38 }
 0x3dd   : > { %3026 = vmatmul.bf16.gmra.mxu3 %v6174_v36  ;;  %v6209_v36 = vld [vmem:[#allocation29_spill] sm:$0xff] }
 0x3de   : > { %3516 = vst [vmem:[%s5514_s19 + $0x18] sm:$0xff] %v3452_v57 }
 0x3df   : > { %v2898_v25 = vpop.f32.mrf.mxu2 }
 0x3e0   : > { %v2899_v53 = vadd.f32 %v2898_v25, %v2810_v37  ;;  %v2987_v8 = vpop.f32.mrf.mxu3  ;;  %v2722_v9 = vpop.f32.mrf.mxu0  ;;  %v6215_v37 = vld [vmem:[#allocation35_spill] sm:$0xff] }
 0x3e1   : > { %v2811_v58 = vpop.f32.mrf.mxu1  ;;  %v6216_v25 = vld [vmem:[#allocation39_spill] sm:$0xff] }
 0x3e2   : > { %v2988_v2 = vadd.f32 %v2987_v8, %v2899_v53  ;;  %v2812_v59 = vadd.f32 %v2811_v58, %v2722_v9  ;;  %v6217_v9 = vld [vmem:[#allocation36_spill] sm:$0xff]  ;;  %v6218_v58 = vld [vmem:[#allocation37_spill] sm:$0xff] }
 0x3e4   : > { %v3454_v31 = vpack.c.bf16 %v2988_v2, %v6208_v47  ;;  %v6219_v2 = vld [vmem:[#allocation38_spill] sm:$0xff] }
 0x3e6   : > { %3518 = vst [vmem:[%s5514_s19 + $0x28] sm:$0xff] %v3454_v31 }
 0x3e7   : > { %v2900_v45 = vpop.f32.mrf.mxu2 }
 0x3e8   : > { %v2901_v48 = vadd.f32 %v2900_v45, %v2812_v59  ;;  %v2989_v51 = vpop.f32.mrf.mxu3  ;;  %v2725_v63 = vpop.f32.mrf.mxu0 }
 0x3e9   : > { %v2814_v15 = vpop.f32.mrf.mxu1 }
 0x3ea   : > { %v2990_v38 = vadd.f32 %v2989_v51, %v2901_v48  ;;  %v2815_v30 = vadd.f32 %v2814_v15, %v2725_v63  ;;  %v6220_v63 = vld [vmem:[#allocation40_spill] sm:$0xff] }
 0x3eb   : > { %2764 = vmatmul.bf16.gmra.mxu0 %v6209_v36  ;;  %2853 = vmatmul.bf16.gmra.mxu1 %v6211_v50 }
 0x3ec   : > { %v3456_v27 = vpack.c.bf16 %v2990_v38, %v6210_v17  ;;  %2942 = vmatmul.bf16.gmra.mxu2 %v6212_v20 }
 0x3ed   : > { %3031 = vmatmul.bf16.gmra.mxu3 %v6213_v21  ;;  %v6221_v21 = vld [vmem:[#allocation41_spill] sm:$0xff] }
 0x3ee   : > { %3520 = vst [vmem:[%s5514_s19 + $0x38] sm:$0xff] %v3456_v27 }
 0x3ef   : > { %v2903_v22 = vpop.f32.mrf.mxu2 }
 0x3f0   : > { %v2904_v23 = vadd.f32 %v2903_v22, %v2815_v30  ;;  %v2992_v33 = vpop.f32.mrf.mxu3  ;;  %v2727_v34 = vpop.f32.mrf.mxu0  ;;  %v6222_v22 = vld [vmem:[#allocation45_spill] sm:$0xff] }
 0x3f1   : > { %v2816_v35 = vpop.f32.mrf.mxu1 }
 0x3f2   : > { %v2993_v55 = vadd.f32 %v2992_v33, %v2904_v23  ;;  %v2817_v62 = vadd.f32 %v2816_v35, %v2727_v34  ;;  %v6223_v34 = vld [vmem:[#allocation42_spill] sm:$0xff]  ;;  %v6224_v35 = vld [vmem:[#allocation43_spill] sm:$0xff] }
 0x3f4   : > { %v3458_v52 = vpack.c.bf16 %v2993_v55, %v6214_v29  ;;  %v6225_v55 = vld [vmem:[#allocation44_spill] sm:$0xff] }
 0x3f6   : > { %3522 = vst [vmem:[%s5514_s19 + $0x48] sm:$0xff] %v3458_v52 }
 0x3f7   : > { %v2905_v40 = vpop.f32.mrf.mxu2 }
 0x3f8   : > { %v2906_v5 = vadd.f32 %v2905_v40, %v2817_v62  ;;  %v2994_v11 = vpop.f32.mrf.mxu3  ;;  %v2730_v42 = vpop.f32.mrf.mxu0 }
 0x3f9   : > { %v2819_v43 = vpop.f32.mrf.mxu1 }
 0x3fa   : > { %v2995_v57 = vadd.f32 %v2994_v11, %v2906_v5  ;;  %v2820_v8 = vadd.f32 %v2819_v43, %v2730_v42 }
 0x3fb   : > { %2769 = vmatmul.bf16.gmra.mxu0 %v6215_v37  ;;  %2858 = vmatmul.bf16.gmra.mxu1 %v6217_v9 }
 0x3fc   : > { %v3460_v53 = vpack.c.bf16 %v2995_v57, %v6216_v25  ;;  %2947 = vmatmul.bf16.gmra.mxu2 %v6218_v58  ;;  %v6226_v58 = vld [vmem:[#allocation46_spill] sm:$0xff] }
 0x3fd   : > { %3036 = vmatmul.bf16.gmra.mxu3 %v6219_v2 }
 0x3fe   : > { %3524 = vst [vmem:[%s5514_s19 + $0x58] sm:$0xff] %v3460_v53 }
 0x3ff   : > { %v2908_v47 = vpop.f32.mrf.mxu2 }
 0x400   : > { %v2909_v31 = vadd.f32 %v2908_v47, %v2820_v8  ;;  %v2997_v59 = vpop.f32.mrf.mxu3  ;;  %v2732_v45 = vpop.f32.mrf.mxu0 }
 0x401   : > { %v2821_v48 = vpop.f32.mrf.mxu1 }
 0x402   : > { %v2998_v51 = vadd.f32 %v2997_v59, %v2909_v31  ;;  %v2822_v38 = vadd.f32 %v2821_v48, %v2732_v45  ;;  %v6227_v31 = vld [vmem:[#allocation48_spill] sm:$0xff]  ;;  %v6228_v59 = vld [vmem:[#allocation49_spill] sm:$0xff]  ;;  %v6229_v45 = vld [vmem:[#allocation50_spill] sm:$0xff] }
 0x404   : > { %v3462_v15 = vpack.c.bf16 %v2998_v51, %v6220_v63 }
 0x406   : > { %3526 = vst [vmem:[%s5514_s19 + $0x68] sm:$0xff] %v3462_v15 }
 0x407   : > { %v2910_v36 = vpop.f32.mrf.mxu2 }
 0x408   : > { %v2911_v17 = vadd.f32 %v2910_v36, %v2822_v38  ;;  %v2999_v27 = vpop.f32.mrf.mxu3  ;;  %v2735_v30 = vpop.f32.mrf.mxu0  ;;  %v6230_v36 = vld [vmem:[#allocation51_spill] sm:$0xff] }
 0x409   : > { %v2824_v50 = vpop.f32.mrf.mxu1 }
 0x40a   : > { %v3000_v20 = vadd.f32 %v2999_v27, %v2911_v17  ;;  %v2825_v33 = vadd.f32 %v2824_v50, %v2735_v30 }
 0x40b   : > { %2774 = vmatmul.bf16.gmra.mxu0 %v6221_v21  ;;  %2863 = vmatmul.bf16.gmra.mxu1 %v6223_v34 }
 0x40c   : > { %v3464_v23 = vpack.c.bf16 %v3000_v20, %v6222_v22  ;;  %2952 = vmatmul.bf16.gmra.mxu2 %v6224_v35  ;;  %v6232_v35 = vld [vmem:[#allocation54_spill] sm:$0xff] }
 0x40d   : > { %3041 = vmatmul.bf16.gmra.mxu3 %v6225_v55 }
 0x40e   : > { %3528 = vst [vmem:[%s5514_s19 + $0x78] sm:$0xff] %v3464_v23  ;;  %v6231_v23 = vld [vmem:[#allocation52_spill] sm:$0xff] }
 0x40f   : > { %v2913_v29 = vpop.f32.mrf.mxu2 }
 0x410   : > { %v2914_v52 = vadd.f32 %v2913_v29, %v2825_v33  ;;  %v3002_v62 = vpop.f32.mrf.mxu3  ;;  %v2737_v40 = vpop.f32.mrf.mxu0 }
 0x411   : > { %v2826_v5 = vpop.f32.mrf.mxu1 }
 0x412   : > { %v3003_v11 = vadd.f32 %v3002_v62, %v2914_v52  ;;  %v2827_v43 = vadd.f32 %v2826_v5, %v2737_v40 }
 0x414   : > { %v3466_v42 = vpack.c.bf16 %v3003_v11, %v5755_v56 }
 0x416   : > { %3530 = vst [vmem:[%s5514_s19 + $0x88] sm:$0xff] %v3466_v42 }
 0x417   : > { %v2915_v57 = vpop.f32.mrf.mxu2 }
 0x418   : > { %v2916_v37 = vadd.f32 %v2915_v57, %v2827_v43  ;;  %v3004_v25 = vpop.f32.mrf.mxu3  ;;  %v2740_v53 = vpop.f32.mrf.mxu0 }
 0x419   : > { %v2829_v8 = vpop.f32.mrf.mxu1 }
 0x41a   : > { %v3005_v9 = vadd.f32 %v3004_v25, %v2916_v37  ;;  %v2830_v47 = vadd.f32 %v2829_v8, %v2740_v53 }
 0x41b   : > { %2779 = vmatmul.bf16.gmra.mxu0 %v6194_v18  ;;  %2868 = vmatmul.bf16.gmra.mxu1 %v6227_v31 }
 0x41c   : > { %v3468_v2 = vpack.c.bf16 %v3005_v9, %v6226_v58  ;;  %2957 = vmatmul.bf16.gmra.mxu2 %v6228_v59  ;;  %v6234_v9 = vld [vmem:[#allocation59_spill] sm:$0xff] }
 0x41d   : > { %3046 = vmatmul.bf16.gmra.mxu3 %v6229_v45  ;;  %v6235_v45 = vld [vmem:[#allocation58_spill] sm:$0xff] }
 0x41e   : > { %3532 = vst [vmem:[%s5514_s19 + $0x98] sm:$0xff] %v3468_v2 }
 0x41f   : > { %v2918_v56 = vpop.f32.mrf.mxu2 }
 0x420   : > { %v2919_v48 = vadd.f32 %v2918_v56, %v2830_v47  ;;  %v3007_v51 = vpop.f32.mrf.mxu3  ;;  %v2742_v63 = vpop.f32.mrf.mxu0 }
 0x421   : > { %v2831_v15 = vpop.f32.mrf.mxu1 }
 0x422   : > { %v3008_v38 = vadd.f32 %v3007_v51, %v2919_v48  ;;  %v2832_v18 = vadd.f32 %v2831_v15, %v2742_v63 }
 0x424   : > { %v3470_v17 = vpack.c.bf16 %v3008_v38, %v6230_v36 }
 0x426   : > { %3534 = vst [vmem:[%s5514_s19 + $0xa8] sm:$0xff] %v3470_v17 }
 0x427   : > { %v2920_v27 = vpop.f32.mrf.mxu2 }
 0x428   : > { %v2921_v30 = vadd.f32 %v2920_v27, %v2832_v18  ;;  %v3009_v50 = vpop.f32.mrf.mxu3  ;;  %v2745_v20 = vpop.f32.mrf.mxu0 }
 0x429   : > { %v2834_v21 = vpop.f32.mrf.mxu1 }
 0x42a   : > { %v3010_v22 = vadd.f32 %v3009_v50, %v2921_v30  ;;  %v2835_v34 = vadd.f32 %v2834_v21, %v2745_v20 }
 0x42b   : > { %2784 = vmatmul.bf16.gmra.mxu0 %v6200_v3  ;;  %2873 = vmatmul.bf16.gmra.mxu1 %v6232_v35 }
 0x42c   : > { %v3472_v33 = vpack.c.bf16 %v3010_v22, %v6231_v23  ;;  %2962 = vmatmul.bf16.gmra.mxu2 %v6202_v46 }
 0x42d   : > { %3051 = vmatmul.bf16.gmra.mxu3 %v6203_v7  ;;  %v6233_v7 = vld [vmem:[#allocation57_spill] sm:$0xff] }
 0x42e   : > { %3536 = vst [vmem:[%s5514_s19 + $0xb8] sm:$0xff] %v3472_v33 }
 0x42f   : > { %v2923_v55 = vpop.f32.mrf.mxu2 }
 0x430   : > { %v2924_v29 = vadd.f32 %v2923_v55, %v2835_v34  ;;  %v3012_v52 = vpop.f32.mrf.mxu3  ;;  %v2747_v62 = vpop.f32.mrf.mxu0 }
 0x431   : > { %v2836_v40 = vpop.f32.mrf.mxu1 }
 0x432   : > { %v3013_v5 = vadd.f32 %v3012_v52, %v2924_v29  ;;  %v2837_v3 = vadd.f32 %v2836_v40, %v2747_v62 }
 0x434   : > { %v3474_v11 = vpack.c.bf16 %v3013_v5, %v5775_v1 }
 0x436   : > { %3538 = vst [vmem:[%s5514_s19 + $0xc8] sm:$0xff] %v3474_v11 }
 0x437   : > { %v2925_v42 = vpop.f32.mrf.mxu2 }
 0x438   : > { %v2926_v43 = vadd.f32 %v2925_v42, %v2837_v3  ;;  %v3014_v57 = vpop.f32.mrf.mxu3  ;;  %v2750_v37 = vpop.f32.mrf.mxu0 }
 0x439   : > { %v2839_v25 = vpop.f32.mrf.mxu1 }
 0x43a   : > { %v3015_v46 = vadd.f32 %v3014_v57, %v2926_v43  ;;  %v2840_v8 = vadd.f32 %v2839_v25, %v2750_v37 }
 0x43b   : > { %2789 = vmatmul.bf16.gmra.mxu0 %v5390_v39  ;;  %2878 = vmatmul.bf16.gmra.mxu1 %v6234_v9 }
 0x43c   : > { %v3476_v53 = vpack.c.bf16 %v3015_v46, %v6233_v7  ;;  %2967 = vmatmul.bf16.gmra.mxu2 %v5394_v28 }
 0x43d   : > { %3056 = vmatmul.bf16.gmra.mxu3 %v5396_v60 }
 0x43e   : > { %3540 = vst [vmem:[%s5514_s19 + $0xd8] sm:$0xff] %v3476_v53 }
 0x43f   : > { %v2928_v1 = vpop.f32.mrf.mxu2 }
 0x440   : > { %v2929_v58 = vadd.f32 %v2928_v1, %v2840_v8  ;;  %v3017_v2 = vpop.f32.mrf.mxu3  ;;  %v2752_v47 = vpop.f32.mrf.mxu0 }
 0x441   : > { %v2841_v31 = vpop.f32.mrf.mxu1 }
 0x442   : > { %v3018_v59 = vadd.f32 %v3017_v2, %v2929_v58  ;;  %v2842_v39 = vadd.f32 %v2841_v31, %v2752_v47 }
 0x444   : > { %v3478_v56 = vpack.c.bf16 %v3018_v59, %v6235_v45 }
 0x446   : > { %3542 = vst [vmem:[%s5514_s19 + $0xe8] sm:$0xff] %v3478_v56 }
 0x447   : > { %v2930_v48 = vpop.f32.mrf.mxu2 }
 0x448   : > { %v2931_v51 = vadd.f32 %v2930_v48, %v2842_v39  ;;  %v3019_v63 = vpop.f32.mrf.mxu3  ;;  %v2755_v15 = vpop.f32.mrf.mxu0 }
 0x449   : > { %v2844_v28 = vpop.f32.mrf.mxu1 }
 0x44a   : > { %v3020_v38 = vadd.f32 %v3019_v63, %v2931_v51  ;;  %v2845_v36 = vadd.f32 %v2844_v28, %v2755_v15 }
 0x44c   : > { %v3480_v60 = vpack.c.bf16 %v3020_v38, %v5785_v19 }
 0x44e   : > { %3544 = vst [vmem:[%s5514_s19 + $0xf8] sm:$0xff] %v3480_v60 }
 0x44f   : > { %v2933_v17 = vpop.f32.mrf.mxu2 }
 0x450   : > { %v2934_v18 = vadd.f32 %v2933_v17, %v2845_v36  ;;  %v3022_v27 = vpop.f32.mrf.mxu3  ;;  %v2757_v30 = vpop.f32.mrf.mxu0 }
 0x451   : > { %v2846_v50 = vpop.f32.mrf.mxu1 }
 0x452   : > { %v3023_v20 = vadd.f32 %v3022_v27, %v2934_v18  ;;  %v2847_v22 = vadd.f32 %v2846_v50, %v2757_v30 }
 0x454   : > { %v3482_v21 = vpack.c.bf16 %v3023_v20, %v5791_v44 }
 0x456   : > { %3546 = vst [vmem:[%s5514_s19 + $0x108] sm:$0xff] %v3482_v21 }
 0x457   : > { %v2935_v23 = vpop.f32.mrf.mxu2 }
 0x458   : > { %v2936_v33 = vadd.f32 %v2935_v23, %v2847_v22  ;;  %v3024_v34 = vpop.f32.mrf.mxu3  ;;  %v2760_v35 = vpop.f32.mrf.mxu0 }
 0x459   : > { %v2849_v55 = vpop.f32.mrf.mxu1 }
 0x45a   : > { %v3025_v19 = vadd.f32 %v3024_v34, %v2936_v33  ;;  %v2850_v52 = vadd.f32 %v2849_v55, %v2760_v35 }
 0x45c   : > { %v3484_v29 = vpack.c.bf16 %v3025_v19, %v5793_v10 }
 0x45e   : > { %3548 = vst [vmem:[%s5514_s19 + $0x118] sm:$0xff] %v3484_v29 }
 0x45f   : > { %v2938_v62 = vpop.f32.mrf.mxu2 }
 0x460   : > { %v2939_v40 = vadd.f32 %v2938_v62, %v2850_v52  ;;  %v3027_v5 = vpop.f32.mrf.mxu3  ;;  %v2762_v11 = vpop.f32.mrf.mxu0 }
 0x461   : > { %v2851_v3 = vpop.f32.mrf.mxu1 }
 0x462   : > { %v3028_v44 = vadd.f32 %v3027_v5, %v2939_v40  ;;  %v2852_v43 = vadd.f32 %v2851_v3, %v2762_v11 }
 0x464   : > { %v3486_v42 = vpack.c.bf16 %v3028_v44, %v5799_v6 }
 0x466   : > { %3550 = vst [vmem:[%s5514_s19 + $0x128] sm:$0xff] %v3486_v42 }
 0x467   : > { %v2940_v57 = vpop.f32.mrf.mxu2 }
 0x468   : > { %v2941_v37 = vadd.f32 %v2940_v57, %v2852_v43  ;;  %v3029_v25 = vpop.f32.mrf.mxu3  ;;  %v2765_v46 = vpop.f32.mrf.mxu0 }
 0x469   : > { %v2854_v7 = vpop.f32.mrf.mxu1 }
 0x46a   : > { %v3030_v10 = vadd.f32 %v3029_v25, %v2941_v37  ;;  %v2855_v8 = vadd.f32 %v2854_v7, %v2765_v46 }
 0x46c   : > { %v3488_v53 = vpack.c.bf16 %v3030_v10, %v5801_v12 }
 0x46e   : > { %3552 = vst [vmem:[%s5514_s19 + $0x138] sm:$0xff] %v3488_v53 }
 0x46f   : > { %v2943_v9 = vpop.f32.mrf.mxu2 }
 0x470   : > { %v2944_v1 = vadd.f32 %v2943_v9, %v2855_v8  ;;  %v3032_v58 = vpop.f32.mrf.mxu3  ;;  %v2767_v2 = vpop.f32.mrf.mxu0 }
 0x471   : > { %v2856_v47 = vpop.f32.mrf.mxu1 }
 0x472   : > { %v3033_v6 = vadd.f32 %v3032_v58, %v2944_v1  ;;  %v2857_v59 = vadd.f32 %v2856_v47, %v2767_v2 }
 0x474   : > { %v3490_v31 = vpack.c.bf16 %v3033_v6, %v5807_v16 }
 0x476   : > { %3554 = vst [vmem:[%s5514_s19 + $0x148] sm:$0xff] %v3490_v31 }
 0x477   : > { %v2945_v45 = vpop.f32.mrf.mxu2 }
 0x478   : > { %v2946_v56 = vadd.f32 %v2945_v45, %v2857_v59  ;;  %v3034_v39 = vpop.f32.mrf.mxu3  ;;  %v2770_v48 = vpop.f32.mrf.mxu0 }
 0x479   : > { %v2859_v51 = vpop.f32.mrf.mxu1 }
 0x47a   : > { %v3035_v12 = vadd.f32 %v3034_v39, %v2946_v56  ;;  %v2860_v15 = vadd.f32 %v2859_v51, %v2770_v48 }
 0x47c   : > { %v3492_v63 = vpack.c.bf16 %v3035_v12, %v5809_v24 }
 0x47e   : > { %3556 = vst [vmem:[%s5514_s19 + $0x158] sm:$0xff] %v3492_v63 }
 0x47f   : > { %v2948_v28 = vpop.f32.mrf.mxu2 }
 0x480   : > { %v2949_v38 = vadd.f32 %v2948_v28, %v2860_v15  ;;  %v3037_v60 = vpop.f32.mrf.mxu3  ;;  %v2772_v36 = vpop.f32.mrf.mxu0 }
 0x481   : > { %v2861_v17 = vpop.f32.mrf.mxu1 }
 0x482   : > { %v3038_v16 = vadd.f32 %v3037_v60, %v2949_v38  ;;  %v2862_v27 = vadd.f32 %v2861_v17, %v2772_v36 }
 0x484   : > { %v3494_v18 = vpack.c.bf16 %v3038_v16, %v5815_v61 }
 0x486   : > { %3558 = vst [vmem:[%s5514_s19 + $0x168] sm:$0xff] %v3494_v18 }
 0x487   : > { %v2950_v30 = vpop.f32.mrf.mxu2 }
 0x488   : > { %v2951_v50 = vadd.f32 %v2950_v30, %v2862_v27  ;;  %v3039_v20 = vpop.f32.mrf.mxu3  ;;  %v2775_v21 = vpop.f32.mrf.mxu0 }
 0x489   : > { %v2864_v22 = vpop.f32.mrf.mxu1 }
 0x48a   : > { %v3040_v24 = vadd.f32 %v3039_v20, %v2951_v50  ;;  %v2865_v33 = vadd.f32 %v2864_v22, %v2775_v21 }
 0x48c   : > { %v3496_v23 = vpack.c.bf16 %v3040_v24, %v5817_v49 }
 0x48e   : > { %3560 = vst [vmem:[%s5514_s19 + $0x178] sm:$0xff] %v3496_v23 }
 0x48f   : > { %v2953_v34 = vpop.f32.mrf.mxu2 }
 0x490   : > { %v2954_v35 = vadd.f32 %v2953_v34, %v2865_v33  ;;  %v3042_v55 = vpop.f32.mrf.mxu3  ;;  %v2777_v19 = vpop.f32.mrf.mxu0 }
 0x491   : > { %v2866_v29 = vpop.f32.mrf.mxu1 }
 0x492   : > { %v3043_v61 = vadd.f32 %v3042_v55, %v2954_v35  ;;  %v2867_v62 = vadd.f32 %v2866_v29, %v2777_v19 }
 0x494   : > { %v3498_v52 = vpack.c.bf16 %v3043_v61, %v5823_v4 }
 0x496   : > { %3562 = vst [vmem:[%s5514_s19 + $0x188] sm:$0xff] %v3498_v52 }
 0x497   : > { %v2955_v40 = vpop.f32.mrf.mxu2 }
 0x498   : > { %v2956_v5 = vadd.f32 %v2955_v40, %v2867_v62  ;;  %v3044_v11 = vpop.f32.mrf.mxu3  ;;  %v2780_v3 = vpop.f32.mrf.mxu0 }
 0x499   : > { %v2869_v44 = vpop.f32.mrf.mxu1 }
 0x49a   : > { %v3045_v49 = vadd.f32 %v3044_v11, %v2956_v5  ;;  %v2870_v43 = vadd.f32 %v2869_v44, %v2780_v3 }
 0x49c   : > { %v3500_v42 = vpack.c.bf16 %v3045_v49, %v5825_v0 }
 0x49e   : > { %3564 = vst [vmem:[%s5514_s19 + $0x198] sm:$0xff] %v3500_v42 }
 0x49f   : > { %v2958_v57 = vpop.f32.mrf.mxu2 }
 0x4a0   : > { %v2959_v37 = vadd.f32 %v2958_v57, %v2870_v43  ;;  %v3047_v25 = vpop.f32.mrf.mxu3  ;;  %v2782_v46 = vpop.f32.mrf.mxu0 }
 0x4a1   : > { %v2871_v7 = vpop.f32.mrf.mxu1 }
 0x4a2   : > { %v3048_v4 = vadd.f32 %v3047_v25, %v2959_v37  ;;  %v2872_v53 = vadd.f32 %v2871_v7, %v2782_v46 }
 0x4a4   : > { %v3502_v10 = vpack.c.bf16 %v3048_v4, %v5831_v14 }
 0x4a6   : > { %3566 = vst [vmem:[%s5514_s19 + $0x1a8] sm:$0xff] %v3502_v10 }
 0x4a7   : > { %v2960_v8 = vpop.f32.mrf.mxu2 }
 0x4a8   : > { %v2961_v9 = vadd.f32 %v2960_v8, %v2872_v53  ;;  %v3049_v1 = vpop.f32.mrf.mxu3  ;;  %v2785_v58 = vpop.f32.mrf.mxu0 }
 0x4a9   : > { %v2874_v2 = vpop.f32.mrf.mxu1 }
 0x4aa   : > { %v3050_v0 = vadd.f32 %v3049_v1, %v2961_v9  ;;  %v2875_v6 = vadd.f32 %v2874_v2, %v2785_v58 }
 0x4ac   : > { %v3504_v47 = vpack.c.bf16 %v3050_v0, %v5833_v32 }
 0x4ae   : > { %3568 = vst [vmem:[%s5514_s19 + $0x1b8] sm:$0xff] %v3504_v47 }
 0x4af   : > { %v2963_v31 = vpop.f32.mrf.mxu2 }
 0x4b0   : > { %v2964_v59 = vadd.f32 %v2963_v31, %v2875_v6  ;;  %v3052_v45 = vpop.f32.mrf.mxu3  ;;  %v2787_v56 = vpop.f32.mrf.mxu0 }
 0x4b1   : > { %v2876_v39 = vpop.f32.mrf.mxu1 }
 0x4b2   : > { %v3053_v14 = vadd.f32 %v3052_v45, %v2964_v59  ;;  %v2877_v51 = vadd.f32 %v2876_v39, %v2787_v56 }
 0x4b4   : > { %v3506_v48 = vpack.c.bf16 %v3053_v14, %v5839_v41 }
 0x4b6   : > { %3570 = vst [vmem:[%s5514_s19 + $0x1c8] sm:$0xff] %v3506_v48 }
 0x4b7   : > { %v2965_v12 = vpop.f32.mrf.mxu2 }
 0x4b8   : > { %v2966_v63 = vadd.f32 %v2965_v12, %v2877_v51  ;;  %v3054_v15 = vpop.f32.mrf.mxu3  ;;  %v2790_v28 = vpop.f32.mrf.mxu0 }
 0x4b9   : > { %v2879_v32 = vpop.f32.mrf.mxu1 }
 0x4ba   : > { %v3055_v38 = vadd.f32 %v3054_v15, %v2966_v63  ;;  %v2880_v36 = vadd.f32 %v2879_v32, %v2790_v28 }
 0x4bc   : > { %v3508_v60 = vpack.c.bf16 %v3055_v38, %v5841_v26 }
 0x4be   : > { %3572 = vst [vmem:[%s5514_s19 + $0x1d8] sm:$0xff] %v3508_v60 }
 0x4bf   : > { %v2968_v17 = vpop.f32.mrf.mxu2 }
 0x4c0   : > { %v2969_v16 = vadd.f32 %v2968_v17, %v2880_v36  ;;  %v3057_v18 = vpop.f32.mrf.mxu3  ;;  %v2792_v41 = vpop.f32.mrf.mxu0 }
 0x4c1   : > { %v2881_v30 = vpop.f32.mrf.mxu1 }
 0x4c2   : > { %v3058_v27 = vadd.f32 %v3057_v18, %v2969_v16  ;;  %v2882_v20 = vadd.f32 %v2881_v30, %v2792_v41 }
 0x4c4   : > { %v3510_v50 = vpack.c.bf16 %v3058_v27, %v5847_v13 }
 0x4c6   : > { %3574 = vst [vmem:[%s5514_s19 + $0x1e8] sm:$0xff] %v3510_v50 }
 0x4c7   : > { %v2970_v26 = vpop.f32.mrf.mxu2 }
 0x4c8   : > { %v2971_v21 = vadd.f32 %v2970_v26, %v2882_v20  ;;  %v3059_v22 = vpop.f32.mrf.mxu3 }
 0x4ca   : > { %v3060_v24 = vadd.f32 %v3059_v22, %v2971_v21 }
 0x4cc   : > { %v3512_v23 = vpack.c.bf16 %v3060_v24, %v5849_v54 }
 0x4ce   : > { %3576 = vst [vmem:[%s5514_s19 + $0x1f8] sm:$0xff] %v3512_v23 }
 0x4cf   : > { %4848 = shalt.err (!%p4845_p12)
}
 0x4d0   : > { %s4913_s30 = smov 256   ;;  %s4914_s6 = smov 768  }
 0x4d1   : > { %s4915_s7 = smov 16  }
 0x4d2   : > { %4688 = dma.vmem_to_hbm [thread:$0]  (%p5012_p3), %s3594_s16, 8192, %s3596_s21, %s3578_s12, %s4913_s30, %s4914_s6, %s4915_s7  }
 0x4d3 PF: > { %p4705_p13 = scmp.ge.s32.totalorder %s4907_s14, 2  ;;  %s3610_s17 = sand.u32 1, %s4887_s9  }
 0x4d4   : > { %s3611_s19 = scalar_lea.sflag [#allocation5], %s3610_s17 }
 0x4d5   : > { %p4699_p0 = pnand %p4705_p13, %p4980_p6 }
 0x4d7   : > { %p4700_p5 = pneg %p4699_p0 }
 0x4d9   : > { %4882 = dma.done.wait (%p4700_p5), %s3611_s19, 8192  }
 0x4da   : > { %4884 = vsyncadd (%p4700_p5), %s3611_s19, 4294959104  ;;  %s19_s14 = sadd.s32 1, %s4907_s14   ;;  %s6236_s9 = smov %s4891_s10 }
 0x4db   : > { %p16_p7 = scmp.ge.s32.totalorder %s19_s14, 5   ;;  %s6237_s10 = smov %s4895_s11 }
 0x4dc   : > { %s6238_s11 = smov %s5021_s8  ;;  %s6239_s12 = smov %s4903_s13 }
 0x4dd   : > { %s6240_s13 = smov %s6242_s29  ;;  %18 = sbr.rel (!%p16_p7) target bundleno = 7 (0x7), region = 87 }
 0x4e2   :  { %3617 = vsyncpa [#allocation4], 1 }
 0x4e3   :  { %3619 = vsyncpa [#allocation4 + $0x1], 1 }
 0x4e4   :  { %3620 = vsyncpa [#allocation7], 1 }
 0x4e5   :  { %3622 = vsyncpa [#allocation7 + $0x1], 1 }
 0x4e6   :  { %3623 = vsyncpa [#allocation5], 1 }
 0x4e7   :  { %3625 = vsyncpa [#allocation5 + $0x1], 1 }

</bundles_post_ra>
